<compile_context>
chip_gen: v5e
topology: v5e:2x2
jax: 0.10.0
libtpu: 0.0.40
codegen_flags: <defaults>
</compile_context>

<pallas_src>
import functools

import jax
import jax.numpy as jnp
from jax.experimental import pallas as pl
from jax.experimental.pallas import tpu as pltpu

_LANE = 128
_SUB = 8
_NCORES = 2            # outer grid split for megacore (v7x); harmless serial loop on 1-TC chips
_MAX_TILE = 2048       # row-tile ceiling; actual tile is K-aware + VMEM-budget aware
_BN_EPS = 1e-5


def _round_up(v, m):
    return (v + m - 1) // m * m


@functools.lru_cache(maxsize=None)
def _vmem_budget():
    """Generation-aware scoped-VMEM budget (~75% of physical: 96 MiB v5e/v6e, 48 MiB v7x)."""
    try:
        cap = int(pltpu.get_tpu_info().vmem_capacity_bytes)
    except Exception:
        cap = 64 << 20
    return min(cap * 3 // 4, 96 << 20)


def _pick_tile(k_pad, co_pad, out_bytes, budget):
    """Largest row tile whose double-buffered bf16 patch + output tiles (plus the
    double-buffered grid-invariant weight block) fit the VMEM budget."""
    per_row = 2 * (k_pad * 2 + co_pad * out_bytes)   # 2 buffers each of patch / output rows
    w_bytes = 2 * k_pad * co_pad * 2                 # weight block (still double-buffered)
    avail = budget - w_bytes - (4 << 20)             # headroom: stats, scalars, compiler scratch
    tile = max(_SUB, min(_MAX_TILE, avail // per_row))
    return int(tile // _SUB) * _SUB


# ---------------------------------------------------------------------------
# Pallas kernels (row-tiled, bf16 MXU inputs, f32 accumulation)
# ---------------------------------------------------------------------------
def _conv_prelu_kernel(p_ref, w_ref, a_ref, o_ref):
    # Conv-as-matmul (no bias) fused with the shared-parameter PReLU.
    y = jnp.dot(p_ref[...], w_ref[...], preferred_element_type=jnp.float32)
    a = a_ref[0]
    o_ref[...] = jnp.where(y >= 0.0, y, a * y).astype(o_ref.dtype)


def _conv_stats_kernel(p_ref, w_ref, y_ref, stats_ref):
    # Conv-as-matmul (no bias); per-channel sum and sum-of-squares accumulated per core
    # across the sequential ("arbitrary") inner row-tile axis for training-mode BatchNorm.
    @pl.when(pl.program_id(1) == 0)
    def _():
        stats_ref[...] = jnp.zeros_like(stats_ref)

    y = jnp.dot(p_ref[...], w_ref[...], preferred_element_type=jnp.float32)
    y_ref[...] = y.astype(y_ref.dtype)
    s = jnp.sum(y, axis=0, keepdims=True)
    ss = jnp.sum(y * y, axis=0, keepdims=True)
    stats_ref[...] += jnp.concatenate([s, ss], axis=0)[None]


def _conv_bias_kernel(p_ref, w_ref, b_ref, o_ref):
    # Final conv: matmul + bias (no norm / activation).
    y = jnp.dot(p_ref[...], w_ref[...], preferred_element_type=jnp.float32)
    o_ref[...] = (y + b_ref[...]).astype(o_ref.dtype)


def _bn_prelu_kernel(y_ref, scale_ref, shift_ref, a_ref, o_ref):
    # Apply precomputed BatchNorm scale/shift, then PReLU (memory-bound elementwise pass).
    y = y_ref[...].astype(jnp.float32) * scale_ref[...] + shift_ref[...]
    a = a_ref[0]
    o_ref[...] = jnp.where(y >= 0.0, y, a * y).astype(o_ref.dtype)


# ---------------------------------------------------------------------------
# JAX glue: activation prep, im2col, weight reshape (pure data movement)
# ---------------------------------------------------------------------------
def _prep_act(x_nhwc):
    """Cast to bf16 and pad channels to a multiple of 8 (K = 16*C becomes a multiple of
    128), on the SMALL activation rather than the 16x-inflated im2col matrix."""
    c = x_nhwc.shape[-1]
    c_pad = _round_up(c, _SUB)
    x = x_nhwc.astype(jnp.bfloat16)
    if c_pad != c:
        x = jnp.pad(x, ((0, 0), (0, 0), (0, 0), (0, c_pad - c)))
    return x


def _im2col(x_nhwc, k, stride, pad):
    """(N,H,W,C) -> (N*OH*OW, k*k*C) with feature order (kh, kw, c)."""
    n, h, w, c = x_nhwc.shape
    xp = jnp.pad(x_nhwc, ((0, 0), (pad, pad), (pad, pad), (0, 0)))
    oh = (h + 2 * pad - k) // stride + 1
    ow = (w + 2 * pad - k) // stride + 1
    cols = [xp[:, kh:kh + stride * oh:stride, kw:kw + stride * ow:stride, :]
            for kh in range(k) for kw in range(k)]
    p = jnp.concatenate(cols, axis=-1).reshape(n * oh * ow, k * k * c)
    return p, oh, ow


def _weight_mat(w_oihw, cin_pad):
    """(Co,Ci,Kh,Kw) -> (Kh*Kw*cin_pad, Co_pad) bf16, feature order (kh, kw, ci)."""
    co, ci, kh, kw = w_oihw.shape
    co_pad = _round_up(co, _LANE)
    w = jnp.transpose(w_oihw, (2, 3, 1, 0))                       # (kh, kw, ci, co)
    w = jnp.pad(w, ((0, 0), (0, 0), (0, cin_pad - ci), (0, co_pad - co)))
    return w.reshape(kh * kw * cin_pad, co_pad).astype(jnp.bfloat16), co_pad


def _pad_rows(p, r_pad):
    r = p.shape[0]
    if r_pad == r:
        return p
    return jnp.pad(p, ((0, r_pad - r), (0, 0)))


# ---------------------------------------------------------------------------
# pallas_call wrappers (row-tiled grids)
# ---------------------------------------------------------------------------
def _conv_prelu_call(p_rows, w_mat, prelu_a1):
    r, k_pad = p_rows.shape
    co_pad = w_mat.shape[1]
    budget = _vmem_budget()
    r8 = _round_up(r, _SUB)
    tile = max(_SUB, min(_pick_tile(k_pad, co_pad, 2, budget),
                         _round_up(-(-r8 // _NCORES), _SUB)))
    r_pad = _round_up(r8, tile)
    p = _pad_rows(p_rows, r_pad)
    grid = (r_pad // tile,)
    cost = pl.CostEstimate(
        flops=2 * r_pad * k_pad * co_pad, transcendentals=0,
        bytes_accessed=r_pad * k_pad * 2 + k_pad * co_pad * 2 + r_pad * co_pad * 2)
    return pl.pallas_call(
        _conv_prelu_kernel,
        out_shape=jax.ShapeDtypeStruct((r_pad, co_pad), jnp.bfloat16),
        grid=grid,
        in_specs=[pl.BlockSpec((tile, k_pad), lambda i: (i, 0)),
                  pl.BlockSpec((k_pad, co_pad), lambda i: (0, 0)),
                  pl.BlockSpec(memory_space=pltpu.MemorySpace.SMEM)],
        out_specs=pl.BlockSpec((tile, co_pad), lambda i: (i, 0)),
        compiler_params=pltpu.CompilerParams(
            dimension_semantics=("parallel",), vmem_limit_bytes=budget),
        cost_estimate=cost,
    )(p, w_mat, prelu_a1)


def _conv_stats_call(p_rows, w_mat):
    """Conv + per-channel (sum, sumsq).  Grid = (core, row_tile): the outer 'parallel'
    axis splits the reduction across both v7x TensorCores; per-core partial stats are
    combined by the caller."""
    r, k_pad = p_rows.shape
    co_pad = w_mat.shape[1]
    budget = _vmem_budget()
    r8 = _round_up(r, _SUB)
    tile = max(_SUB, min(_pick_tile(k_pad, co_pad, 2, budget),
                         _round_up(-(-r8 // _NCORES), _SUB)))
    r_pad = _round_up(r8, _NCORES * tile)
    inner = r_pad // (_NCORES * tile)
    p = _pad_rows(p_rows, r_pad)                      # zero rows -> contribute 0 to stats
    grid = (_NCORES, inner)
    cost = pl.CostEstimate(
        flops=2 * r_pad * k_pad * co_pad, transcendentals=0,
        bytes_accessed=r_pad * k_pad * 2 + k_pad * co_pad * 2 + r_pad * co_pad * 2)
    y, stats = pl.pallas_call(
        _conv_stats_kernel,
        out_shape=(jax.ShapeDtypeStruct((r_pad, co_pad), jnp.bfloat16),
                   jax.ShapeDtypeStruct((_NCORES, 2, co_pad), jnp.float32)),
        grid=grid,
        in_specs=[pl.BlockSpec((tile, k_pad), lambda c, i: (c * inner + i, 0)),
                  pl.BlockSpec((k_pad, co_pad), lambda c, i: (0, 0))],
        out_specs=(pl.BlockSpec((tile, co_pad), lambda c, i: (c * inner + i, 0)),
                   pl.BlockSpec((1, 2, co_pad), lambda c, i: (c, 0, 0))),
        compiler_params=pltpu.CompilerParams(
            dimension_semantics=("parallel", "arbitrary"), vmem_limit_bytes=budget),
        cost_estimate=cost,
    )(p, w_mat)
    return y, stats, tile


def _conv_bias_call(p_rows, w_mat, bias_row):
    r, k_pad = p_rows.shape
    co_pad = w_mat.shape[1]
    budget = _vmem_budget()
    r8 = _round_up(r, _SUB)
    tile = max(_SUB, min(_pick_tile(k_pad, co_pad, 4, budget),
                         _round_up(-(-r8 // _NCORES), _SUB)))
    r_pad = _round_up(r8, tile)
    p = _pad_rows(p_rows, r_pad)
    grid = (r_pad // tile,)
    cost = pl.CostEstimate(
        flops=2 * r_pad * k_pad * co_pad, transcendentals=0,
        bytes_accessed=r_pad * k_pad * 2 + k_pad * co_pad * 2 + r_pad * co_pad * 4)
    return pl.pallas_call(
        _conv_bias_kernel,
        out_shape=jax.ShapeDtypeStruct((r_pad, co_pad), jnp.float32),
        grid=grid,
        in_specs=[pl.BlockSpec((tile, k_pad), lambda i: (i, 0)),
                  pl.BlockSpec((k_pad, co_pad), lambda i: (0, 0)),
                  pl.BlockSpec((1, co_pad), lambda i: (0, 0))],
        out_specs=pl.BlockSpec((tile, co_pad), lambda i: (i, 0)),
        compiler_params=pltpu.CompilerParams(
            dimension_semantics=("parallel",), vmem_limit_bytes=budget),
        cost_estimate=cost,
    )(p, w_mat, bias_row)


def _bn_prelu_call(y_rows, scale, shift, prelu_a1, tile):
    r_pad, co_pad = y_rows.shape
    grid = (r_pad // tile,)                           # tile inherited from the stats conv
    budget = _vmem_budget()
    return pl.pallas_call(
        _bn_prelu_kernel,
        out_shape=jax.ShapeDtypeStruct((r_pad, co_pad), jnp.bfloat16),
        grid=grid,
        in_specs=[pl.BlockSpec((tile, co_pad), lambda i: (i, 0)),
                  pl.BlockSpec((1, co_pad), lambda i: (0, 0)),
                  pl.BlockSpec((1, co_pad), lambda i: (0, 0)),
                  pl.BlockSpec(memory_space=pltpu.MemorySpace.SMEM)],
        out_specs=pl.BlockSpec((tile, co_pad), lambda i: (i, 0)),
        compiler_params=pltpu.CompilerParams(
            dimension_semantics=("parallel",), vmem_limit_bytes=budget),
    )(y_rows, scale.reshape(1, co_pad), shift.reshape(1, co_pad), prelu_a1)


# ---------------------------------------------------------------------------
# Forward pass of _Discriminator (norm='batch', activation='PReLU', n_layers=3)
# ---------------------------------------------------------------------------
def discriminator_forward(x_nchw, params):
    a1 = jnp.asarray(params["prelu_a"], jnp.float32).reshape(1)
    x = jnp.transpose(x_nchw, (0, 2, 3, 1))                           # NHWC
    n = x.shape[0]

    def conv_prelu(act, w, stride):
        co = w.shape[0]
        act = _prep_act(act)
        p, oh, ow = _im2col(act, 4, stride, 1)
        r = p.shape[0]
        wm, _ = _weight_mat(w, act.shape[-1])
        y = _conv_prelu_call(p, wm, a1)
        return y[:r, :co].reshape(n, oh, ow, co)

    def conv_bn_prelu(act, w, gamma, beta, stride):
        co = w.shape[0]
        act = _prep_act(act)
        p, oh, ow = _im2col(act, 4, stride, 1)
        r = p.shape[0]
        wm, co_pad = _weight_mat(w, act.shape[-1])
        y, stats, tile = _conv_stats_call(p, wm)
        stats = jnp.sum(stats, axis=0)                # combine per-core partial sums
        # Training-mode BatchNorm statistics over the N*OH*OW real rows.  Padded rows /
        # channels are exact zeros of a bias-free conv, so they do not perturb the sums.
        inv_n = 1.0 / float(r)
        mean = stats[0] * inv_n
        var = stats[1] * inv_n - mean * mean          # biased variance (torch BN training)
        g = jnp.pad(gamma.astype(jnp.float32), (0, co_pad - co))
        b = jnp.pad(beta.astype(jnp.float32), (0, co_pad - co))
        scale = g * jax.lax.rsqrt(var + _BN_EPS)
        shift = b - mean * scale
        out = _bn_prelu_call(y, scale, shift, a1, tile)
        return out[:r, :co].reshape(n, oh, ow, co)

    def conv_bias(act, w, bias):
        co = w.shape[0]
        act = _prep_act(act)
        p, oh, ow = _im2col(act, 4, 1, 1)
        r = p.shape[0]
        wm, co_pad = _weight_mat(w, act.shape[-1])
        bias_p = jnp.pad(bias.astype(jnp.float32), (0, co_pad - co)).reshape(1, co_pad)
        y = _conv_bias_call(p, wm, bias_p)
        return y[:r, :co].reshape(n, oh, ow, co)

    h = conv_prelu(x, params["w0"], 2)                                   # input_nc -> ndf
    h = conv_bn_prelu(h, params["w1"], params["g1"], params["b1"], 2)    # ndf -> 2*ndf
    h = conv_bn_prelu(h, params["w2"], params["g2"], params["b2"], 2)    # 2*ndf -> 4*ndf
    h = conv_bn_prelu(h, params["w3"], params["g3"], params["b3"], 1)    # 4*ndf -> 8*ndf
    h = conv_bias(h, params["w4"], params["bias4"])                      # 8*ndf -> 1
    return jnp.transpose(h, (0, 3, 1, 2))                                # NCHW, f32


# ---------------------------------------------------------------------------
# Pure-JAX reference (numerical validation only)
# ---------------------------------------------------------------------------
def reference_forward(x_nchw, params):
    a = params["prelu_a"]

    def prelu(v):
        return jnp.where(v >= 0, v, a * v)

    def conv(v, w, stride, pad=1):
        return jax.lax.conv_general_dilated(
            v, w, (stride, stride), ((pad, pad), (pad, pad)),
            dimension_numbers=("NCHW", "OIHW", "NCHW"))

    def bn(v, g, b):
        mean = jnp.mean(v, axis=(0, 2, 3), keepdims=True)
        var = jnp.mean((v - mean) ** 2, axis=(0, 2, 3), keepdims=True)
        return ((v - mean) * jax.lax.rsqrt(var + _BN_EPS) * g.reshape(1, -1, 1, 1)
                + b.reshape(1, -1, 1, 1))

    h = prelu(conv(x_nchw, params["w0"], 2))
    h = prelu(bn(conv(h, params["w1"], 2), params["g1"], params["b1"]))
    h = prelu(bn(conv(h, params["w2"], 2), params["g2"], params["b2"]))
    h = prelu(bn(conv(h, params["w3"], 1), params["g3"], params["b3"]))
    h = conv(h, params["w4"], 1) + params["bias4"].reshape(1, -1, 1, 1)
    return h


if __name__ == "__main__":
    key = jax.random.PRNGKey(0)
    ks = jax.random.split(key, 13)

    N, input_nc, ndf, H, W = 2, 4, 8, 64, 64
    x = jax.random.normal(ks[0], (N, input_nc, H, W), jnp.float32)

    def _w(k, co, ci):
        return 0.1 * jax.random.normal(k, (co, ci, 4, 4), jnp.float32)

    params = dict(
        w0=_w(ks[1], ndf, input_nc),
        w1=_w(ks[2], 2 * ndf, ndf),
        g1=1.0 + 0.1 * jax.random.normal(ks[3], (2 * ndf,), jnp.float32),
        b1=0.1 * jax.random.normal(ks[4], (2 * ndf,), jnp.float32),
        w2=_w(ks[5], 4 * ndf, 2 * ndf),
        g2=1.0 + 0.1 * jax.random.normal(ks[6], (4 * ndf,), jnp.float32),
        b2=0.1 * jax.random.normal(ks[7], (4 * ndf,), jnp.float32),
        w3=_w(ks[8], 8 * ndf, 4 * ndf),
        g3=1.0 + 0.1 * jax.random.normal(ks[9], (8 * ndf,), jnp.float32),
        b3=0.1 * jax.random.normal(ks[10], (8 * ndf,), jnp.float32),
        w4=_w(ks[11], 1, 8 * ndf),
        bias4=0.1 * jax.random.normal(ks[12], (1,), jnp.float32),
        prelu_a=jnp.asarray(0.25, jnp.float32),   # nn.PReLU() default, shared everywhere
    )

    out = jax.jit(discriminator_forward)(x, params)
    out = jax.block_until_ready(out)

    ref = reference_forward(x, params)
    assert out.shape == (N, 1, H // 8 - 2, W // 8 - 2), out.shape
    assert bool(jnp.all(jnp.isfinite(out)))
    err = float(jnp.max(jnp.abs(out - ref)))
    # bf16 patches + bf16 intermediate activations -> looser-than-f32 tolerance.
    assert jnp.allclose(out, ref, atol=2e-1, rtol=2e-1), f"max abs err = {err}"
    print("KERNEL_OK")
</pallas_src>

<mosaic_0001>
module attributes {stable_mosaic.version = 11 : i64} {
  func.func @_conv_prelu_kernel(%arg0: i32, %arg1: memref<1024x128xbf16, #tpu.memory_space<vmem>>, %arg2: memref<128x128xbf16, #tpu.memory_space<vmem>>, %arg3: memref<1xf32, #tpu.memory_space<smem>>, %arg4: memref<1024x128xbf16, #tpu.memory_space<vmem>>) attributes {dimension_semantics = [#tpu.dimension_semantics<parallel>], iteration_bounds = array<i64: 2>, scalar_prefetch = 0 : i64, scratch_operands = 0 : i64, tpu.core_type = #tpu.core_type<tc>, window_params = [{transform_indices = @transform_0, window_bounds = array<i64: 1024, 128>}, {pipeline_mode = #tpu.pipeline_mode<synchronous>, transform_indices = @transform_1, window_bounds = array<i64: 128, 128>}, {transform_indices = @transform_2, window_bounds = array<i64: 1>}, {transform_indices = @transform_3, window_bounds = array<i64: 1024, 128>}]} {
    %c0 = arith.constant 0 : index
    %c0_0 = arith.constant 0 : index
    %0 = vector.load %arg1[%c0, %c0_0] : memref<1024x128xbf16, #tpu.memory_space<vmem>>, vector<1024x128xbf16>
    %c0_1 = arith.constant 0 : index
    %c0_2 = arith.constant 0 : index
    %1 = vector.load %arg2[%c0_1, %c0_2] : memref<128x128xbf16, #tpu.memory_space<vmem>>, vector<128x128xbf16>
    %cst = arith.constant dense<0.000000e+00> : vector<1024x128xf32>
    %2 = tpu.matmul %0, %1, %cst {dimension_numbers = #tpu.dot_dimension_numbers<[1], [0], [0], [1], [0, 0, 1, 1], [], []>} : vector<1024x128xbf16>, vector<128x128xbf16>, vector<1024x128xf32> -> vector<1024x128xf32>
    %c0_3 = arith.constant 0 : index
    %3 = memref.load %arg3[%c0_3] : memref<1xf32, #tpu.memory_space<smem>>
    %cst_4 = arith.constant 0.000000e+00 : f32
    %4 = vector.broadcast %cst_4 : f32 to vector<1024x128xf32>
    %5 = arith.cmpf oge, %2, %4 : vector<1024x128xf32>
    %6 = vector.broadcast %3 : f32 to vector<1024x128xf32>
    %7 = arith.mulf %6, %2 : vector<1024x128xf32>
    %8 = arith.select %5, %2, %7 : vector<1024x128xi1>, vector<1024x128xf32>
    %9 = arith.truncf %8 : vector<1024x128xf32> to vector<1024x128xbf16>
    %c0_5 = arith.constant 0 : index
    %c0_6 = arith.constant 0 : index
    %10 = vector.load %arg4[%c0_5, %c0_6] : memref<1024x128xbf16, #tpu.memory_space<vmem>>, vector<1024x128xbf16>
    tpu.vector_store %arg4[%c0_5, %c0_6], %9 {strides = array<i32>} : memref<1024x128xbf16, #tpu.memory_space<vmem>>, vector<1024x128xbf16>,
    return
  }
  func.func @transform_0(%arg0: i32) -> (i32, i32) {
    %c0_i32 = arith.constant 0 : i32
    %c0_i32_0 = arith.constant 0 : i32
    return %arg0, %c0_i32 : i32, i32
  }
  func.func @transform_1(%arg0: i32) -> (i32, i32) {
    %c0_i32 = arith.constant 0 : i32
    %c0_i32_0 = arith.constant 0 : i32
    %c0_i32_1 = arith.constant 0 : i32
    return %c0_i32, %c0_i32_0 : i32, i32
  }
  func.func @transform_2(%arg0: i32) -> i32 {
    %c0_i32 = arith.constant 0 : i32
    %c0_i32_0 = arith.constant 0 : i32
    return %c0_i32 : i32
  }
  func.func @transform_3(%arg0: i32) -> (i32, i32) {
    %c0_i32 = arith.constant 0 : i32
    %c0_i32_0 = arith.constant 0 : i32
    return %arg0, %c0_i32 : i32, i32
  }
}

module attributes {stable_mosaic.version = 11 : i64} {
  func.func @_conv_stats_kernel(%arg0: i32, %arg1: i32, %arg2: memref<256x128xbf16, #tpu.memory_space<vmem>>, %arg3: memref<128x128xbf16, #tpu.memory_space<vmem>>, %arg4: memref<256x128xbf16, #tpu.memory_space<vmem>>, %arg5: memref<1x2x128xf32, #tpu.memory_space<vmem>>) attributes {dimension_semantics = [#tpu.dimension_semantics<parallel>, #tpu.dimension_semantics<arbitrary>], iteration_bounds = array<i64: 2, 1>, scalar_prefetch = 0 : i64, scratch_operands = 0 : i64, tpu.core_type = #tpu.core_type<tc>, window_params = [{transform_indices = @transform_0, window_bounds = array<i64: 256, 128>}, {pipeline_mode = #tpu.pipeline_mode<synchronous>, transform_indices = @transform_1, window_bounds = array<i64: 128, 128>}, {transform_indices = @transform_2, window_bounds = array<i64: 256, 128>}, {transform_indices = @transform_3, window_bounds = array<i64: 1, 2, 128>}]} {
    %c0_i32 = arith.constant 0 : i32
    %0 = arith.cmpi eq, %arg1, %c0_i32 : i32
    %1 = arith.extui %0 : i1 to i32
    %c0_i32_0 = arith.constant 0 : i32
    %2 = arith.cmpi ne, %1, %c0_i32_0 : i32
    scf.if %2 {
      %cst_14 = arith.constant 0.000000e+00 : f32
      %18 = vector.broadcast %cst_14 : f32 to vector<1x2x128xf32>
      %c0_15 = arith.constant 0 : index
      %c0_16 = arith.constant 0 : index
      %c0_17 = arith.constant 0 : index
      %19 = vector.load %arg5[%c0_15, %c0_16, %c0_17] : memref<1x2x128xf32, #tpu.memory_space<vmem>>, vector<1x2x128xf32>
      tpu.vector_store %arg5[%c0_15, %c0_16, %c0_17], %18 {strides = array<i32>} : memref<1x2x128xf32, #tpu.memory_space<vmem>>, vector<1x2x128xf32>,
    } else {
    }
    %c0 = arith.constant 0 : index
    %c0_1 = arith.constant 0 : index
    %3 = vector.load %arg2[%c0, %c0_1] : memref<256x128xbf16, #tpu.memory_space<vmem>>, vector<256x128xbf16>
    %c0_2 = arith.constant 0 : index
    %c0_3 = arith.constant 0 : index
    %4 = vector.load %arg3[%c0_2, %c0_3] : memref<128x128xbf16, #tpu.memory_space<vmem>>, vector<128x128xbf16>
    %cst = arith.constant dense<0.000000e+00> : vector<256x128xf32>
    %5 = tpu.matmul %3, %4, %cst {dimension_numbers = #tpu.dot_dimension_numbers<[1], [0], [0], [1], [0, 0, 1, 1], [], []>} : vector<256x128xbf16>, vector<128x128xbf16>, vector<256x128xf32> -> vector<256x128xf32>
    %6 = arith.truncf %5 : vector<256x128xf32> to vector<256x128xbf16>
    %c0_4 = arith.constant 0 : index
    %c0_5 = arith.constant 0 : index
    %7 = vector.load %arg4[%c0_4, %c0_5] : memref<256x128xbf16, #tpu.memory_space<vmem>>, vector<256x128xbf16>
    tpu.vector_store %arg4[%c0_4, %c0_5], %6 {strides = array<i32>} : memref<256x128xbf16, #tpu.memory_space<vmem>>, vector<256x128xbf16>,
    %cst_6 = arith.constant dense<0.000000e+00> : vector<128xf32>
    %8 = vector.multi_reduction <add>, %5, %cst_6 [0] : vector<256x128xf32> to vector<128xf32>
    %9 = vector.shape_cast %8 : vector<128xf32> to vector<1x128xf32>
    %10 = arith.mulf %5, %5 : vector<256x128xf32>
    %cst_7 = arith.constant dense<0.000000e+00> : vector<128xf32>
    %11 = vector.multi_reduction <add>, %10, %cst_7 [0] : vector<256x128xf32> to vector<128xf32>
    %12 = vector.shape_cast %11 : vector<128xf32> to vector<1x128xf32>
    %c0_8 = arith.constant 0 : index
    %c0_9 = arith.constant 0 : index
    %c0_10 = arith.constant 0 : index
    %13 = vector.load %arg5[%c0_8, %c0_9, %c0_10] : memref<1x2x128xf32, #tpu.memory_space<vmem>>, vector<1x2x128xf32>
    %14 = tpu.concatenate %9, %12 in 0 : vector<1x128xf32>, vector<1x128xf32> -> vector<2x128xf32>
    %15 = vector.shape_cast %14 : vector<2x128xf32> to vector<1x2x128xf32>
    %16 = arith.addf %13, %15 : vector<1x2x128xf32>
    %c0_11 = arith.constant 0 : index
    %c0_12 = arith.constant 0 : index
    %c0_13 = arith.constant 0 : index
    %17 = vector.load %arg5[%c0_11, %c0_12, %c0_13] : memref<1x2x128xf32, #tpu.memory_space<vmem>>, vector<1x2x128xf32>
    tpu.vector_store %arg5[%c0_11, %c0_12, %c0_13], %16 {strides = array<i32>} : memref<1x2x128xf32, #tpu.memory_space<vmem>>, vector<1x2x128xf32>,
    return
  }
  func.func @transform_0(%arg0: i32, %arg1: i32) -> (i32, i32) {
    %c1_i32 = arith.constant 1 : i32
    %0 = arith.muli %arg0, %c1_i32 : i32
    %1 = arith.addi %0, %arg1 : i32
    %c0_i32 = arith.constant 0 : i32
    %c0_i32_0 = arith.constant 0 : i32
    return %1, %c0_i32 : i32, i32
  }
  func.func @transform_1(%arg0: i32, %arg1: i32) -> (i32, i32) {
    %c0_i32 = arith.constant 0 : i32
    %c0_i32_0 = arith.constant 0 : i32
    %c0_i32_1 = arith.constant 0 : i32
    return %c0_i32, %c0_i32_0 : i32, i32
  }
  func.func @transform_2(%arg0: i32, %arg1: i32) -> (i32, i32) {
    %c1_i32 = arith.constant 1 : i32
    %0 = arith.muli %arg0, %c1_i32 : i32
    %1 = arith.addi %0, %arg1 : i32
    %c0_i32 = arith.constant 0 : i32
    %c0_i32_0 = arith.constant 0 : i32
    return %1, %c0_i32 : i32, i32
  }
  func.func @transform_3(%arg0: i32, %arg1: i32) -> (i32, i32, i32) {
    %c0_i32 = arith.constant 0 : i32
    %c0_i32_0 = arith.constant 0 : i32
    %c0_i32_1 = arith.constant 0 : i32
    return %arg0, %c0_i32, %c0_i32_0 : i32, i32, i32
  }
}

module attributes {stable_mosaic.version = 11 : i64} {
  func.func @_bn_prelu_kernel(%arg0: i32, %arg1: memref<256x128xbf16, #tpu.memory_space<vmem>>, %arg2: memref<1x128xf32, #tpu.memory_space<vmem>>, %arg3: memref<1x128xf32, #tpu.memory_space<vmem>>, %arg4: memref<1xf32, #tpu.memory_space<smem>>, %arg5: memref<256x128xbf16, #tpu.memory_space<vmem>>) attributes {dimension_semantics = [#tpu.dimension_semantics<parallel>], iteration_bounds = array<i64: 2>, scalar_prefetch = 0 : i64, scratch_operands = 0 : i64, tpu.core_type = #tpu.core_type<tc>, window_params = [{transform_indices = @transform_0, window_bounds = array<i64: 256, 128>}, {pipeline_mode = #tpu.pipeline_mode<synchronous>, transform_indices = @transform_1, window_bounds = array<i64: 1, 128>}, {pipeline_mode = #tpu.pipeline_mode<synchronous>, transform_indices = @transform_2, window_bounds = array<i64: 1, 128>}, {transform_indices = @transform_3, window_bounds = array<i64: 1>}, {transform_indices = @transform_4, window_bounds = array<i64: 256, 128>}]} {
    %c0 = arith.constant 0 : index
    %c0_0 = arith.constant 0 : index
    %0 = vector.load %arg1[%c0, %c0_0] : memref<256x128xbf16, #tpu.memory_space<vmem>>, vector<256x128xbf16>
    %1 = arith.extf %0 : vector<256x128xbf16> to vector<256x128xf32>
    %c0_1 = arith.constant 0 : index
    %c0_2 = arith.constant 0 : index
    %2 = vector.load %arg2[%c0_1, %c0_2] : memref<1x128xf32, #tpu.memory_space<vmem>>, vector<1x128xf32>
    %3 = vector.broadcast %2 : vector<1x128xf32> to vector<256x128xf32>
    %4 = arith.mulf %1, %3 : vector<256x128xf32>
    %c0_3 = arith.constant 0 : index
    %c0_4 = arith.constant 0 : index
    %5 = vector.load %arg3[%c0_3, %c0_4] : memref<1x128xf32, #tpu.memory_space<vmem>>, vector<1x128xf32>
    %6 = vector.broadcast %5 : vector<1x128xf32> to vector<256x128xf32>
    %7 = arith.addf %4, %6 : vector<256x128xf32>
    %c0_5 = arith.constant 0 : index
    %8 = memref.load %arg4[%c0_5] : memref<1xf32, #tpu.memory_space<smem>>
    %cst = arith.constant 0.000000e+00 : f32
    %9 = vector.broadcast %cst : f32 to vector<256x128xf32>
    %10 = arith.cmpf oge, %7, %9 : vector<256x128xf32>
    %11 = vector.broadcast %8 : f32 to vector<256x128xf32>
    %12 = arith.mulf %11, %7 : vector<256x128xf32>
    %13 = arith.select %10, %7, %12 : vector<256x128xi1>, vector<256x128xf32>
    %14 = arith.truncf %13 : vector<256x128xf32> to vector<256x128xbf16>
    %c0_6 = arith.constant 0 : index
    %c0_7 = arith.constant 0 : index
    %15 = vector.load %arg5[%c0_6, %c0_7] : memref<256x128xbf16, #tpu.memory_space<vmem>>, vector<256x128xbf16>
    tpu.vector_store %arg5[%c0_6, %c0_7], %14 {strides = array<i32>} : memref<256x128xbf16, #tpu.memory_space<vmem>>, vector<256x128xbf16>,
    return
  }
  func.func @transform_0(%arg0: i32) -> (i32, i32) {
    %c0_i32 = arith.constant 0 : i32
    %c0_i32_0 = arith.constant 0 : i32
    return %arg0, %c0_i32 : i32, i32
  }
  func.func @transform_1(%arg0: i32) -> (i32, i32) {
    %c0_i32 = arith.constant 0 : i32
    %c0_i32_0 = arith.constant 0 : i32
    %c0_i32_1 = arith.constant 0 : i32
    return %c0_i32, %c0_i32_0 : i32, i32
  }
  func.func @transform_2(%arg0: i32) -> (i32, i32) {
    %c0_i32 = arith.constant 0 : i32
    %c0_i32_0 = arith.constant 0 : i32
    %c0_i32_1 = arith.constant 0 : i32
    return %c0_i32, %c0_i32_0 : i32, i32
  }
  func.func @transform_3(%arg0: i32) -> i32 {
    %c0_i32 = arith.constant 0 : i32
    %c0_i32_0 = arith.constant 0 : i32
    return %c0_i32 : i32
  }
  func.func @transform_4(%arg0: i32) -> (i32, i32) {
    %c0_i32 = arith.constant 0 : i32
    %c0_i32_0 = arith.constant 0 : i32
    return %arg0, %c0_i32 : i32, i32
  }
}

module attributes {stable_mosaic.version = 11 : i64} {
  func.func @_conv_stats_kernel(%arg0: i32, %arg1: i32, %arg2: memref<64x256xbf16, #tpu.memory_space<vmem>>, %arg3: memref<256x128xbf16, #tpu.memory_space<vmem>>, %arg4: memref<64x128xbf16, #tpu.memory_space<vmem>>, %arg5: memref<1x2x128xf32, #tpu.memory_space<vmem>>) attributes {dimension_semantics = [#tpu.dimension_semantics<parallel>, #tpu.dimension_semantics<arbitrary>], iteration_bounds = array<i64: 2, 1>, scalar_prefetch = 0 : i64, scratch_operands = 0 : i64, tpu.core_type = #tpu.core_type<tc>, window_params = [{transform_indices = @transform_0, window_bounds = array<i64: 64, 256>}, {pipeline_mode = #tpu.pipeline_mode<synchronous>, transform_indices = @transform_1, window_bounds = array<i64: 256, 128>}, {transform_indices = @transform_2, window_bounds = array<i64: 64, 128>}, {transform_indices = @transform_3, window_bounds = array<i64: 1, 2, 128>}]} {
    %c0_i32 = arith.constant 0 : i32
    %0 = arith.cmpi eq, %arg1, %c0_i32 : i32
    %1 = arith.extui %0 : i1 to i32
    %c0_i32_0 = arith.constant 0 : i32
    %2 = arith.cmpi ne, %1, %c0_i32_0 : i32
    scf.if %2 {
      %cst_14 = arith.constant 0.000000e+00 : f32
      %18 = vector.broadcast %cst_14 : f32 to vector<1x2x128xf32>
      %c0_15 = arith.constant 0 : index
      %c0_16 = arith.constant 0 : index
      %c0_17 = arith.constant 0 : index
      %19 = vector.load %arg5[%c0_15, %c0_16, %c0_17] : memref<1x2x128xf32, #tpu.memory_space<vmem>>, vector<1x2x128xf32>
      tpu.vector_store %arg5[%c0_15, %c0_16, %c0_17], %18 {strides = array<i32>} : memref<1x2x128xf32, #tpu.memory_space<vmem>>, vector<1x2x128xf32>,
    } else {
    }
    %c0 = arith.constant 0 : index
    %c0_1 = arith.constant 0 : index
    %3 = vector.load %arg2[%c0, %c0_1] : memref<64x256xbf16, #tpu.memory_space<vmem>>, vector<64x256xbf16>
    %c0_2 = arith.constant 0 : index
    %c0_3 = arith.constant 0 : index
    %4 = vector.load %arg3[%c0_2, %c0_3] : memref<256x128xbf16, #tpu.memory_space<vmem>>, vector<256x128xbf16>
    %cst = arith.constant dense<0.000000e+00> : vector<64x128xf32>
    %5 = tpu.matmul %3, %4, %cst {dimension_numbers = #tpu.dot_dimension_numbers<[1], [0], [0], [1], [0, 0, 1, 1], [], []>} : vector<64x256xbf16>, vector<256x128xbf16>, vector<64x128xf32> -> vector<64x128xf32>
    %6 = arith.truncf %5 : vector<64x128xf32> to vector<64x128xbf16>
    %c0_4 = arith.constant 0 : index
    %c0_5 = arith.constant 0 : index
    %7 = vector.load %arg4[%c0_4, %c0_5] : memref<64x128xbf16, #tpu.memory_space<vmem>>, vector<64x128xbf16>
    tpu.vector_store %arg4[%c0_4, %c0_5], %6 {strides = array<i32>} : memref<64x128xbf16, #tpu.memory_space<vmem>>, vector<64x128xbf16>,
    %cst_6 = arith.constant dense<0.000000e+00> : vector<128xf32>
    %8 = vector.multi_reduction <add>, %5, %cst_6 [0] : vector<64x128xf32> to vector<128xf32>
    %9 = vector.shape_cast %8 : vector<128xf32> to vector<1x128xf32>
    %10 = arith.mulf %5, %5 : vector<64x128xf32>
    %cst_7 = arith.constant dense<0.000000e+00> : vector<128xf32>
    %11 = vector.multi_reduction <add>, %10, %cst_7 [0] : vector<64x128xf32> to vector<128xf32>
    %12 = vector.shape_cast %11 : vector<128xf32> to vector<1x128xf32>
    %c0_8 = arith.constant 0 : index
    %c0_9 = arith.constant 0 : index
    %c0_10 = arith.constant 0 : index
    %13 = vector.load %arg5[%c0_8, %c0_9, %c0_10] : memref<1x2x128xf32, #tpu.memory_space<vmem>>, vector<1x2x128xf32>
    %14 = tpu.concatenate %9, %12 in 0 : vector<1x128xf32>, vector<1x128xf32> -> vector<2x128xf32>
    %15 = vector.shape_cast %14 : vector<2x128xf32> to vector<1x2x128xf32>
    %16 = arith.addf %13, %15 : vector<1x2x128xf32>
    %c0_11 = arith.constant 0 : index
    %c0_12 = arith.constant 0 : index
    %c0_13 = arith.constant 0 : index
    %17 = vector.load %arg5[%c0_11, %c0_12, %c0_13] : memref<1x2x128xf32, #tpu.memory_space<vmem>>, vector<1x2x128xf32>
    tpu.vector_store %arg5[%c0_11, %c0_12, %c0_13], %16 {strides = array<i32>} : memref<1x2x128xf32, #tpu.memory_space<vmem>>, vector<1x2x128xf32>,
    return
  }
  func.func @transform_0(%arg0: i32, %arg1: i32) -> (i32, i32) {
    %c1_i32 = arith.constant 1 : i32
    %0 = arith.muli %arg0, %c1_i32 : i32
    %1 = arith.addi %0, %arg1 : i32
    %c0_i32 = arith.constant 0 : i32
    %c0_i32_0 = arith.constant 0 : i32
    return %1, %c0_i32 : i32, i32
  }
  func.func @transform_1(%arg0: i32, %arg1: i32) -> (i32, i32) {
    %c0_i32 = arith.constant 0 : i32
    %c0_i32_0 = arith.constant 0 : i32
    %c0_i32_1 = arith.constant 0 : i32
    return %c0_i32, %c0_i32_0 : i32, i32
  }
  func.func @transform_2(%arg0: i32, %arg1: i32) -> (i32, i32) {
    %c1_i32 = arith.constant 1 : i32
    %0 = arith.muli %arg0, %c1_i32 : i32
    %1 = arith.addi %0, %arg1 : i32
    %c0_i32 = arith.constant 0 : i32
    %c0_i32_0 = arith.constant 0 : i32
    return %1, %c0_i32 : i32, i32
  }
  func.func @transform_3(%arg0: i32, %arg1: i32) -> (i32, i32, i32) {
    %c0_i32 = arith.constant 0 : i32
    %c0_i32_0 = arith.constant 0 : i32
    %c0_i32_1 = arith.constant 0 : i32
    return %arg0, %c0_i32, %c0_i32_0 : i32, i32, i32
  }
}

module attributes {stable_mosaic.version = 11 : i64} {
  func.func @_bn_prelu_kernel(%arg0: i32, %arg1: memref<64x128xbf16, #tpu.memory_space<vmem>>, %arg2: memref<1x128xf32, #tpu.memory_space<vmem>>, %arg3: memref<1x128xf32, #tpu.memory_space<vmem>>, %arg4: memref<1xf32, #tpu.memory_space<smem>>, %arg5: memref<64x128xbf16, #tpu.memory_space<vmem>>) attributes {dimension_semantics = [#tpu.dimension_semantics<parallel>], iteration_bounds = array<i64: 2>, scalar_prefetch = 0 : i64, scratch_operands = 0 : i64, tpu.core_type = #tpu.core_type<tc>, window_params = [{transform_indices = @transform_0, window_bounds = array<i64: 64, 128>}, {pipeline_mode = #tpu.pipeline_mode<synchronous>, transform_indices = @transform_1, window_bounds = array<i64: 1, 128>}, {pipeline_mode = #tpu.pipeline_mode<synchronous>, transform_indices = @transform_2, window_bounds = array<i64: 1, 128>}, {transform_indices = @transform_3, window_bounds = array<i64: 1>}, {transform_indices = @transform_4, window_bounds = array<i64: 64, 128>}]} {
    %c0 = arith.constant 0 : index
    %c0_0 = arith.constant 0 : index
    %0 = vector.load %arg1[%c0, %c0_0] : memref<64x128xbf16, #tpu.memory_space<vmem>>, vector<64x128xbf16>
    %1 = arith.extf %0 : vector<64x128xbf16> to vector<64x128xf32>
    %c0_1 = arith.constant 0 : index
    %c0_2 = arith.constant 0 : index
    %2 = vector.load %arg2[%c0_1, %c0_2] : memref<1x128xf32, #tpu.memory_space<vmem>>, vector<1x128xf32>
    %3 = vector.broadcast %2 : vector<1x128xf32> to vector<64x128xf32>
    %4 = arith.mulf %1, %3 : vector<64x128xf32>
    %c0_3 = arith.constant 0 : index
    %c0_4 = arith.constant 0 : index
    %5 = vector.load %arg3[%c0_3, %c0_4] : memref<1x128xf32, #tpu.memory_space<vmem>>, vector<1x128xf32>
    %6 = vector.broadcast %5 : vector<1x128xf32> to vector<64x128xf32>
    %7 = arith.addf %4, %6 : vector<64x128xf32>
    %c0_5 = arith.constant 0 : index
    %8 = memref.load %arg4[%c0_5] : memref<1xf32, #tpu.memory_space<smem>>
    %cst = arith.constant 0.000000e+00 : f32
    %9 = vector.broadcast %cst : f32 to vector<64x128xf32>
    %10 = arith.cmpf oge, %7, %9 : vector<64x128xf32>
    %11 = vector.broadcast %8 : f32 to vector<64x128xf32>
    %12 = arith.mulf %11, %7 : vector<64x128xf32>
    %13 = arith.select %10, %7, %12 : vector<64x128xi1>, vector<64x128xf32>
    %14 = arith.truncf %13 : vector<64x128xf32> to vector<64x128xbf16>
    %c0_6 = arith.constant 0 : index
    %c0_7 = arith.constant 0 : index
    %15 = vector.load %arg5[%c0_6, %c0_7] : memref<64x128xbf16, #tpu.memory_space<vmem>>, vector<64x128xbf16>
    tpu.vector_store %arg5[%c0_6, %c0_7], %14 {strides = array<i32>} : memref<64x128xbf16, #tpu.memory_space<vmem>>, vector<64x128xbf16>,
    return
  }
  func.func @transform_0(%arg0: i32) -> (i32, i32) {
    %c0_i32 = arith.constant 0 : i32
    %c0_i32_0 = arith.constant 0 : i32
    return %arg0, %c0_i32 : i32, i32
  }
  func.func @transform_1(%arg0: i32) -> (i32, i32) {
    %c0_i32 = arith.constant 0 : i32
    %c0_i32_0 = arith.constant 0 : i32
    %c0_i32_1 = arith.constant 0 : i32
    return %c0_i32, %c0_i32_0 : i32, i32
  }
  func.func @transform_2(%arg0: i32) -> (i32, i32) {
    %c0_i32 = arith.constant 0 : i32
    %c0_i32_0 = arith.constant 0 : i32
    %c0_i32_1 = arith.constant 0 : i32
    return %c0_i32, %c0_i32_0 : i32, i32
  }
  func.func @transform_3(%arg0: i32) -> i32 {
    %c0_i32 = arith.constant 0 : i32
    %c0_i32_0 = arith.constant 0 : i32
    return %c0_i32 : i32
  }
  func.func @transform_4(%arg0: i32) -> (i32, i32) {
    %c0_i32 = arith.constant 0 : i32
    %c0_i32_0 = arith.constant 0 : i32
    return %arg0, %c0_i32 : i32, i32
  }
}

module attributes {stable_mosaic.version = 11 : i64} {
  func.func @_conv_stats_kernel(%arg0: i32, %arg1: i32, %arg2: memref<56x512xbf16, #tpu.memory_space<vmem>>, %arg3: memref<512x128xbf16, #tpu.memory_space<vmem>>, %arg4: memref<56x128xbf16, #tpu.memory_space<vmem>>, %arg5: memref<1x2x128xf32, #tpu.memory_space<vmem>>) attributes {dimension_semantics = [#tpu.dimension_semantics<parallel>, #tpu.dimension_semantics<arbitrary>], iteration_bounds = array<i64: 2, 1>, scalar_prefetch = 0 : i64, scratch_operands = 0 : i64, tpu.core_type = #tpu.core_type<tc>, window_params = [{transform_indices = @transform_0, window_bounds = array<i64: 56, 512>}, {pipeline_mode = #tpu.pipeline_mode<synchronous>, transform_indices = @transform_1, window_bounds = array<i64: 512, 128>}, {transform_indices = @transform_2, window_bounds = array<i64: 56, 128>}, {transform_indices = @transform_3, window_bounds = array<i64: 1, 2, 128>}]} {
    %c0_i32 = arith.constant 0 : i32
    %0 = arith.cmpi eq, %arg1, %c0_i32 : i32
    %1 = arith.extui %0 : i1 to i32
    %c0_i32_0 = arith.constant 0 : i32
    %2 = arith.cmpi ne, %1, %c0_i32_0 : i32
    scf.if %2 {
      %cst_14 = arith.constant 0.000000e+00 : f32
      %18 = vector.broadcast %cst_14 : f32 to vector<1x2x128xf32>
      %c0_15 = arith.constant 0 : index
      %c0_16 = arith.constant 0 : index
      %c0_17 = arith.constant 0 : index
      %19 = vector.load %arg5[%c0_15, %c0_16, %c0_17] : memref<1x2x128xf32, #tpu.memory_space<vmem>>, vector<1x2x128xf32>
      tpu.vector_store %arg5[%c0_15, %c0_16, %c0_17], %18 {strides = array<i32>} : memref<1x2x128xf32, #tpu.memory_space<vmem>>, vector<1x2x128xf32>,
    } else {
    }
    %c0 = arith.constant 0 : index
    %c0_1 = arith.constant 0 : index
    %3 = vector.load %arg2[%c0, %c0_1] : memref<56x512xbf16, #tpu.memory_space<vmem>>, vector<56x512xbf16>
    %c0_2 = arith.constant 0 : index
    %c0_3 = arith.constant 0 : index
    %4 = vector.load %arg3[%c0_2, %c0_3] : memref<512x128xbf16, #tpu.memory_space<vmem>>, vector<512x128xbf16>
    %cst = arith.constant dense<0.000000e+00> : vector<56x128xf32>
    %5 = tpu.matmul %3, %4, %cst {dimension_numbers = #tpu.dot_dimension_numbers<[1], [0], [0], [1], [0, 0, 1, 1], [], []>} : vector<56x512xbf16>, vector<512x128xbf16>, vector<56x128xf32> -> vector<56x128xf32>
    %6 = arith.truncf %5 : vector<56x128xf32> to vector<56x128xbf16>
    %c0_4 = arith.constant 0 : index
    %c0_5 = arith.constant 0 : index
    %7 = vector.load %arg4[%c0_4, %c0_5] : memref<56x128xbf16, #tpu.memory_space<vmem>>, vector<56x128xbf16>
    tpu.vector_store %arg4[%c0_4, %c0_5], %6 {strides = array<i32>} : memref<56x128xbf16, #tpu.memory_space<vmem>>, vector<56x128xbf16>,
    %cst_6 = arith.constant dense<0.000000e+00> : vector<128xf32>
    %8 = vector.multi_reduction <add>, %5, %cst_6 [0] : vector<56x128xf32> to vector<128xf32>
    %9 = vector.shape_cast %8 : vector<128xf32> to vector<1x128xf32>
    %10 = arith.mulf %5, %5 : vector<56x128xf32>
    %cst_7 = arith.constant dense<0.000000e+00> : vector<128xf32>
    %11 = vector.multi_reduction <add>, %10, %cst_7 [0] : vector<56x128xf32> to vector<128xf32>
    %12 = vector.shape_cast %11 : vector<128xf32> to vector<1x128xf32>
    %c0_8 = arith.constant 0 : index
    %c0_9 = arith.constant 0 : index
    %c0_10 = arith.constant 0 : index
    %13 = vector.load %arg5[%c0_8, %c0_9, %c0_10] : memref<1x2x128xf32, #tpu.memory_space<vmem>>, vector<1x2x128xf32>
    %14 = tpu.concatenate %9, %12 in 0 : vector<1x128xf32>, vector<1x128xf32> -> vector<2x128xf32>
    %15 = vector.shape_cast %14 : vector<2x128xf32> to vector<1x2x128xf32>
    %16 = arith.addf %13, %15 : vector<1x2x128xf32>
    %c0_11 = arith.constant 0 : index
    %c0_12 = arith.constant 0 : index
    %c0_13 = arith.constant 0 : index
    %17 = vector.load %arg5[%c0_11, %c0_12, %c0_13] : memref<1x2x128xf32, #tpu.memory_space<vmem>>, vector<1x2x128xf32>
    tpu.vector_store %arg5[%c0_11, %c0_12, %c0_13], %16 {strides = array<i32>} : memref<1x2x128xf32, #tpu.memory_space<vmem>>, vector<1x2x128xf32>,
    return
  }
  func.func @transform_0(%arg0: i32, %arg1: i32) -> (i32, i32) {
    %c1_i32 = arith.constant 1 : i32
    %0 = arith.muli %arg0, %c1_i32 : i32
    %1 = arith.addi %0, %arg1 : i32
    %c0_i32 = arith.constant 0 : i32
    %c0_i32_0 = arith.constant 0 : i32
    return %1, %c0_i32 : i32, i32
  }
  func.func @transform_1(%arg0: i32, %arg1: i32) -> (i32, i32) {
    %c0_i32 = arith.constant 0 : i32
    %c0_i32_0 = arith.constant 0 : i32
    %c0_i32_1 = arith.constant 0 : i32
    return %c0_i32, %c0_i32_0 : i32, i32
  }
  func.func @transform_2(%arg0: i32, %arg1: i32) -> (i32, i32) {
    %c1_i32 = arith.constant 1 : i32
    %0 = arith.muli %arg0, %c1_i32 : i32
    %1 = arith.addi %0, %arg1 : i32
    %c0_i32 = arith.constant 0 : i32
    %c0_i32_0 = arith.constant 0 : i32
    return %1, %c0_i32 : i32, i32
  }
  func.func @transform_3(%arg0: i32, %arg1: i32) -> (i32, i32, i32) {
    %c0_i32 = arith.constant 0 : i32
    %c0_i32_0 = arith.constant 0 : i32
    %c0_i32_1 = arith.constant 0 : i32
    return %arg0, %c0_i32, %c0_i32_0 : i32, i32, i32
  }
}

module attributes {stable_mosaic.version = 11 : i64} {
  func.func @_bn_prelu_kernel(%arg0: i32, %arg1: memref<56x128xbf16, #tpu.memory_space<vmem>>, %arg2: memref<1x128xf32, #tpu.memory_space<vmem>>, %arg3: memref<1x128xf32, #tpu.memory_space<vmem>>, %arg4: memref<1xf32, #tpu.memory_space<smem>>, %arg5: memref<56x128xbf16, #tpu.memory_space<vmem>>) attributes {dimension_semantics = [#tpu.dimension_semantics<parallel>], iteration_bounds = array<i64: 2>, scalar_prefetch = 0 : i64, scratch_operands = 0 : i64, tpu.core_type = #tpu.core_type<tc>, window_params = [{transform_indices = @transform_0, window_bounds = array<i64: 56, 128>}, {pipeline_mode = #tpu.pipeline_mode<synchronous>, transform_indices = @transform_1, window_bounds = array<i64: 1, 128>}, {pipeline_mode = #tpu.pipeline_mode<synchronous>, transform_indices = @transform_2, window_bounds = array<i64: 1, 128>}, {transform_indices = @transform_3, window_bounds = array<i64: 1>}, {transform_indices = @transform_4, window_bounds = array<i64: 56, 128>}]} {
    %c0 = arith.constant 0 : index
    %c0_0 = arith.constant 0 : index
    %0 = vector.load %arg1[%c0, %c0_0] : memref<56x128xbf16, #tpu.memory_space<vmem>>, vector<56x128xbf16>
    %1 = arith.extf %0 : vector<56x128xbf16> to vector<56x128xf32>
    %c0_1 = arith.constant 0 : index
    %c0_2 = arith.constant 0 : index
    %2 = vector.load %arg2[%c0_1, %c0_2] : memref<1x128xf32, #tpu.memory_space<vmem>>, vector<1x128xf32>
    %3 = vector.broadcast %2 : vector<1x128xf32> to vector<56x128xf32>
    %4 = arith.mulf %1, %3 : vector<56x128xf32>
    %c0_3 = arith.constant 0 : index
    %c0_4 = arith.constant 0 : index
    %5 = vector.load %arg3[%c0_3, %c0_4] : memref<1x128xf32, #tpu.memory_space<vmem>>, vector<1x128xf32>
    %6 = vector.broadcast %5 : vector<1x128xf32> to vector<56x128xf32>
    %7 = arith.addf %4, %6 : vector<56x128xf32>
    %c0_5 = arith.constant 0 : index
    %8 = memref.load %arg4[%c0_5] : memref<1xf32, #tpu.memory_space<smem>>
    %cst = arith.constant 0.000000e+00 : f32
    %9 = vector.broadcast %cst : f32 to vector<56x128xf32>
    %10 = arith.cmpf oge, %7, %9 : vector<56x128xf32>
    %11 = vector.broadcast %8 : f32 to vector<56x128xf32>
    %12 = arith.mulf %11, %7 : vector<56x128xf32>
    %13 = arith.select %10, %7, %12 : vector<56x128xi1>, vector<56x128xf32>
    %14 = arith.truncf %13 : vector<56x128xf32> to vector<56x128xbf16>
    %c0_6 = arith.constant 0 : index
    %c0_7 = arith.constant 0 : index
    %15 = vector.load %arg5[%c0_6, %c0_7] : memref<56x128xbf16, #tpu.memory_space<vmem>>, vector<56x128xbf16>
    tpu.vector_store %arg5[%c0_6, %c0_7], %14 {strides = array<i32>} : memref<56x128xbf16, #tpu.memory_space<vmem>>, vector<56x128xbf16>,
    return
  }
  func.func @transform_0(%arg0: i32) -> (i32, i32) {
    %c0_i32 = arith.constant 0 : i32
    %c0_i32_0 = arith.constant 0 : i32
    return %arg0, %c0_i32 : i32, i32
  }
  func.func @transform_1(%arg0: i32) -> (i32, i32) {
    %c0_i32 = arith.constant 0 : i32
    %c0_i32_0 = arith.constant 0 : i32
    %c0_i32_1 = arith.constant 0 : i32
    return %c0_i32, %c0_i32_0 : i32, i32
  }
  func.func @transform_2(%arg0: i32) -> (i32, i32) {
    %c0_i32 = arith.constant 0 : i32
    %c0_i32_0 = arith.constant 0 : i32
    %c0_i32_1 = arith.constant 0 : i32
    return %c0_i32, %c0_i32_0 : i32, i32
  }
  func.func @transform_3(%arg0: i32) -> i32 {
    %c0_i32 = arith.constant 0 : i32
    %c0_i32_0 = arith.constant 0 : i32
    return %c0_i32 : i32
  }
  func.func @transform_4(%arg0: i32) -> (i32, i32) {
    %c0_i32 = arith.constant 0 : i32
    %c0_i32_0 = arith.constant 0 : i32
    return %arg0, %c0_i32 : i32, i32
  }
}

module attributes {stable_mosaic.version = 11 : i64} {
  func.func @_conv_bias_kernel(%arg0: i32, %arg1: memref<40x1024xbf16, #tpu.memory_space<vmem>>, %arg2: memref<1024x128xbf16, #tpu.memory_space<vmem>>, %arg3: memref<1x128xf32, #tpu.memory_space<vmem>>, %arg4: memref<40x128xf32, #tpu.memory_space<vmem>>) attributes {dimension_semantics = [#tpu.dimension_semantics<parallel>], iteration_bounds = array<i64: 2>, scalar_prefetch = 0 : i64, scratch_operands = 0 : i64, tpu.core_type = #tpu.core_type<tc>, window_params = [{transform_indices = @transform_0, window_bounds = array<i64: 40, 1024>}, {pipeline_mode = #tpu.pipeline_mode<synchronous>, transform_indices = @transform_1, window_bounds = array<i64: 1024, 128>}, {pipeline_mode = #tpu.pipeline_mode<synchronous>, transform_indices = @transform_2, window_bounds = array<i64: 1, 128>}, {transform_indices = @transform_3, window_bounds = array<i64: 40, 128>}]} {
    %c0 = arith.constant 0 : index
    %c0_0 = arith.constant 0 : index
    %0 = vector.load %arg1[%c0, %c0_0] : memref<40x1024xbf16, #tpu.memory_space<vmem>>, vector<40x1024xbf16>
    %c0_1 = arith.constant 0 : index
    %c0_2 = arith.constant 0 : index
    %1 = vector.load %arg2[%c0_1, %c0_2] : memref<1024x128xbf16, #tpu.memory_space<vmem>>, vector<1024x128xbf16>
    %cst = arith.constant dense<0.000000e+00> : vector<40x128xf32>
    %2 = tpu.matmul %0, %1, %cst {dimension_numbers = #tpu.dot_dimension_numbers<[1], [0], [0], [1], [0, 0, 1, 1], [], []>} : vector<40x1024xbf16>, vector<1024x128xbf16>, vector<40x128xf32> -> vector<40x128xf32>
    %c0_3 = arith.constant 0 : index
    %c0_4 = arith.constant 0 : index
    %3 = vector.load %arg3[%c0_3, %c0_4] : memref<1x128xf32, #tpu.memory_space<vmem>>, vector<1x128xf32>
    %4 = vector.broadcast %3 : vector<1x128xf32> to vector<40x128xf32>
    %5 = arith.addf %2, %4 : vector<40x128xf32>
    %c0_5 = arith.constant 0 : index
    %c0_6 = arith.constant 0 : index
    %6 = vector.load %arg4[%c0_5, %c0_6] : memref<40x128xf32, #tpu.memory_space<vmem>>, vector<40x128xf32>
    tpu.vector_store %arg4[%c0_5, %c0_6], %5 {strides = array<i32>} : memref<40x128xf32, #tpu.memory_space<vmem>>, vector<40x128xf32>,
    return
  }
  func.func @transform_0(%arg0: i32) -> (i32, i32) {
    %c0_i32 = arith.constant 0 : i32
    %c0_i32_0 = arith.constant 0 : i32
    return %arg0, %c0_i32 : i32, i32
  }
  func.func @transform_1(%arg0: i32) -> (i32, i32) {
    %c0_i32 = arith.constant 0 : i32
    %c0_i32_0 = arith.constant 0 : i32
    %c0_i32_1 = arith.constant 0 : i32
    return %c0_i32, %c0_i32_0 : i32, i32
  }
  func.func @transform_2(%arg0: i32) -> (i32, i32) {
    %c0_i32 = arith.constant 0 : i32
    %c0_i32_0 = arith.constant 0 : i32
    %c0_i32_1 = arith.constant 0 : i32
    return %c0_i32, %c0_i32_0 : i32, i32
  }
  func.func @transform_3(%arg0: i32) -> (i32, i32) {
    %c0_i32 = arith.constant 0 : i32
    %c0_i32_0 = arith.constant 0 : i32
    return %arg0, %c0_i32 : i32, i32
  }
}

</mosaic_0001>

<bundles_post_ra>
// kernel: discriminator_forward.8
= control target key start
LH: loop header
LB: loop body
LE: loop exit
PB: predicated region body
PF: predicated region fallthrough
CT: control target
= control target key end

     0   :  { %s2595_s14 = smov 0   ;;  %s2905_s0 = inlined_call_operand.vmem [shape: bf16[2048,128], index: 0, kind: input, shape index: {}]   ;;  %s2906_s1 = inlined_call_operand.vmem [shape: bf16[128,128], index: 1, kind: input, shape index: {}]   ;;  %s2907_s2 = inlined_call_operand.<no memory space> [shape: f32[1], index: 2, kind: input, shape index: {}]   ;;  %s2908_s3 = inlined_call_operand.vmem [shape: bf16[2048,128], index: 3, kind: output, shape index: {}]  }
   0x1   :  { %8 = sst [smem:[#allocation2]] %s2907_s2 }
   0x2 LB: > { %s1778_s15 = sadd.s32 4294967295, %s2570_s14   ;;  %p1782_p0 = scmp.ge.s32.totalorder %s2570_s14, 1  ;;  %s2570_s14 = sphi %s2595_s14, %s14_s14  }
   0x3   : > { %p139_p1 = scmp.lt.s32.totalorder %s2570_s14, 3 }
   0x5   : > { %p140_p2 = pnand %p1782_p0, %p139_p1 }
   0x6   : > { %s1783_s23 = sshll.u32 (!%p140_p2), %s1778_s15, 7  ;;  %s1080_s9 = sld [smem:[#allocation2]] (!%p140_p2) }
   0x7   : > { %143 = sbr.rel (%p140_p2) target bundleno = 432 (0x1b0), region = 32  ;;  %p164_p3 = scmp.lt.s32.totalorder (!%p140_p2), %s1783_s23, 255 }
   0xc   : > { %v2148_v0 = vld [vmem:[%s2906_s1 + $0x38] sm:$0xff]  ;;  %v2147_v1 = vld [vmem:[%s2906_s1 + $0x30] sm:$0xff]  ;;  %v2146_v2 = vld [vmem:[%s2906_s1 + $0x28] sm:$0xff]  ;;  %s2910_s23 = smov (!%p164_p3, %s1783_s23), 255  ;;  %v2673_v46 = vstv %s1080_s9 }
   0xd   : > { %751 = vmatpush.bf16.msra.mxu0 %v2148_v0  ;;  %2532 = vmatpush.bf16.msra.mxu1 %v2148_v0  ;;  %v2145_v3 = vld [vmem:[%s2906_s1 + $0x20] sm:$0xff]  ;;  %v2144_v4 = vld [vmem:[%s2906_s1 + $0x18] sm:$0xff]  ;;  %v2143_v5 = vld [vmem:[%s2906_s1 + $0x10] sm:$0xff]  ;;  %s1784_s30 = sshll.u32 %s2910_s23, 2 }
   0xe   : > { %2533 = vmatpush.bf16.msra.mxu2 %v2148_v0  ;;  %2534 = vmatpush.bf16.msra.mxu3 %v2148_v0  ;;  %v2142_v6 = vld [vmem:[%s2906_s1 + $0x8] sm:$0xff]  ;;  %v2141_v7 = vld [vmem:[%s2906_s1] sm:$0xff]  ;;  %s2635_s8 = scalar_lea.vmem %s2905_s0, %s1784_s30  ;;  %s2684_s12 = scalar_lea.vmem %s2908_s3, %s1784_s30 }
   0xf   : > { %v2077_v8 = vld [vmem:[%s2635_s8] sm:$0xff]  ;;  %v2078_v12 = vld [vmem:[%s2635_s8 + $0x8] sm:$0xff]  ;;  %v2079_v16 = vld [vmem:[%s2635_s8 + $0x10] sm:$0xff] }
  0x10   : > { %v2093_v9 = vld [vmem:[%s2635_s8 + $0x80] sm:$0xff]  ;;  %v2094_v13 = vld [vmem:[%s2635_s8 + $0x88] sm:$0xff]  ;;  %v2095_v17 = vld [vmem:[%s2635_s8 + $0x90] sm:$0xff] }
  0x11   : > { %752 = vmatpush.bf16.msra.mxu0 %v2147_v1  ;;  %2535 = vmatpush.bf16.msra.mxu1 %v2147_v1  ;;  %v2109_v10 = vld [vmem:[%s2635_s8 + $0x100] sm:$0xff]  ;;  %v2110_v14 = vld [vmem:[%s2635_s8 + $0x108] sm:$0xff]  ;;  %v2111_v18 = vld [vmem:[%s2635_s8 + $0x110] sm:$0xff] }
  0x12   : > { %2536 = vmatpush.bf16.msra.mxu2 %v2147_v1  ;;  %2537 = vmatpush.bf16.msra.mxu3 %v2147_v1  ;;  %v2125_v11 = vld [vmem:[%s2635_s8 + $0x180] sm:$0xff]  ;;  %v2126_v15 = vld [vmem:[%s2635_s8 + $0x188] sm:$0xff]  ;;  %v2127_v19 = vld [vmem:[%s2635_s8 + $0x190] sm:$0xff] }
  0x13   : > { %v2080_v20 = vld [vmem:[%s2635_s8 + $0x18] sm:$0xff]  ;;  %v2081_v24 = vld [vmem:[%s2635_s8 + $0x20] sm:$0xff]  ;;  %v2082_v28 = vld [vmem:[%s2635_s8 + $0x28] sm:$0xff] }
  0x14   : > { %v2096_v21 = vld [vmem:[%s2635_s8 + $0x98] sm:$0xff]  ;;  %v2097_v25 = vld [vmem:[%s2635_s8 + $0xa0] sm:$0xff]  ;;  %v2098_v29 = vld [vmem:[%s2635_s8 + $0xa8] sm:$0xff] }
  0x15   : > { %753 = vmatpush.bf16.msra.mxu0 %v2146_v2  ;;  %2538 = vmatpush.bf16.msra.mxu1 %v2146_v2  ;;  %v2112_v22 = vld [vmem:[%s2635_s8 + $0x118] sm:$0xff]  ;;  %v2113_v26 = vld [vmem:[%s2635_s8 + $0x120] sm:$0xff]  ;;  %v2114_v30 = vld [vmem:[%s2635_s8 + $0x128] sm:$0xff] }
  0x16   : > { %2539 = vmatpush.bf16.msra.mxu2 %v2146_v2  ;;  %2540 = vmatpush.bf16.msra.mxu3 %v2146_v2  ;;  %v2128_v23 = vld [vmem:[%s2635_s8 + $0x198] sm:$0xff]  ;;  %v2129_v27 = vld [vmem:[%s2635_s8 + $0x1a0] sm:$0xff]  ;;  %v2130_v31 = vld [vmem:[%s2635_s8 + $0x1a8] sm:$0xff] }
  0x17   : > { %v2083_v32 = vld [vmem:[%s2635_s8 + $0x30] sm:$0xff]  ;;  %v2084_v36 = vld [vmem:[%s2635_s8 + $0x38] sm:$0xff]  ;;  %v2085_v40 = vld [vmem:[%s2635_s8 + $0x40] sm:$0xff] }
  0x18   : > { %v2099_v33 = vld [vmem:[%s2635_s8 + $0xb0] sm:$0xff]  ;;  %v2100_v37 = vld [vmem:[%s2635_s8 + $0xb8] sm:$0xff]  ;;  %v2101_v41 = vld [vmem:[%s2635_s8 + $0xc0] sm:$0xff] }
  0x19   : > { %754 = vmatpush.bf16.msra.mxu0 %v2145_v3  ;;  %2541 = vmatpush.bf16.msra.mxu1 %v2145_v3  ;;  %v2115_v34 = vld [vmem:[%s2635_s8 + $0x130] sm:$0xff]  ;;  %v2116_v38 = vld [vmem:[%s2635_s8 + $0x138] sm:$0xff]  ;;  %v2117_v44 = vld [vmem:[%s2635_s8 + $0x140] sm:$0xff] }
  0x1a   : > { %2542 = vmatpush.bf16.msra.mxu2 %v2145_v3  ;;  %2543 = vmatpush.bf16.msra.mxu3 %v2145_v3  ;;  %v2131_v35 = vld [vmem:[%s2635_s8 + $0x1b0] sm:$0xff]  ;;  %v2132_v39 = vld [vmem:[%s2635_s8 + $0x1b8] sm:$0xff]  ;;  %v2133_v45 = vld [vmem:[%s2635_s8 + $0x1c0] sm:$0xff] }
  0x1b   : > { %v2086_v1 = vld [vmem:[%s2635_s8 + $0x48] sm:$0xff] }
  0x1d   : > { %755 = vmatpush.bf16.msra.mxu0 %v2144_v4  ;;  %2544 = vmatpush.bf16.msra.mxu1 %v2144_v4 }
  0x1e   : > { %2545 = vmatpush.bf16.msra.mxu2 %v2144_v4  ;;  %2546 = vmatpush.bf16.msra.mxu3 %v2144_v4 }
  0x21   : > { %756 = vmatpush.bf16.msra.mxu0 %v2143_v5  ;;  %2547 = vmatpush.bf16.msra.mxu1 %v2143_v5 }
  0x22   : > { %2548 = vmatpush.bf16.msra.mxu2 %v2143_v5  ;;  %2549 = vmatpush.bf16.msra.mxu3 %v2143_v5 }
  0x25   : > { %757 = vmatpush.bf16.msra.mxu0 %v2142_v6  ;;  %2550 = vmatpush.bf16.msra.mxu1 %v2142_v6 }
  0x26   : > { %2551 = vmatpush.bf16.msra.mxu2 %v2142_v6  ;;  %2552 = vmatpush.bf16.msra.mxu3 %v2142_v6  ;;  %v2102_v6 = vld [vmem:[%s2635_s8 + $0xc8] sm:$0xff] }
  0x29   : > { %758 = vmatpush.bf16.msra.mxu0 %v2141_v7  ;;  %2553 = vmatpush.bf16.msra.mxu1 %v2141_v7 }
  0x2a   : > { %2554 = vmatpush.bf16.msra.mxu2 %v2141_v7  ;;  %2555 = vmatpush.bf16.msra.mxu3 %v2141_v7  ;;  %v2118_v7 = vld [vmem:[%s2635_s8 + $0x148] sm:$0xff] }
  0x2c   : > { %759 = vmatmul.bf16.vlgmr.msra.gmra.mxu0 %v2077_v8  ;;  %839 = vmatmul.bf16.vlgmr.msra.gmra.mxu1 %v2093_v9  ;;  %v2134_v8 = vld [vmem:[%s2635_s8 + $0x1c8] sm:$0xff] }
  0x2d   : > { %919 = vmatmul.bf16.vlgmr.msra.gmra.mxu2 %v2109_v10  ;;  %999 = vmatmul.bf16.vlgmr.msra.gmra.mxu3 %v2125_v11 }
  0x3c   : > { %764 = vmatmul.bf16.gmra.mxu0 %v2078_v12  ;;  %844 = vmatmul.bf16.gmra.mxu1 %v2094_v13 }
  0x3d   : > { %924 = vmatmul.bf16.gmra.mxu2 %v2110_v14  ;;  %1004 = vmatmul.bf16.gmra.mxu3 %v2126_v15 }
  0x4c   : > { %769 = vmatmul.bf16.gmra.mxu0 %v2079_v16  ;;  %849 = vmatmul.bf16.gmra.mxu1 %v2095_v17 }
  0x4d   : > { %929 = vmatmul.bf16.gmra.mxu2 %v2111_v18  ;;  %1009 = vmatmul.bf16.gmra.mxu3 %v2127_v19 }
  0x5c   : > { %774 = vmatmul.bf16.gmra.mxu0 %v2080_v20  ;;  %854 = vmatmul.bf16.gmra.mxu1 %v2096_v21 }
  0x5d   : > { %934 = vmatmul.bf16.gmra.mxu2 %v2112_v22  ;;  %1014 = vmatmul.bf16.gmra.mxu3 %v2128_v23 }
  0x6c   : > { %779 = vmatmul.bf16.gmra.mxu0 %v2081_v24  ;;  %859 = vmatmul.bf16.gmra.mxu1 %v2097_v25 }
  0x6d   : > { %939 = vmatmul.bf16.gmra.mxu2 %v2113_v26  ;;  %1019 = vmatmul.bf16.gmra.mxu3 %v2129_v27 }
  0x7c   : > { %784 = vmatmul.bf16.gmra.mxu0 %v2082_v28  ;;  %864 = vmatmul.bf16.gmra.mxu1 %v2098_v29 }
  0x7d   : > { %944 = vmatmul.bf16.gmra.mxu2 %v2114_v30  ;;  %1024 = vmatmul.bf16.gmra.mxu3 %v2130_v31 }
  0x8c   : > { %789 = vmatmul.bf16.gmra.mxu0 %v2083_v32  ;;  %869 = vmatmul.bf16.gmra.mxu1 %v2099_v33  ;;  %v2087_v33 = vld [vmem:[%s2635_s8 + $0x50] sm:$0xff] }
  0x8d   : > { %949 = vmatmul.bf16.gmra.mxu2 %v2115_v34  ;;  %1029 = vmatmul.bf16.gmra.mxu3 %v2131_v35 }
  0x9c   : > { %794 = vmatmul.bf16.gmra.mxu0 %v2084_v36  ;;  %874 = vmatmul.bf16.gmra.mxu1 %v2100_v37 }
  0x9d   : > { %954 = vmatmul.bf16.gmra.mxu2 %v2116_v38  ;;  %1034 = vmatmul.bf16.gmra.mxu3 %v2132_v39  ;;  %v2103_v38 = vld [vmem:[%s2635_s8 + $0xd0] sm:$0xff] }
  0x9e   : > { %v2119_v39 = vld [vmem:[%s2635_s8 + $0x150] sm:$0xff] }
  0xa9   : > { %v760_v42 = vpop.f32.mrf.mxu0  ;;  %v840_v43 = vpop.f32.mrf.mxu1 }
  0xaa   : > { %v1210_v47 = vmul.f32 %v2673_v46, %v760_v42  ;;  %v1242_v48 = vmul.f32 %v2673_v46, %v840_v43  ;;  %vm1081_vm0 = vcmp.ge.f32.partialorder %v760_v42, 0.0  ;;  %vm1113_vm1 = vcmp.ge.f32.partialorder %v840_v43, 0.0 }
  0xac   : > { %799 = vmatmul.bf16.gmra.mxu0 %v2085_v40  ;;  %879 = vmatmul.bf16.gmra.mxu1 %v2101_v41  ;;  %v1338_v55 = vsel %vm1081_vm0, %v760_v42, %v1210_v47  ;;  %v1370_v56 = vsel %vm1113_vm1, %v840_v43, %v1242_v48  ;;  %v2135_v40 = vld [vmem:[%s2635_s8 + $0x1d0] sm:$0xff] }
  0xad   : > { %959 = vmatmul.bf16.gmra.mxu2 %v2117_v44  ;;  %1039 = vmatmul.bf16.gmra.mxu3 %v2133_v45 }
  0xb0   : > { %v920_v49 = vpop.f32.mrf.mxu2  ;;  %v1000_v50 = vpop.f32.mrf.mxu3 }
  0xb1   : > { %v762_v51 = vpop.f32.mrf.mxu0  ;;  %v842_v52 = vpop.f32.mrf.mxu1  ;;  %v1274_v61 = vmul.f32 %v2673_v46, %v920_v49  ;;  %v1306_v62 = vmul.f32 %v2673_v46, %v1000_v50  ;;  %vm1145_vm4 = vcmp.ge.f32.partialorder %v920_v49, 0.0  ;;  %vm1177_vm5 = vcmp.ge.f32.partialorder %v1000_v50, 0.0 }
  0xb2   : > { %vm1082_vm2 = vcmp.ge.f32.partialorder %v762_v51, 0.0  ;;  %v1211_v53 = vmul.f32 %v2673_v46, %v762_v51  ;;  %vm1114_vm3 = vcmp.ge.f32.partialorder %v842_v52, 0.0  ;;  %v1243_v54 = vmul.f32 %v2673_v46, %v842_v52 }
  0xb3   : > { %v1402_v9 = vsel %vm1145_vm4, %v920_v49, %v1274_v61  ;;  %v1434_v10 = vsel %vm1177_vm5, %v1000_v50, %v1306_v62 }
  0xb4   : > { %v1339_v57 = vsel %vm1082_vm2, %v762_v51, %v1211_v53  ;;  %v1371_v58 = vsel %vm1114_vm3, %v842_v52, %v1243_v54 }
  0xb5   : > { %v2152_v59 = vpack.c.bf16 %v1339_v57, %v1338_v55  ;;  %v2232_v60 = vpack.c.bf16 %v1371_v58, %v1370_v56 }
  0xb7   : > { %2153 = vst [vmem:[%s2684_s12] sm:$0xff] %v2152_v59  }
  0xb8   : > { %2484 = vst [vmem:[%s2684_s12 + $0x80] sm:$0xff] %v2232_v60   ;;  %v922_v63 = vpop.f32.mrf.mxu2  ;;  %v1002_v0 = vpop.f32.mrf.mxu3 }
  0xb9   : > { %vm1146_vm6 = vcmp.ge.f32.partialorder %v922_v63, 0.0  ;;  %v1275_v2 = vmul.f32 %v2673_v46, %v922_v63  ;;  %vm1178_vm7 = vcmp.ge.f32.partialorder %v1002_v0, 0.0  ;;  %v1307_v3 = vmul.f32 %v2673_v46, %v1002_v0  ;;  %v765_v4 = vpop.f32.mrf.mxu0  ;;  %v845_v5 = vpop.f32.mrf.mxu1 }
  0xba   : > { %v1212_v15 = vmul.f32 %v2673_v46, %v765_v4  ;;  %v1244_v16 = vmul.f32 %v2673_v46, %v845_v5  ;;  %vm1083_vm8 = vcmp.ge.f32.partialorder %v765_v4, 0.0  ;;  %vm1115_vm9 = vcmp.ge.f32.partialorder %v845_v5, 0.0 }
  0xbb   : > { %v1403_v11 = vsel %vm1146_vm6, %v922_v63, %v1275_v2  ;;  %v1435_v12 = vsel %vm1178_vm7, %v1002_v0, %v1307_v3  ;;  %v2088_v2 = vld [vmem:[%s2635_s8 + $0x58] sm:$0xff] }
  0xbc   : > { %v2312_v13 = vpack.c.bf16 %v1403_v11, %v1402_v9  ;;  %v2392_v14 = vpack.c.bf16 %v1435_v12, %v1434_v10  ;;  %804 = vmatmul.bf16.gmra.mxu0 %v2086_v1  ;;  %884 = vmatmul.bf16.gmra.mxu1 %v2102_v6  ;;  %v1340_v23 = vsel %vm1083_vm8, %v765_v4, %v1212_v15  ;;  %v2136_v9 = vld [vmem:[%s2635_s8 + $0x1d8] sm:$0xff] }
  0xbd   : > { %964 = vmatmul.bf16.gmra.mxu2 %v2118_v7  ;;  %1044 = vmatmul.bf16.gmra.mxu3 %v2134_v8  ;;  %v1372_v24 = vsel %vm1115_vm9, %v845_v5, %v1244_v16  ;;  %v2104_v7 = vld [vmem:[%s2635_s8 + $0xd8] sm:$0xff] }
  0xbe   : > { %2500 = vst [vmem:[%s2684_s12 + $0x100] sm:$0xff] %v2312_v13   ;;  %v2120_v8 = vld [vmem:[%s2635_s8 + $0x158] sm:$0xff] }
  0xbf   : > { %2516 = vst [vmem:[%s2684_s12 + $0x180] sm:$0xff] %v2392_v14  }
  0xc0   : > { %v925_v17 = vpop.f32.mrf.mxu2  ;;  %v1005_v18 = vpop.f32.mrf.mxu3 }
  0xc1   : > { %v767_v19 = vpop.f32.mrf.mxu0  ;;  %v847_v20 = vpop.f32.mrf.mxu1  ;;  %v1276_v29 = vmul.f32 %v2673_v46, %v925_v17  ;;  %v1308_v30 = vmul.f32 %v2673_v46, %v1005_v18  ;;  %vm1147_vm12 = vcmp.ge.f32.partialorder %v925_v17, 0.0  ;;  %vm1179_vm13 = vcmp.ge.f32.partialorder %v1005_v18, 0.0 }
  0xc2   : > { %vm1084_vm10 = vcmp.ge.f32.partialorder %v767_v19, 0.0  ;;  %v1213_v21 = vmul.f32 %v2673_v46, %v767_v19  ;;  %vm1116_vm11 = vcmp.ge.f32.partialorder %v847_v20, 0.0  ;;  %v1245_v22 = vmul.f32 %v2673_v46, %v847_v20 }
  0xc3   : > { %v1404_v41 = vsel %vm1147_vm12, %v925_v17, %v1276_v29  ;;  %v1436_v42 = vsel %vm1179_vm13, %v1005_v18, %v1308_v30 }
  0xc4   : > { %v1341_v25 = vsel %vm1084_vm10, %v767_v19, %v1213_v21  ;;  %v1373_v26 = vsel %vm1116_vm11, %v847_v20, %v1245_v22 }
  0xc5   : > { %v2157_v27 = vpack.c.bf16 %v1341_v25, %v1340_v23  ;;  %v2237_v28 = vpack.c.bf16 %v1373_v26, %v1372_v24 }
  0xc7   : > { %2469 = vst [vmem:[%s2684_s12 + $0x8] sm:$0xff] %v2157_v27  }
  0xc8   : > { %2485 = vst [vmem:[%s2684_s12 + $0x88] sm:$0xff] %v2237_v28   ;;  %v927_v31 = vpop.f32.mrf.mxu2  ;;  %v1007_v32 = vpop.f32.mrf.mxu3 }
  0xc9   : > { %vm1148_vm14 = vcmp.ge.f32.partialorder %v927_v31, 0.0  ;;  %v1277_v34 = vmul.f32 %v2673_v46, %v927_v31  ;;  %vm1180_vm15 = vcmp.ge.f32.partialorder %v1007_v32, 0.0  ;;  %v1309_v35 = vmul.f32 %v2673_v46, %v1007_v32  ;;  %v770_v36 = vpop.f32.mrf.mxu0  ;;  %v850_v37 = vpop.f32.mrf.mxu1 }
  0xca   : > { %v1214_v48 = vmul.f32 %v2673_v46, %v770_v36  ;;  %v1246_v49 = vmul.f32 %v2673_v46, %v850_v37  ;;  %vm1085_vm0 = vcmp.ge.f32.partialorder %v770_v36, 0.0  ;;  %vm1117_vm1 = vcmp.ge.f32.partialorder %v850_v37, 0.0 }
  0xcb   : > { %v1405_v43 = vsel %vm1148_vm14, %v927_v31, %v1277_v34  ;;  %v1437_v44 = vsel %vm1180_vm15, %v1007_v32, %v1309_v35  ;;  %v2089_v34 = vld [vmem:[%s2635_s8 + $0x60] sm:$0xff] }
  0xcc   : > { %v2317_v45 = vpack.c.bf16 %v1405_v43, %v1404_v41  ;;  %v2397_v47 = vpack.c.bf16 %v1437_v44, %v1436_v42  ;;  %809 = vmatmul.bf16.gmra.mxu0 %v2087_v33  ;;  %889 = vmatmul.bf16.gmra.mxu1 %v2103_v38  ;;  %v1342_v56 = vsel %vm1085_vm0, %v770_v36, %v1214_v48  ;;  %v2137_v41 = vld [vmem:[%s2635_s8 + $0x1e0] sm:$0xff] }
  0xcd   : > { %969 = vmatmul.bf16.gmra.mxu2 %v2119_v39  ;;  %1049 = vmatmul.bf16.gmra.mxu3 %v2135_v40  ;;  %v1374_v57 = vsel %vm1117_vm1, %v850_v37, %v1246_v49  ;;  %v2105_v39 = vld [vmem:[%s2635_s8 + $0xe0] sm:$0xff] }
  0xce   : > { %2501 = vst [vmem:[%s2684_s12 + $0x108] sm:$0xff] %v2317_v45   ;;  %v2121_v40 = vld [vmem:[%s2635_s8 + $0x160] sm:$0xff] }
  0xcf   : > { %2517 = vst [vmem:[%s2684_s12 + $0x188] sm:$0xff] %v2397_v47  }
  0xd0   : > { %v930_v50 = vpop.f32.mrf.mxu2  ;;  %v1010_v51 = vpop.f32.mrf.mxu3 }
  0xd1   : > { %v772_v52 = vpop.f32.mrf.mxu0  ;;  %v852_v53 = vpop.f32.mrf.mxu1  ;;  %v1278_v62 = vmul.f32 %v2673_v46, %v930_v50  ;;  %v1310_v63 = vmul.f32 %v2673_v46, %v1010_v51  ;;  %vm1149_vm4 = vcmp.ge.f32.partialorder %v930_v50, 0.0  ;;  %vm1181_vm5 = vcmp.ge.f32.partialorder %v1010_v51, 0.0 }
  0xd2   : > { %vm1086_vm2 = vcmp.ge.f32.partialorder %v772_v52, 0.0  ;;  %v1215_v54 = vmul.f32 %v2673_v46, %v772_v52  ;;  %vm1118_vm3 = vcmp.ge.f32.partialorder %v852_v53, 0.0  ;;  %v1247_v55 = vmul.f32 %v2673_v46, %v852_v53 }
  0xd3   : > { %v1406_v10 = vsel %vm1149_vm4, %v930_v50, %v1278_v62  ;;  %v1438_v11 = vsel %vm1181_vm5, %v1010_v51, %v1310_v63 }
  0xd4   : > { %v1343_v58 = vsel %vm1086_vm2, %v772_v52, %v1215_v54  ;;  %v1375_v59 = vsel %vm1118_vm3, %v852_v53, %v1247_v55 }
  0xd5   : > { %v2162_v60 = vpack.c.bf16 %v1343_v58, %v1342_v56  ;;  %v2242_v61 = vpack.c.bf16 %v1375_v59, %v1374_v57 }
  0xd7   : > { %2470 = vst [vmem:[%s2684_s12 + $0x10] sm:$0xff] %v2162_v60  }
  0xd8   : > { %2486 = vst [vmem:[%s2684_s12 + $0x90] sm:$0xff] %v2242_v61   ;;  %v932_v0 = vpop.f32.mrf.mxu2  ;;  %v1012_v1 = vpop.f32.mrf.mxu3 }
  0xd9   : > { %vm1150_vm6 = vcmp.ge.f32.partialorder %v932_v0, 0.0  ;;  %v1279_v3 = vmul.f32 %v2673_v46, %v932_v0  ;;  %vm1182_vm7 = vcmp.ge.f32.partialorder %v1012_v1, 0.0  ;;  %v1311_v4 = vmul.f32 %v2673_v46, %v1012_v1  ;;  %v775_v5 = vpop.f32.mrf.mxu0  ;;  %v855_v6 = vpop.f32.mrf.mxu1 }
  0xda   : > { %v1216_v16 = vmul.f32 %v2673_v46, %v775_v5  ;;  %v1248_v17 = vmul.f32 %v2673_v46, %v855_v6  ;;  %vm1087_vm8 = vcmp.ge.f32.partialorder %v775_v5, 0.0  ;;  %vm1119_vm9 = vcmp.ge.f32.partialorder %v855_v6, 0.0 }
  0xdb   : > { %v1407_v12 = vsel %vm1150_vm6, %v932_v0, %v1279_v3  ;;  %v1439_v13 = vsel %vm1182_vm7, %v1012_v1, %v1311_v4  ;;  %v2090_v3 = vld [vmem:[%s2635_s8 + $0x68] sm:$0xff] }
  0xdc   : > { %v2322_v14 = vpack.c.bf16 %v1407_v12, %v1406_v10  ;;  %v2402_v15 = vpack.c.bf16 %v1439_v13, %v1438_v11  ;;  %814 = vmatmul.bf16.gmra.mxu0 %v2088_v2  ;;  %894 = vmatmul.bf16.gmra.mxu1 %v2104_v7  ;;  %v1344_v24 = vsel %vm1087_vm8, %v775_v5, %v1216_v16  ;;  %v2138_v10 = vld [vmem:[%s2635_s8 + $0x1e8] sm:$0xff] }
  0xdd   : > { %974 = vmatmul.bf16.gmra.mxu2 %v2120_v8  ;;  %1054 = vmatmul.bf16.gmra.mxu3 %v2136_v9  ;;  %v1376_v25 = vsel %vm1119_vm9, %v855_v6, %v1248_v17  ;;  %v2106_v8 = vld [vmem:[%s2635_s8 + $0xe8] sm:$0xff] }
  0xde   : > { %2502 = vst [vmem:[%s2684_s12 + $0x110] sm:$0xff] %v2322_v14   ;;  %v2122_v9 = vld [vmem:[%s2635_s8 + $0x168] sm:$0xff] }
  0xdf   : > { %2518 = vst [vmem:[%s2684_s12 + $0x190] sm:$0xff] %v2402_v15  }
  0xe0   : > { %v935_v18 = vpop.f32.mrf.mxu2  ;;  %v1015_v19 = vpop.f32.mrf.mxu3 }
  0xe1   : > { %v777_v20 = vpop.f32.mrf.mxu0  ;;  %v857_v21 = vpop.f32.mrf.mxu1  ;;  %v1280_v30 = vmul.f32 %v2673_v46, %v935_v18  ;;  %v1312_v31 = vmul.f32 %v2673_v46, %v1015_v19  ;;  %vm1151_vm12 = vcmp.ge.f32.partialorder %v935_v18, 0.0  ;;  %vm1183_vm13 = vcmp.ge.f32.partialorder %v1015_v19, 0.0 }
  0xe2   : > { %vm1088_vm10 = vcmp.ge.f32.partialorder %v777_v20, 0.0  ;;  %v1217_v22 = vmul.f32 %v2673_v46, %v777_v20  ;;  %vm1120_vm11 = vcmp.ge.f32.partialorder %v857_v21, 0.0  ;;  %v1249_v23 = vmul.f32 %v2673_v46, %v857_v21 }
  0xe3   : > { %v1408_v42 = vsel %vm1151_vm12, %v935_v18, %v1280_v30  ;;  %v1440_v43 = vsel %vm1183_vm13, %v1015_v19, %v1312_v31 }
  0xe4   : > { %v1345_v26 = vsel %vm1088_vm10, %v777_v20, %v1217_v22  ;;  %v1377_v27 = vsel %vm1120_vm11, %v857_v21, %v1249_v23 }
  0xe5   : > { %v2167_v28 = vpack.c.bf16 %v1345_v26, %v1344_v24  ;;  %v2247_v29 = vpack.c.bf16 %v1377_v27, %v1376_v25 }
  0xe7   : > { %2471 = vst [vmem:[%s2684_s12 + $0x18] sm:$0xff] %v2167_v28  }
  0xe8   : > { %2487 = vst [vmem:[%s2684_s12 + $0x98] sm:$0xff] %v2247_v29   ;;  %v937_v32 = vpop.f32.mrf.mxu2  ;;  %v1017_v33 = vpop.f32.mrf.mxu3 }
  0xe9   : > { %vm1152_vm14 = vcmp.ge.f32.partialorder %v937_v32, 0.0  ;;  %v1281_v35 = vmul.f32 %v2673_v46, %v937_v32  ;;  %vm1184_vm15 = vcmp.ge.f32.partialorder %v1017_v33, 0.0  ;;  %v1313_v36 = vmul.f32 %v2673_v46, %v1017_v33  ;;  %v780_v37 = vpop.f32.mrf.mxu0  ;;  %v860_v38 = vpop.f32.mrf.mxu1 }
  0xea   : > { %v1218_v49 = vmul.f32 %v2673_v46, %v780_v37  ;;  %v1250_v50 = vmul.f32 %v2673_v46, %v860_v38  ;;  %vm1089_vm0 = vcmp.ge.f32.partialorder %v780_v37, 0.0  ;;  %vm1121_vm1 = vcmp.ge.f32.partialorder %v860_v38, 0.0 }
  0xeb   : > { %v1409_v44 = vsel %vm1152_vm14, %v937_v32, %v1281_v35  ;;  %v1441_v45 = vsel %vm1184_vm15, %v1017_v33, %v1313_v36  ;;  %v2091_v35 = vld [vmem:[%s2635_s8 + $0x70] sm:$0xff] }
  0xec   : > { %v2327_v47 = vpack.c.bf16 %v1409_v44, %v1408_v42  ;;  %v2407_v48 = vpack.c.bf16 %v1441_v45, %v1440_v43  ;;  %819 = vmatmul.bf16.gmra.mxu0 %v2089_v34  ;;  %899 = vmatmul.bf16.gmra.mxu1 %v2105_v39  ;;  %v1346_v57 = vsel %vm1089_vm0, %v780_v37, %v1218_v49  ;;  %v2139_v42 = vld [vmem:[%s2635_s8 + $0x1f0] sm:$0xff] }
  0xed   : > { %979 = vmatmul.bf16.gmra.mxu2 %v2121_v40  ;;  %1059 = vmatmul.bf16.gmra.mxu3 %v2137_v41  ;;  %v1378_v58 = vsel %vm1121_vm1, %v860_v38, %v1250_v50  ;;  %v2107_v40 = vld [vmem:[%s2635_s8 + $0xf0] sm:$0xff] }
  0xee   : > { %2503 = vst [vmem:[%s2684_s12 + $0x118] sm:$0xff] %v2327_v47   ;;  %v2123_v41 = vld [vmem:[%s2635_s8 + $0x170] sm:$0xff] }
  0xef   : > { %2519 = vst [vmem:[%s2684_s12 + $0x198] sm:$0xff] %v2407_v48  }
  0xf0   : > { %v940_v51 = vpop.f32.mrf.mxu2  ;;  %v1020_v52 = vpop.f32.mrf.mxu3 }
  0xf1   : > { %v782_v53 = vpop.f32.mrf.mxu0  ;;  %v862_v54 = vpop.f32.mrf.mxu1  ;;  %v1282_v63 = vmul.f32 %v2673_v46, %v940_v51  ;;  %v1314_v0 = vmul.f32 %v2673_v46, %v1020_v52  ;;  %vm1153_vm4 = vcmp.ge.f32.partialorder %v940_v51, 0.0  ;;  %vm1185_vm5 = vcmp.ge.f32.partialorder %v1020_v52, 0.0 }
  0xf2   : > { %vm1090_vm2 = vcmp.ge.f32.partialorder %v782_v53, 0.0  ;;  %v1219_v55 = vmul.f32 %v2673_v46, %v782_v53  ;;  %vm1122_vm3 = vcmp.ge.f32.partialorder %v862_v54, 0.0  ;;  %v1251_v56 = vmul.f32 %v2673_v46, %v862_v54 }
  0xf3   : > { %v1410_v11 = vsel %vm1153_vm4, %v940_v51, %v1282_v63  ;;  %v1442_v12 = vsel %vm1185_vm5, %v1020_v52, %v1314_v0 }
  0xf4   : > { %v1347_v59 = vsel %vm1090_vm2, %v782_v53, %v1219_v55  ;;  %v1379_v60 = vsel %vm1122_vm3, %v862_v54, %v1251_v56 }
  0xf5   : > { %v2172_v61 = vpack.c.bf16 %v1347_v59, %v1346_v57  ;;  %v2252_v62 = vpack.c.bf16 %v1379_v60, %v1378_v58 }
  0xf7   : > { %2472 = vst [vmem:[%s2684_s12 + $0x20] sm:$0xff] %v2172_v61  }
  0xf8   : > { %2488 = vst [vmem:[%s2684_s12 + $0xa0] sm:$0xff] %v2252_v62   ;;  %v942_v1 = vpop.f32.mrf.mxu2  ;;  %v1022_v2 = vpop.f32.mrf.mxu3 }
  0xf9   : > { %vm1154_vm6 = vcmp.ge.f32.partialorder %v942_v1, 0.0  ;;  %v1283_v4 = vmul.f32 %v2673_v46, %v942_v1  ;;  %vm1186_vm7 = vcmp.ge.f32.partialorder %v1022_v2, 0.0  ;;  %v1315_v5 = vmul.f32 %v2673_v46, %v1022_v2  ;;  %v785_v6 = vpop.f32.mrf.mxu0  ;;  %v865_v7 = vpop.f32.mrf.mxu1 }
  0xfa   : > { %v1220_v17 = vmul.f32 %v2673_v46, %v785_v6  ;;  %v1252_v18 = vmul.f32 %v2673_v46, %v865_v7  ;;  %vm1091_vm8 = vcmp.ge.f32.partialorder %v785_v6, 0.0  ;;  %vm1123_vm9 = vcmp.ge.f32.partialorder %v865_v7, 0.0 }
  0xfb   : > { %v1411_v13 = vsel %vm1154_vm6, %v942_v1, %v1283_v4  ;;  %v1443_v14 = vsel %vm1186_vm7, %v1022_v2, %v1315_v5  ;;  %v2092_v4 = vld [vmem:[%s2635_s8 + $0x78] sm:$0xff] }
  0xfc   : > { %v2332_v15 = vpack.c.bf16 %v1411_v13, %v1410_v11  ;;  %v2412_v16 = vpack.c.bf16 %v1443_v14, %v1442_v12  ;;  %824 = vmatmul.bf16.gmra.mxu0 %v2090_v3  ;;  %904 = vmatmul.bf16.gmra.mxu1 %v2106_v8  ;;  %v1348_v25 = vsel %vm1091_vm8, %v785_v6, %v1220_v17  ;;  %v2140_v11 = vld [vmem:[%s2635_s8 + $0x1f8] sm:$0xff] }
  0xfd   : > { %984 = vmatmul.bf16.gmra.mxu2 %v2122_v9  ;;  %1064 = vmatmul.bf16.gmra.mxu3 %v2138_v10  ;;  %v1380_v26 = vsel %vm1123_vm9, %v865_v7, %v1252_v18  ;;  %v2108_v9 = vld [vmem:[%s2635_s8 + $0xf8] sm:$0xff] }
  0xfe   : > { %2504 = vst [vmem:[%s2684_s12 + $0x120] sm:$0xff] %v2332_v15   ;;  %v2124_v10 = vld [vmem:[%s2635_s8 + $0x178] sm:$0xff] }
  0xff   : > { %2520 = vst [vmem:[%s2684_s12 + $0x1a0] sm:$0xff] %v2412_v16  }
 0x100   : > { %v945_v19 = vpop.f32.mrf.mxu2  ;;  %v1025_v20 = vpop.f32.mrf.mxu3 }
 0x101   : > { %v787_v21 = vpop.f32.mrf.mxu0  ;;  %v867_v22 = vpop.f32.mrf.mxu1  ;;  %v1284_v31 = vmul.f32 %v2673_v46, %v945_v19  ;;  %v1316_v32 = vmul.f32 %v2673_v46, %v1025_v20  ;;  %vm1155_vm12 = vcmp.ge.f32.partialorder %v945_v19, 0.0  ;;  %vm1187_vm13 = vcmp.ge.f32.partialorder %v1025_v20, 0.0 }
 0x102   : > { %vm1092_vm10 = vcmp.ge.f32.partialorder %v787_v21, 0.0  ;;  %v1221_v23 = vmul.f32 %v2673_v46, %v787_v21  ;;  %vm1124_vm11 = vcmp.ge.f32.partialorder %v867_v22, 0.0  ;;  %v1253_v24 = vmul.f32 %v2673_v46, %v867_v22 }
 0x103   : > { %v1412_v43 = vsel %vm1155_vm12, %v945_v19, %v1284_v31  ;;  %v1444_v44 = vsel %vm1187_vm13, %v1025_v20, %v1316_v32 }
 0x104   : > { %v1349_v27 = vsel %vm1092_vm10, %v787_v21, %v1221_v23  ;;  %v1381_v28 = vsel %vm1124_vm11, %v867_v22, %v1253_v24 }
 0x105   : > { %v2177_v29 = vpack.c.bf16 %v1349_v27, %v1348_v25  ;;  %v2257_v30 = vpack.c.bf16 %v1381_v28, %v1380_v26 }
 0x107   : > { %2473 = vst [vmem:[%s2684_s12 + $0x28] sm:$0xff] %v2177_v29  }
 0x108   : > { %2489 = vst [vmem:[%s2684_s12 + $0xa8] sm:$0xff] %v2257_v30   ;;  %v947_v33 = vpop.f32.mrf.mxu2  ;;  %v1027_v34 = vpop.f32.mrf.mxu3 }
 0x109   : > { %vm1156_vm14 = vcmp.ge.f32.partialorder %v947_v33, 0.0  ;;  %v1285_v36 = vmul.f32 %v2673_v46, %v947_v33  ;;  %vm1188_vm15 = vcmp.ge.f32.partialorder %v1027_v34, 0.0  ;;  %v1317_v37 = vmul.f32 %v2673_v46, %v1027_v34  ;;  %v790_v38 = vpop.f32.mrf.mxu0  ;;  %v870_v39 = vpop.f32.mrf.mxu1 }
 0x10a   : > { %v1222_v50 = vmul.f32 %v2673_v46, %v790_v38  ;;  %v1254_v51 = vmul.f32 %v2673_v46, %v870_v39  ;;  %vm1093_vm0 = vcmp.ge.f32.partialorder %v790_v38, 0.0  ;;  %vm1125_vm1 = vcmp.ge.f32.partialorder %v870_v39, 0.0 }
 0x10b   : > { %v1413_v45 = vsel %vm1156_vm14, %v947_v33, %v1285_v36  ;;  %v1445_v47 = vsel %vm1188_vm15, %v1027_v34, %v1317_v37 }
 0x10c   : > { %v2337_v48 = vpack.c.bf16 %v1413_v45, %v1412_v43  ;;  %v2417_v49 = vpack.c.bf16 %v1445_v47, %v1444_v44  ;;  %829 = vmatmul.bf16.gmra.mxu0 %v2091_v35  ;;  %909 = vmatmul.bf16.gmra.mxu1 %v2107_v40  ;;  %v1350_v58 = vsel %vm1093_vm0, %v790_v38, %v1222_v50 }
 0x10d   : > { %989 = vmatmul.bf16.gmra.mxu2 %v2123_v41  ;;  %1069 = vmatmul.bf16.gmra.mxu3 %v2139_v42  ;;  %v1382_v59 = vsel %vm1125_vm1, %v870_v39, %v1254_v51 }
 0x10e   : > { %2505 = vst [vmem:[%s2684_s12 + $0x128] sm:$0xff] %v2337_v48  }
 0x10f   : > { %2521 = vst [vmem:[%s2684_s12 + $0x1a8] sm:$0xff] %v2417_v49  }
 0x110   : > { %v950_v52 = vpop.f32.mrf.mxu2  ;;  %v1030_v53 = vpop.f32.mrf.mxu3 }
 0x111   : > { %v792_v54 = vpop.f32.mrf.mxu0  ;;  %v872_v55 = vpop.f32.mrf.mxu1  ;;  %v1286_v0 = vmul.f32 %v2673_v46, %v950_v52  ;;  %v1318_v1 = vmul.f32 %v2673_v46, %v1030_v53  ;;  %vm1157_vm4 = vcmp.ge.f32.partialorder %v950_v52, 0.0  ;;  %vm1189_vm5 = vcmp.ge.f32.partialorder %v1030_v53, 0.0 }
 0x112   : > { %vm1094_vm2 = vcmp.ge.f32.partialorder %v792_v54, 0.0  ;;  %v1223_v56 = vmul.f32 %v2673_v46, %v792_v54  ;;  %vm1126_vm3 = vcmp.ge.f32.partialorder %v872_v55, 0.0  ;;  %v1255_v57 = vmul.f32 %v2673_v46, %v872_v55 }
 0x113   : > { %v1414_v12 = vsel %vm1157_vm4, %v950_v52, %v1286_v0  ;;  %v1446_v13 = vsel %vm1189_vm5, %v1030_v53, %v1318_v1 }
 0x114   : > { %v1351_v60 = vsel %vm1094_vm2, %v792_v54, %v1223_v56  ;;  %v1383_v61 = vsel %vm1126_vm3, %v872_v55, %v1255_v57 }
 0x115   : > { %v2182_v62 = vpack.c.bf16 %v1351_v60, %v1350_v58  ;;  %v2262_v63 = vpack.c.bf16 %v1383_v61, %v1382_v59 }
 0x117   : > { %2474 = vst [vmem:[%s2684_s12 + $0x30] sm:$0xff] %v2182_v62  }
 0x118   : > { %2490 = vst [vmem:[%s2684_s12 + $0xb0] sm:$0xff] %v2262_v63   ;;  %v952_v2 = vpop.f32.mrf.mxu2  ;;  %v1032_v3 = vpop.f32.mrf.mxu3 }
 0x119   : > { %vm1158_vm6 = vcmp.ge.f32.partialorder %v952_v2, 0.0  ;;  %v1287_v5 = vmul.f32 %v2673_v46, %v952_v2  ;;  %vm1190_vm7 = vcmp.ge.f32.partialorder %v1032_v3, 0.0  ;;  %v1319_v6 = vmul.f32 %v2673_v46, %v1032_v3  ;;  %v795_v7 = vpop.f32.mrf.mxu0  ;;  %v875_v8 = vpop.f32.mrf.mxu1 }
 0x11a   : > { %v1224_v18 = vmul.f32 %v2673_v46, %v795_v7  ;;  %v1256_v19 = vmul.f32 %v2673_v46, %v875_v8  ;;  %vm1095_vm8 = vcmp.ge.f32.partialorder %v795_v7, 0.0  ;;  %vm1127_vm9 = vcmp.ge.f32.partialorder %v875_v8, 0.0 }
 0x11b   : > { %v1415_v14 = vsel %vm1158_vm6, %v952_v2, %v1287_v5  ;;  %v1447_v15 = vsel %vm1190_vm7, %v1032_v3, %v1319_v6 }
 0x11c   : > { %v2342_v16 = vpack.c.bf16 %v1415_v14, %v1414_v12  ;;  %v2422_v17 = vpack.c.bf16 %v1447_v15, %v1446_v13  ;;  %834 = vmatmul.bf16.gmra.mxu0 %v2092_v4  ;;  %914 = vmatmul.bf16.gmra.mxu1 %v2108_v9  ;;  %v1352_v26 = vsel %vm1095_vm8, %v795_v7, %v1224_v18 }
 0x11d   : > { %994 = vmatmul.bf16.gmra.mxu2 %v2124_v10  ;;  %1074 = vmatmul.bf16.gmra.mxu3 %v2140_v11  ;;  %v1384_v27 = vsel %vm1127_vm9, %v875_v8, %v1256_v19 }
 0x11e   : > { %2506 = vst [vmem:[%s2684_s12 + $0x130] sm:$0xff] %v2342_v16  }
 0x11f   : > { %2522 = vst [vmem:[%s2684_s12 + $0x1b0] sm:$0xff] %v2422_v17  }
 0x120   : > { %v955_v20 = vpop.f32.mrf.mxu2  ;;  %v1035_v21 = vpop.f32.mrf.mxu3 }
 0x121   : > { %v797_v22 = vpop.f32.mrf.mxu0  ;;  %v877_v23 = vpop.f32.mrf.mxu1  ;;  %v1288_v32 = vmul.f32 %v2673_v46, %v955_v20  ;;  %v1320_v33 = vmul.f32 %v2673_v46, %v1035_v21  ;;  %vm1159_vm12 = vcmp.ge.f32.partialorder %v955_v20, 0.0  ;;  %vm1191_vm13 = vcmp.ge.f32.partialorder %v1035_v21, 0.0 }
 0x122   : > { %vm1096_vm10 = vcmp.ge.f32.partialorder %v797_v22, 0.0  ;;  %v1225_v24 = vmul.f32 %v2673_v46, %v797_v22  ;;  %vm1128_vm11 = vcmp.ge.f32.partialorder %v877_v23, 0.0  ;;  %v1257_v25 = vmul.f32 %v2673_v46, %v877_v23 }
 0x123   : > { %v1416_v40 = vsel %vm1159_vm12, %v955_v20, %v1288_v32  ;;  %v1448_v41 = vsel %vm1191_vm13, %v1035_v21, %v1320_v33 }
 0x124   : > { %v1353_v28 = vsel %vm1096_vm10, %v797_v22, %v1225_v24  ;;  %v1385_v29 = vsel %vm1128_vm11, %v877_v23, %v1257_v25 }
 0x125   : > { %v2187_v30 = vpack.c.bf16 %v1353_v28, %v1352_v26  ;;  %v2267_v31 = vpack.c.bf16 %v1385_v29, %v1384_v27 }
 0x127   : > { %2475 = vst [vmem:[%s2684_s12 + $0x38] sm:$0xff] %v2187_v30  }
 0x128   : > { %2491 = vst [vmem:[%s2684_s12 + $0xb8] sm:$0xff] %v2267_v31   ;;  %v957_v34 = vpop.f32.mrf.mxu2  ;;  %v1037_v35 = vpop.f32.mrf.mxu3 }
 0x129   : > { %vm1160_vm14 = vcmp.ge.f32.partialorder %v957_v34, 0.0  ;;  %v1289_v36 = vmul.f32 %v2673_v46, %v957_v34  ;;  %vm1192_vm15 = vcmp.ge.f32.partialorder %v1037_v35, 0.0  ;;  %v1321_v37 = vmul.f32 %v2673_v46, %v1037_v35  ;;  %v800_v38 = vpop.f32.mrf.mxu0  ;;  %v880_v39 = vpop.f32.mrf.mxu1 }
 0x12a   : > { %v1226_v47 = vmul.f32 %v2673_v46, %v800_v38  ;;  %v1258_v48 = vmul.f32 %v2673_v46, %v880_v39  ;;  %vm1097_vm0 = vcmp.ge.f32.partialorder %v800_v38, 0.0  ;;  %vm1129_vm1 = vcmp.ge.f32.partialorder %v880_v39, 0.0 }
 0x12b   : > { %v1417_v42 = vsel %vm1160_vm14, %v957_v34, %v1289_v36  ;;  %v1449_v43 = vsel %vm1192_vm15, %v1037_v35, %v1321_v37 }
 0x12c   : > { %v2347_v44 = vpack.c.bf16 %v1417_v42, %v1416_v40  ;;  %v2427_v45 = vpack.c.bf16 %v1449_v43, %v1448_v41  ;;  %v1354_v55 = vsel %vm1097_vm0, %v800_v38, %v1226_v47  ;;  %v1386_v56 = vsel %vm1129_vm1, %v880_v39, %v1258_v48 }
 0x12e   : > { %2507 = vst [vmem:[%s2684_s12 + $0x138] sm:$0xff] %v2347_v44  }
 0x12f   : > { %2523 = vst [vmem:[%s2684_s12 + $0x1b8] sm:$0xff] %v2427_v45  }
 0x130   : > { %v960_v49 = vpop.f32.mrf.mxu2  ;;  %v1040_v50 = vpop.f32.mrf.mxu3 }
 0x131   : > { %v802_v51 = vpop.f32.mrf.mxu0  ;;  %v882_v52 = vpop.f32.mrf.mxu1  ;;  %v1290_v61 = vmul.f32 %v2673_v46, %v960_v49  ;;  %v1322_v62 = vmul.f32 %v2673_v46, %v1040_v50  ;;  %vm1161_vm4 = vcmp.ge.f32.partialorder %v960_v49, 0.0  ;;  %vm1193_vm5 = vcmp.ge.f32.partialorder %v1040_v50, 0.0 }
 0x132   : > { %vm1098_vm2 = vcmp.ge.f32.partialorder %v802_v51, 0.0  ;;  %v1227_v53 = vmul.f32 %v2673_v46, %v802_v51  ;;  %vm1130_vm3 = vcmp.ge.f32.partialorder %v882_v52, 0.0  ;;  %v1259_v54 = vmul.f32 %v2673_v46, %v882_v52 }
 0x133   : > { %v1418_v5 = vsel %vm1161_vm4, %v960_v49, %v1290_v61  ;;  %v1450_v6 = vsel %vm1193_vm5, %v1040_v50, %v1322_v62 }
 0x134   : > { %v1355_v57 = vsel %vm1098_vm2, %v802_v51, %v1227_v53  ;;  %v1387_v58 = vsel %vm1130_vm3, %v882_v52, %v1259_v54 }
 0x135   : > { %v2192_v59 = vpack.c.bf16 %v1355_v57, %v1354_v55  ;;  %v2272_v60 = vpack.c.bf16 %v1387_v58, %v1386_v56 }
 0x137   : > { %2476 = vst [vmem:[%s2684_s12 + $0x40] sm:$0xff] %v2192_v59  }
 0x138   : > { %2492 = vst [vmem:[%s2684_s12 + $0xc0] sm:$0xff] %v2272_v60   ;;  %v962_v63 = vpop.f32.mrf.mxu2  ;;  %v1042_v0 = vpop.f32.mrf.mxu3 }
 0x139   : > { %vm1162_vm6 = vcmp.ge.f32.partialorder %v962_v63, 0.0  ;;  %v1291_v1 = vmul.f32 %v2673_v46, %v962_v63  ;;  %vm1194_vm7 = vcmp.ge.f32.partialorder %v1042_v0, 0.0  ;;  %v1323_v2 = vmul.f32 %v2673_v46, %v1042_v0  ;;  %v805_v3 = vpop.f32.mrf.mxu0  ;;  %v885_v4 = vpop.f32.mrf.mxu1 }
 0x13a   : > { %v1228_v11 = vmul.f32 %v2673_v46, %v805_v3  ;;  %vm1099_vm8 = vcmp.ge.f32.partialorder %v805_v3, 0.0  ;;  %v1260_v13 = vmul.f32 %v2673_v46, %v885_v4  ;;  %vm1131_vm9 = vcmp.ge.f32.partialorder %v885_v4, 0.0 }
 0x13b   : > { %v1419_v7 = vsel %vm1162_vm6, %v962_v63, %v1291_v1  ;;  %v1451_v8 = vsel %vm1194_vm7, %v1042_v0, %v1323_v2 }
 0x13c   : > { %v2352_v9 = vpack.c.bf16 %v1419_v7, %v1418_v5  ;;  %v2432_v10 = vpack.c.bf16 %v1451_v8, %v1450_v6  ;;  %v1356_v19 = vsel %vm1099_vm8, %v805_v3, %v1228_v11  ;;  %v1388_v21 = vsel %vm1131_vm9, %v885_v4, %v1260_v13 }
 0x13e   : > { %2508 = vst [vmem:[%s2684_s12 + $0x140] sm:$0xff] %v2352_v9  }
 0x13f   : > { %2524 = vst [vmem:[%s2684_s12 + $0x1c0] sm:$0xff] %v2432_v10  }
 0x140   : > { %v965_v12 = vpop.f32.mrf.mxu2  ;;  %v1045_v14 = vpop.f32.mrf.mxu3 }
 0x141   : > { %v807_v15 = vpop.f32.mrf.mxu0  ;;  %v887_v17 = vpop.f32.mrf.mxu1  ;;  %v1292_v25 = vmul.f32 %v2673_v46, %v965_v12  ;;  %vm1163_vm12 = vcmp.ge.f32.partialorder %v965_v12, 0.0  ;;  %v1324_v26 = vmul.f32 %v2673_v46, %v1045_v14  ;;  %vm1195_vm13 = vcmp.ge.f32.partialorder %v1045_v14, 0.0 }
 0x142   : > { %vm1100_vm10 = vcmp.ge.f32.partialorder %v807_v15, 0.0  ;;  %v1229_v16 = vmul.f32 %v2673_v46, %v807_v15  ;;  %vm1132_vm11 = vcmp.ge.f32.partialorder %v887_v17, 0.0  ;;  %v1261_v18 = vmul.f32 %v2673_v46, %v887_v17 }
 0x143   : > { %v1420_v33 = vsel %vm1163_vm12, %v965_v12, %v1292_v25  ;;  %v1452_v35 = vsel %vm1195_vm13, %v1045_v14, %v1324_v26 }
 0x144   : > { %v1357_v20 = vsel %vm1100_vm10, %v807_v15, %v1229_v16  ;;  %v1389_v23 = vsel %vm1132_vm11, %v887_v17, %v1261_v18 }
 0x145   : > { %v2197_v22 = vpack.c.bf16 %v1357_v20, %v1356_v19  ;;  %v2277_v24 = vpack.c.bf16 %v1389_v23, %v1388_v21 }
 0x147   : > { %2477 = vst [vmem:[%s2684_s12 + $0x48] sm:$0xff] %v2197_v22  }
 0x148   : > { %2493 = vst [vmem:[%s2684_s12 + $0xc8] sm:$0xff] %v2277_v24   ;;  %v967_v27 = vpop.f32.mrf.mxu2  ;;  %v1047_v29 = vpop.f32.mrf.mxu3 }
 0x149   : > { %vm1164_vm14 = vcmp.ge.f32.partialorder %v967_v27, 0.0  ;;  %v1293_v28 = vmul.f32 %v2673_v46, %v967_v27  ;;  %v810_v30 = vpop.f32.mrf.mxu0  ;;  %vm1196_vm15 = vcmp.ge.f32.partialorder %v1047_v29, 0.0  ;;  %v1325_v31 = vmul.f32 %v2673_v46, %v1047_v29  ;;  %v890_v32 = vpop.f32.mrf.mxu1 }
 0x14a   : > { %v1230_v39 = vmul.f32 %v2673_v46, %v810_v30  ;;  %vm1101_vm0 = vcmp.ge.f32.partialorder %v810_v30, 0.0  ;;  %v1262_v41 = vmul.f32 %v2673_v46, %v890_v32  ;;  %vm1133_vm1 = vcmp.ge.f32.partialorder %v890_v32, 0.0 }
 0x14b   : > { %v1421_v34 = vsel %vm1164_vm14, %v967_v27, %v1293_v28  ;;  %v1453_v37 = vsel %vm1196_vm15, %v1047_v29, %v1325_v31 }
 0x14c   : > { %v2357_v36 = vpack.c.bf16 %v1421_v34, %v1420_v33  ;;  %v2437_v38 = vpack.c.bf16 %v1453_v37, %v1452_v35  ;;  %v1358_v48 = vsel %vm1101_vm0, %v810_v30, %v1230_v39  ;;  %v1390_v50 = vsel %vm1133_vm1, %v890_v32, %v1262_v41 }
 0x14e   : > { %2509 = vst [vmem:[%s2684_s12 + $0x148] sm:$0xff] %v2357_v36  }
 0x14f   : > { %2525 = vst [vmem:[%s2684_s12 + $0x1c8] sm:$0xff] %v2437_v38  }
 0x150   : > { %v970_v40 = vpop.f32.mrf.mxu2  ;;  %v1050_v42 = vpop.f32.mrf.mxu3 }
 0x151   : > { %v812_v43 = vpop.f32.mrf.mxu0  ;;  %v892_v45 = vpop.f32.mrf.mxu1  ;;  %v1294_v54 = vmul.f32 %v2673_v46, %v970_v40  ;;  %vm1165_vm4 = vcmp.ge.f32.partialorder %v970_v40, 0.0  ;;  %v1326_v55 = vmul.f32 %v2673_v46, %v1050_v42  ;;  %vm1197_vm5 = vcmp.ge.f32.partialorder %v1050_v42, 0.0 }
 0x152   : > { %vm1102_vm2 = vcmp.ge.f32.partialorder %v812_v43, 0.0  ;;  %v1231_v44 = vmul.f32 %v2673_v46, %v812_v43  ;;  %vm1134_vm3 = vcmp.ge.f32.partialorder %v892_v45, 0.0  ;;  %v1263_v47 = vmul.f32 %v2673_v46, %v892_v45 }
 0x153   : > { %v1422_v62 = vsel %vm1165_vm4, %v970_v40, %v1294_v54  ;;  %v1454_v0 = vsel %vm1197_vm5, %v1050_v42, %v1326_v55 }
 0x154   : > { %v1359_v49 = vsel %vm1102_vm2, %v812_v43, %v1231_v44  ;;  %v1391_v52 = vsel %vm1134_vm3, %v892_v45, %v1263_v47 }
 0x155   : > { %v2202_v51 = vpack.c.bf16 %v1359_v49, %v1358_v48  ;;  %v2282_v53 = vpack.c.bf16 %v1391_v52, %v1390_v50 }
 0x157   : > { %2478 = vst [vmem:[%s2684_s12 + $0x50] sm:$0xff] %v2202_v51  }
 0x158   : > { %2494 = vst [vmem:[%s2684_s12 + $0xd0] sm:$0xff] %v2282_v53   ;;  %v972_v56 = vpop.f32.mrf.mxu2  ;;  %v1052_v58 = vpop.f32.mrf.mxu3 }
 0x159   : > { %vm1166_vm6 = vcmp.ge.f32.partialorder %v972_v56, 0.0  ;;  %v1295_v57 = vmul.f32 %v2673_v46, %v972_v56  ;;  %v815_v59 = vpop.f32.mrf.mxu0  ;;  %vm1198_vm7 = vcmp.ge.f32.partialorder %v1052_v58, 0.0  ;;  %v1327_v60 = vmul.f32 %v2673_v46, %v1052_v58  ;;  %v895_v61 = vpop.f32.mrf.mxu1 }
 0x15a   : > { %v1232_v4 = vmul.f32 %v2673_v46, %v815_v59  ;;  %vm1103_vm8 = vcmp.ge.f32.partialorder %v815_v59, 0.0  ;;  %v1264_v6 = vmul.f32 %v2673_v46, %v895_v61  ;;  %vm1135_vm9 = vcmp.ge.f32.partialorder %v895_v61, 0.0 }
 0x15b   : > { %v1423_v63 = vsel %vm1166_vm6, %v972_v56, %v1295_v57  ;;  %v1455_v2 = vsel %vm1198_vm7, %v1052_v58, %v1327_v60 }
 0x15c   : > { %v2362_v1 = vpack.c.bf16 %v1423_v63, %v1422_v62  ;;  %v2442_v3 = vpack.c.bf16 %v1455_v2, %v1454_v0  ;;  %v1360_v12 = vsel %vm1103_vm8, %v815_v59, %v1232_v4  ;;  %v1392_v14 = vsel %vm1135_vm9, %v895_v61, %v1264_v6 }
 0x15e   : > { %2510 = vst [vmem:[%s2684_s12 + $0x150] sm:$0xff] %v2362_v1  }
 0x15f   : > { %2526 = vst [vmem:[%s2684_s12 + $0x1d0] sm:$0xff] %v2442_v3  }
 0x160   : > { %v975_v5 = vpop.f32.mrf.mxu2  ;;  %v1055_v7 = vpop.f32.mrf.mxu3 }
 0x161   : > { %v817_v8 = vpop.f32.mrf.mxu0  ;;  %v897_v10 = vpop.f32.mrf.mxu1  ;;  %v1296_v18 = vmul.f32 %v2673_v46, %v975_v5  ;;  %vm1167_vm12 = vcmp.ge.f32.partialorder %v975_v5, 0.0  ;;  %v1328_v19 = vmul.f32 %v2673_v46, %v1055_v7  ;;  %vm1199_vm13 = vcmp.ge.f32.partialorder %v1055_v7, 0.0 }
 0x162   : > { %vm1104_vm10 = vcmp.ge.f32.partialorder %v817_v8, 0.0  ;;  %v1233_v9 = vmul.f32 %v2673_v46, %v817_v8  ;;  %vm1136_vm11 = vcmp.ge.f32.partialorder %v897_v10, 0.0  ;;  %v1265_v11 = vmul.f32 %v2673_v46, %v897_v10 }
 0x163   : > { %v1424_v26 = vsel %vm1167_vm12, %v975_v5, %v1296_v18  ;;  %v1456_v28 = vsel %vm1199_vm13, %v1055_v7, %v1328_v19 }
 0x164   : > { %v1361_v13 = vsel %vm1104_vm10, %v817_v8, %v1233_v9  ;;  %v1393_v16 = vsel %vm1136_vm11, %v897_v10, %v1265_v11 }
 0x165   : > { %v2207_v15 = vpack.c.bf16 %v1361_v13, %v1360_v12  ;;  %v2287_v17 = vpack.c.bf16 %v1393_v16, %v1392_v14 }
 0x167   : > { %2479 = vst [vmem:[%s2684_s12 + $0x58] sm:$0xff] %v2207_v15  }
 0x168   : > { %2495 = vst [vmem:[%s2684_s12 + $0xd8] sm:$0xff] %v2287_v17   ;;  %v977_v20 = vpop.f32.mrf.mxu2  ;;  %v1057_v22 = vpop.f32.mrf.mxu3 }
 0x169   : > { %vm1168_vm14 = vcmp.ge.f32.partialorder %v977_v20, 0.0  ;;  %v1297_v21 = vmul.f32 %v2673_v46, %v977_v20  ;;  %v820_v23 = vpop.f32.mrf.mxu0  ;;  %vm1200_vm15 = vcmp.ge.f32.partialorder %v1057_v22, 0.0  ;;  %v1329_v24 = vmul.f32 %v2673_v46, %v1057_v22  ;;  %v900_v25 = vpop.f32.mrf.mxu1 }
 0x16a   : > { %v1234_v32 = vmul.f32 %v2673_v46, %v820_v23  ;;  %vm1105_vm0 = vcmp.ge.f32.partialorder %v820_v23, 0.0  ;;  %v1266_v34 = vmul.f32 %v2673_v46, %v900_v25  ;;  %vm1137_vm1 = vcmp.ge.f32.partialorder %v900_v25, 0.0 }
 0x16b   : > { %v1425_v27 = vsel %vm1168_vm14, %v977_v20, %v1297_v21  ;;  %v1457_v30 = vsel %vm1200_vm15, %v1057_v22, %v1329_v24 }
 0x16c   : > { %v2367_v29 = vpack.c.bf16 %v1425_v27, %v1424_v26  ;;  %v2447_v31 = vpack.c.bf16 %v1457_v30, %v1456_v28  ;;  %v1362_v40 = vsel %vm1105_vm0, %v820_v23, %v1234_v32  ;;  %v1394_v42 = vsel %vm1137_vm1, %v900_v25, %v1266_v34 }
 0x16e   : > { %2511 = vst [vmem:[%s2684_s12 + $0x158] sm:$0xff] %v2367_v29  }
 0x16f   : > { %2527 = vst [vmem:[%s2684_s12 + $0x1d8] sm:$0xff] %v2447_v31  }
 0x170   : > { %v980_v33 = vpop.f32.mrf.mxu2  ;;  %v1060_v35 = vpop.f32.mrf.mxu3 }
 0x171   : > { %v822_v36 = vpop.f32.mrf.mxu0  ;;  %v902_v38 = vpop.f32.mrf.mxu1  ;;  %v1298_v47 = vmul.f32 %v2673_v46, %v980_v33  ;;  %vm1169_vm4 = vcmp.ge.f32.partialorder %v980_v33, 0.0  ;;  %v1330_v48 = vmul.f32 %v2673_v46, %v1060_v35  ;;  %vm1201_vm5 = vcmp.ge.f32.partialorder %v1060_v35, 0.0 }
 0x172   : > { %vm1106_vm2 = vcmp.ge.f32.partialorder %v822_v36, 0.0  ;;  %v1235_v37 = vmul.f32 %v2673_v46, %v822_v36  ;;  %vm1138_vm3 = vcmp.ge.f32.partialorder %v902_v38, 0.0  ;;  %v1267_v39 = vmul.f32 %v2673_v46, %v902_v38 }
 0x173   : > { %v1426_v55 = vsel %vm1169_vm4, %v980_v33, %v1298_v47  ;;  %v1458_v57 = vsel %vm1201_vm5, %v1060_v35, %v1330_v48 }
 0x174   : > { %v1363_v41 = vsel %vm1106_vm2, %v822_v36, %v1235_v37  ;;  %v1395_v44 = vsel %vm1138_vm3, %v902_v38, %v1267_v39 }
 0x175   : > { %v2212_v43 = vpack.c.bf16 %v1363_v41, %v1362_v40  ;;  %v2292_v45 = vpack.c.bf16 %v1395_v44, %v1394_v42 }
 0x177   : > { %2480 = vst [vmem:[%s2684_s12 + $0x60] sm:$0xff] %v2212_v43  }
 0x178   : > { %2496 = vst [vmem:[%s2684_s12 + $0xe0] sm:$0xff] %v2292_v45   ;;  %v982_v49 = vpop.f32.mrf.mxu2  ;;  %v1062_v51 = vpop.f32.mrf.mxu3 }
 0x179   : > { %vm1170_vm6 = vcmp.ge.f32.partialorder %v982_v49, 0.0  ;;  %v1299_v50 = vmul.f32 %v2673_v46, %v982_v49  ;;  %v825_v52 = vpop.f32.mrf.mxu0  ;;  %vm1202_vm7 = vcmp.ge.f32.partialorder %v1062_v51, 0.0  ;;  %v1331_v53 = vmul.f32 %v2673_v46, %v1062_v51  ;;  %v905_v54 = vpop.f32.mrf.mxu1 }
 0x17a   : > { %v1236_v61 = vmul.f32 %v2673_v46, %v825_v52  ;;  %vm1107_vm8 = vcmp.ge.f32.partialorder %v825_v52, 0.0  ;;  %v1268_v63 = vmul.f32 %v2673_v46, %v905_v54  ;;  %vm1139_vm9 = vcmp.ge.f32.partialorder %v905_v54, 0.0 }
 0x17b   : > { %v1427_v56 = vsel %vm1170_vm6, %v982_v49, %v1299_v50  ;;  %v1459_v59 = vsel %vm1202_vm7, %v1062_v51, %v1331_v53 }
 0x17c   : > { %v2372_v58 = vpack.c.bf16 %v1427_v56, %v1426_v55  ;;  %v2452_v60 = vpack.c.bf16 %v1459_v59, %v1458_v57  ;;  %v1364_v5 = vsel %vm1107_vm8, %v825_v52, %v1236_v61  ;;  %v1396_v7 = vsel %vm1139_vm9, %v905_v54, %v1268_v63 }
 0x17e   : > { %2512 = vst [vmem:[%s2684_s12 + $0x160] sm:$0xff] %v2372_v58  }
 0x17f   : > { %2528 = vst [vmem:[%s2684_s12 + $0x1e0] sm:$0xff] %v2452_v60  }
 0x180   : > { %v985_v62 = vpop.f32.mrf.mxu2  ;;  %v1065_v0 = vpop.f32.mrf.mxu3 }
 0x181   : > { %v827_v1 = vpop.f32.mrf.mxu0  ;;  %v907_v3 = vpop.f32.mrf.mxu1  ;;  %v1300_v11 = vmul.f32 %v2673_v46, %v985_v62  ;;  %vm1171_vm12 = vcmp.ge.f32.partialorder %v985_v62, 0.0  ;;  %v1332_v12 = vmul.f32 %v2673_v46, %v1065_v0  ;;  %vm1203_vm13 = vcmp.ge.f32.partialorder %v1065_v0, 0.0 }
 0x182   : > { %vm1108_vm10 = vcmp.ge.f32.partialorder %v827_v1, 0.0  ;;  %v1237_v2 = vmul.f32 %v2673_v46, %v827_v1  ;;  %vm1140_vm11 = vcmp.ge.f32.partialorder %v907_v3, 0.0  ;;  %v1269_v4 = vmul.f32 %v2673_v46, %v907_v3 }
 0x183   : > { %v1428_v19 = vsel %vm1171_vm12, %v985_v62, %v1300_v11  ;;  %v1460_v21 = vsel %vm1203_vm13, %v1065_v0, %v1332_v12 }
 0x184   : > { %v1365_v6 = vsel %vm1108_vm10, %v827_v1, %v1237_v2  ;;  %v1397_v9 = vsel %vm1140_vm11, %v907_v3, %v1269_v4 }
 0x185   : > { %v2217_v8 = vpack.c.bf16 %v1365_v6, %v1364_v5  ;;  %v2297_v10 = vpack.c.bf16 %v1397_v9, %v1396_v7 }
 0x187   : > { %2481 = vst [vmem:[%s2684_s12 + $0x68] sm:$0xff] %v2217_v8  }
 0x188   : > { %2497 = vst [vmem:[%s2684_s12 + $0xe8] sm:$0xff] %v2297_v10   ;;  %v987_v13 = vpop.f32.mrf.mxu2  ;;  %v1067_v15 = vpop.f32.mrf.mxu3 }
 0x189   : > { %vm1172_vm14 = vcmp.ge.f32.partialorder %v987_v13, 0.0  ;;  %v1301_v14 = vmul.f32 %v2673_v46, %v987_v13  ;;  %v830_v16 = vpop.f32.mrf.mxu0  ;;  %vm1204_vm15 = vcmp.ge.f32.partialorder %v1067_v15, 0.0  ;;  %v1333_v17 = vmul.f32 %v2673_v46, %v1067_v15  ;;  %v910_v18 = vpop.f32.mrf.mxu1 }
 0x18a   : > { %v1238_v25 = vmul.f32 %v2673_v46, %v830_v16  ;;  %vm1109_vm0 = vcmp.ge.f32.partialorder %v830_v16, 0.0  ;;  %v1270_v27 = vmul.f32 %v2673_v46, %v910_v18  ;;  %vm1141_vm1 = vcmp.ge.f32.partialorder %v910_v18, 0.0 }
 0x18b   : > { %v1429_v20 = vsel %vm1172_vm14, %v987_v13, %v1301_v14  ;;  %v1461_v23 = vsel %vm1204_vm15, %v1067_v15, %v1333_v17 }
 0x18c   : > { %v2377_v22 = vpack.c.bf16 %v1429_v20, %v1428_v19  ;;  %v2457_v24 = vpack.c.bf16 %v1461_v23, %v1460_v21  ;;  %v1366_v33 = vsel %vm1109_vm0, %v830_v16, %v1238_v25  ;;  %v1398_v35 = vsel %vm1141_vm1, %v910_v18, %v1270_v27 }
 0x18e   : > { %2513 = vst [vmem:[%s2684_s12 + $0x168] sm:$0xff] %v2377_v22  }
 0x18f   : > { %2529 = vst [vmem:[%s2684_s12 + $0x1e8] sm:$0xff] %v2457_v24  }
 0x190   : > { %v990_v26 = vpop.f32.mrf.mxu2  ;;  %v1070_v28 = vpop.f32.mrf.mxu3 }
 0x191   : > { %v832_v29 = vpop.f32.mrf.mxu0  ;;  %v912_v31 = vpop.f32.mrf.mxu1  ;;  %v1302_v39 = vmul.f32 %v2673_v46, %v990_v26  ;;  %vm1173_vm4 = vcmp.ge.f32.partialorder %v990_v26, 0.0  ;;  %v1334_v40 = vmul.f32 %v2673_v46, %v1070_v28  ;;  %vm1205_vm5 = vcmp.ge.f32.partialorder %v1070_v28, 0.0 }
 0x192   : > { %vm1110_vm2 = vcmp.ge.f32.partialorder %v832_v29, 0.0  ;;  %v1239_v30 = vmul.f32 %v2673_v46, %v832_v29  ;;  %vm1142_vm3 = vcmp.ge.f32.partialorder %v912_v31, 0.0  ;;  %v1271_v32 = vmul.f32 %v2673_v46, %v912_v31 }
 0x193   : > { %v1430_v48 = vsel %vm1173_vm4, %v990_v26, %v1302_v39  ;;  %v1462_v50 = vsel %vm1205_vm5, %v1070_v28, %v1334_v40 }
 0x194   : > { %v1367_v34 = vsel %vm1110_vm2, %v832_v29, %v1239_v30  ;;  %v1399_v37 = vsel %vm1142_vm3, %v912_v31, %v1271_v32 }
 0x195   : > { %v2222_v36 = vpack.c.bf16 %v1367_v34, %v1366_v33  ;;  %v2302_v38 = vpack.c.bf16 %v1399_v37, %v1398_v35 }
 0x197   : > { %2482 = vst [vmem:[%s2684_s12 + $0x70] sm:$0xff] %v2222_v36  }
 0x198   : > { %2498 = vst [vmem:[%s2684_s12 + $0xf0] sm:$0xff] %v2302_v38   ;;  %v992_v41 = vpop.f32.mrf.mxu2  ;;  %v1072_v43 = vpop.f32.mrf.mxu3 }
 0x199   : > { %vm1174_vm6 = vcmp.ge.f32.partialorder %v992_v41, 0.0  ;;  %v1303_v42 = vmul.f32 %v2673_v46, %v992_v41  ;;  %v835_v44 = vpop.f32.mrf.mxu0  ;;  %vm1206_vm7 = vcmp.ge.f32.partialorder %v1072_v43, 0.0  ;;  %v1335_v45 = vmul.f32 %v2673_v46, %v1072_v43  ;;  %v915_v47 = vpop.f32.mrf.mxu1 }
 0x19a   : > { %v1240_v54 = vmul.f32 %v2673_v46, %v835_v44  ;;  %vm1111_vm8 = vcmp.ge.f32.partialorder %v835_v44, 0.0  ;;  %v1272_v56 = vmul.f32 %v2673_v46, %v915_v47  ;;  %vm1143_vm9 = vcmp.ge.f32.partialorder %v915_v47, 0.0 }
 0x19b   : > { %v1431_v49 = vsel %vm1174_vm6, %v992_v41, %v1303_v42  ;;  %v1463_v52 = vsel %vm1206_vm7, %v1072_v43, %v1335_v45 }
 0x19c   : > { %v2382_v51 = vpack.c.bf16 %v1431_v49, %v1430_v48  ;;  %v2462_v53 = vpack.c.bf16 %v1463_v52, %v1462_v50  ;;  %v1368_v62 = vsel %vm1111_vm8, %v835_v44, %v1240_v54  ;;  %v1400_v0 = vsel %vm1143_vm9, %v915_v47, %v1272_v56 }
 0x19e   : > { %2514 = vst [vmem:[%s2684_s12 + $0x170] sm:$0xff] %v2382_v51  }
 0x19f   : > { %2530 = vst [vmem:[%s2684_s12 + $0x1f0] sm:$0xff] %v2462_v53  }
 0x1a0   : > { %v995_v55 = vpop.f32.mrf.mxu2  ;;  %v1075_v57 = vpop.f32.mrf.mxu3 }
 0x1a1   : > { %v837_v58 = vpop.f32.mrf.mxu0  ;;  %v917_v60 = vpop.f32.mrf.mxu1  ;;  %v1304_v4 = vmul.f32 %v2673_v46, %v995_v55  ;;  %vm1175_vm12 = vcmp.ge.f32.partialorder %v995_v55, 0.0  ;;  %v1336_v5 = vmul.f32 %v2673_v46, %v1075_v57  ;;  %vm1207_vm13 = vcmp.ge.f32.partialorder %v1075_v57, 0.0 }
 0x1a2   : > { %vm1112_vm10 = vcmp.ge.f32.partialorder %v837_v58, 0.0  ;;  %v1241_v59 = vmul.f32 %v2673_v46, %v837_v58  ;;  %vm1144_vm11 = vcmp.ge.f32.partialorder %v917_v60, 0.0  ;;  %v1273_v61 = vmul.f32 %v2673_v46, %v917_v60 }
 0x1a3   : > { %v1432_v10 = vsel %vm1175_vm12, %v995_v55, %v1304_v4  ;;  %v1464_v12 = vsel %vm1207_vm13, %v1075_v57, %v1336_v5 }
 0x1a4   : > { %v1369_v63 = vsel %vm1112_vm10, %v837_v58, %v1241_v59  ;;  %v1401_v2 = vsel %vm1144_vm11, %v917_v60, %v1273_v61 }
 0x1a5   : > { %v2227_v1 = vpack.c.bf16 %v1369_v63, %v1368_v62  ;;  %v2307_v3 = vpack.c.bf16 %v1401_v2, %v1400_v0 }
 0x1a7   : > { %2483 = vst [vmem:[%s2684_s12 + $0x78] sm:$0xff] %v2227_v1  }
 0x1a8   : > { %2499 = vst [vmem:[%s2684_s12 + $0xf8] sm:$0xff] %v2307_v3   ;;  %v997_v6 = vpop.f32.mrf.mxu2  ;;  %v1077_v8 = vpop.f32.mrf.mxu3 }
 0x1a9   : > { %vm1176_vm14 = vcmp.ge.f32.partialorder %v997_v6, 0.0  ;;  %v1305_v7 = vmul.f32 %v2673_v46, %v997_v6  ;;  %vm1208_vm15 = vcmp.ge.f32.partialorder %v1077_v8, 0.0  ;;  %v1337_v9 = vmul.f32 %v2673_v46, %v1077_v8 }
 0x1ab   : > { %v1433_v11 = vsel %vm1176_vm14, %v997_v6, %v1305_v7  ;;  %v1465_v14 = vsel %vm1208_vm15, %v1077_v8, %v1337_v9 }
 0x1ac   : > { %v2387_v13 = vpack.c.bf16 %v1433_v11, %v1432_v10  ;;  %v2467_v15 = vpack.c.bf16 %v1465_v14, %v1464_v12 }
 0x1ae   : > { %2515 = vst [vmem:[%s2684_s12 + $0x178] sm:$0xff] %v2387_v13  }
 0x1af   : > { %2531 = vst [vmem:[%s2684_s12 + $0x1f8] sm:$0xff] %v2467_v15  }
 0x1b0 PF: > { %s14_s14 = sadd.s32 1, %s2570_s14  }
 0x1b1   : > { %p11_p4 = scmp.ge.s32.totalorder %s14_s14, 4  }
 0x1b3   :  { %13 = sbr.rel (!%p11_p4) target bundleno = 2 (0x2), region = 62 }

// kernel: discriminator_forward.9
= control target key start
LH: loop header
LB: loop body
LE: loop exit
PB: predicated region body
PF: predicated region fallthrough
CT: control target
= control target key end

     0   :  { %s1090_s12 = smov 0   ;;  %s1092_s13 = smov 0   ;;  %s1329_s0 = inlined_call_operand.vmem [shape: bf16[512,128], index: 0, kind: input, shape index: {}]   ;;  %s1330_s1 = inlined_call_operand.vmem [shape: bf16[128,128], index: 1, kind: input, shape index: {}]   ;;  %s1331_s2 = inlined_call_operand.vmem [shape: bf16[512,128], index: 2, kind: output, shape index: {0}]   ;;  %s1332_s3 = inlined_call_operand.vmem [shape: f32[2,2,128], index: 3, kind: output, shape index: {1}]  }
   0x1   :  { %s1094_s14 = smov 0  }
   0x2 LB: > { %s26_s15 = sadd.s32 1, %s1063_s13  ;;  %p773_p0 = scmp.ge.s32.totalorder %s1067_s14, 1  ;;  %s1067_s14 = sphi %s1094_s14, %s14_s14   ;;  %s1063_s13 = sphi %s1092_s13, %s1334_s13   ;;  %s1059_s12 = sphi %s1090_s12, %s1333_s12  }
   0x3   : > { %p28_p1 = scmp.ge.s32.totalorder %s26_s15, 2  ;;  %p159_p2 = scmp.lt.s32.totalorder %s1067_s14, 3 }
   0x5   : > { %s1336_s15 = smov (%p28_p1, %s26_s15), 0  ;;  %p160_p3 = pnand %p773_p0, %p159_p2 }
   0x6   : > { %s774_s24 = sshll.u32 (!%p160_p3), %s1059_s12, 5  ;;  %p205_p5 = scmp.lt.s32.totalorder (!%p160_p3), %s1059_s12, 1 }
   0x7   : > { %163 = sbr.rel (%p160_p3) target bundleno = 294 (0x126), region = 28  ;;  %p191_p4 = scmp.lt.s32.totalorder (!%p160_p3), %s774_s24, 63 }
   0xc   : > { %v900_v0 = vld [vmem:[%s1330_s1 + $0x38] sm:$0xff]  ;;  %v899_v1 = vld [vmem:[%s1330_s1 + $0x30] sm:$0xff]  ;;  %v898_v2 = vld [vmem:[%s1330_s1 + $0x28] sm:$0xff]  ;;  %s1338_s24 = smov (!%p191_p4, %s774_s24), 63  ;;  %s1340_s12 = smov (!%p205_p5, %s1059_s12), 1  ;;  %vm666_vm0 = vcmask 1040384  }
   0xd   : > { %406 = vmatpush.bf16.msra.mxu0 %v900_v0  ;;  %996 = vmatpush.bf16.msra.mxu1 %v900_v0  ;;  %v897_v3 = vld [vmem:[%s1330_s1 + $0x20] sm:$0xff]  ;;  %v896_v4 = vld [vmem:[%s1330_s1 + $0x18] sm:$0xff]  ;;  %v895_v5 = vld [vmem:[%s1330_s1 + $0x10] sm:$0xff]  ;;  %s775_s4 = sshll.u32 %s1338_s24, 2  ;;  %s778_s17 = sshll.u32 %s1340_s12, 1 }
   0xe   : > { %997 = vmatpush.bf16.msra.mxu2 %v900_v0  ;;  %998 = vmatpush.bf16.msra.mxu3 %v900_v0  ;;  %v894_v6 = vld [vmem:[%s1330_s1 + $0x8] sm:$0xff]  ;;  %v893_v7 = vld [vmem:[%s1330_s1] sm:$0xff]  ;;  %s1143_s9 = scalar_lea.vmem %s1329_s0, %s775_s4  ;;  %s1170_s16 = scalar_lea.vmem %s1331_s2, %s775_s4 }
   0xf   : > { %v877_v8 = vld [vmem:[%s1143_s9] sm:$0xff]  ;;  %v878_v12 = vld [vmem:[%s1143_s9 + $0x8] sm:$0xff]  ;;  %v879_v16 = vld [vmem:[%s1143_s9 + $0x10] sm:$0xff]  ;;  %s1270_s20 = scalar_lea.vmem %s1332_s3, %s778_s17 }
  0x10   : > { %v881_v9 = vld [vmem:[%s1143_s9 + $0x20] sm:$0xff]  ;;  %v882_v13 = vld [vmem:[%s1143_s9 + $0x28] sm:$0xff]  ;;  %v883_v17 = vld [vmem:[%s1143_s9 + $0x30] sm:$0xff] }
  0x11   : > { %407 = vmatpush.bf16.msra.mxu0 %v899_v1  ;;  %999 = vmatpush.bf16.msra.mxu1 %v899_v1  ;;  %v885_v10 = vld [vmem:[%s1143_s9 + $0x40] sm:$0xff]  ;;  %v886_v14 = vld [vmem:[%s1143_s9 + $0x48] sm:$0xff]  ;;  %v887_v18 = vld [vmem:[%s1143_s9 + $0x50] sm:$0xff] }
  0x12   : > { %1000 = vmatpush.bf16.msra.mxu2 %v899_v1  ;;  %1001 = vmatpush.bf16.msra.mxu3 %v899_v1  ;;  %v889_v11 = vld [vmem:[%s1143_s9 + $0x60] sm:$0xff]  ;;  %v890_v15 = vld [vmem:[%s1143_s9 + $0x68] sm:$0xff]  ;;  %v891_v19 = vld [vmem:[%s1143_s9 + $0x70] sm:$0xff] }
  0x13   : > { %v880_v20 = vld [vmem:[%s1143_s9 + $0x18] sm:$0xff] }
  0x14   : > { %v884_v21 = vld [vmem:[%s1143_s9 + $0x38] sm:$0xff] }
  0x15   : > { %408 = vmatpush.bf16.msra.mxu0 %v898_v2  ;;  %1002 = vmatpush.bf16.msra.mxu1 %v898_v2  ;;  %v888_v22 = vld [vmem:[%s1143_s9 + $0x58] sm:$0xff] }
  0x16   : > { %1003 = vmatpush.bf16.msra.mxu2 %v898_v2  ;;  %1004 = vmatpush.bf16.msra.mxu3 %v898_v2  ;;  %v892_v23 = vld [vmem:[%s1143_s9 + $0x78] sm:$0xff] }
  0x19   : > { %409 = vmatpush.bf16.msra.mxu0 %v897_v3  ;;  %1005 = vmatpush.bf16.msra.mxu1 %v897_v3 }
  0x1a   : > { %1006 = vmatpush.bf16.msra.mxu2 %v897_v3  ;;  %1007 = vmatpush.bf16.msra.mxu3 %v897_v3 }
  0x1d   : > { %410 = vmatpush.bf16.msra.mxu0 %v896_v4  ;;  %1008 = vmatpush.bf16.msra.mxu1 %v896_v4 }
  0x1e   : > { %1009 = vmatpush.bf16.msra.mxu2 %v896_v4  ;;  %1010 = vmatpush.bf16.msra.mxu3 %v896_v4 }
  0x21   : > { %411 = vmatpush.bf16.msra.mxu0 %v895_v5  ;;  %1011 = vmatpush.bf16.msra.mxu1 %v895_v5 }
  0x22   : > { %1012 = vmatpush.bf16.msra.mxu2 %v895_v5  ;;  %1013 = vmatpush.bf16.msra.mxu3 %v895_v5 }
  0x25   : > { %412 = vmatpush.bf16.msra.mxu0 %v894_v6  ;;  %1014 = vmatpush.bf16.msra.mxu1 %v894_v6 }
  0x26   : > { %1015 = vmatpush.bf16.msra.mxu2 %v894_v6  ;;  %1016 = vmatpush.bf16.msra.mxu3 %v894_v6 }
  0x29   : > { %413 = vmatpush.bf16.msra.mxu0 %v893_v7  ;;  %1017 = vmatpush.bf16.msra.mxu1 %v893_v7 }
  0x2a   : > { %1018 = vmatpush.bf16.msra.mxu2 %v893_v7  ;;  %1019 = vmatpush.bf16.msra.mxu3 %v893_v7 }
  0x2c   : > { %414 = vmatmul.bf16.vlgmr.msra.gmra.mxu0 %v877_v8  ;;  %434 = vmatmul.bf16.vlgmr.msra.gmra.mxu1 %v881_v9 }
  0x2d   : > { %454 = vmatmul.bf16.vlgmr.msra.gmra.mxu2 %v885_v10  ;;  %474 = vmatmul.bf16.vlgmr.msra.gmra.mxu3 %v889_v11 }
  0x3c   : > { %419 = vmatmul.bf16.gmra.mxu0 %v878_v12  ;;  %439 = vmatmul.bf16.gmra.mxu1 %v882_v13 }
  0x3d   : > { %459 = vmatmul.bf16.gmra.mxu2 %v886_v14  ;;  %479 = vmatmul.bf16.gmra.mxu3 %v890_v15 }
  0x4c   : > { %424 = vmatmul.bf16.gmra.mxu0 %v879_v16  ;;  %444 = vmatmul.bf16.gmra.mxu1 %v883_v17 }
  0x4d   : > { %464 = vmatmul.bf16.gmra.mxu2 %v887_v18  ;;  %484 = vmatmul.bf16.gmra.mxu3 %v891_v19 }
  0x5c   : > { %429 = vmatmul.bf16.gmra.mxu0 %v880_v20  ;;  %449 = vmatmul.bf16.gmra.mxu1 %v884_v21 }
  0x5d   : > { %469 = vmatmul.bf16.gmra.mxu2 %v888_v22  ;;  %489 = vmatmul.bf16.gmra.mxu3 %v892_v23 }
  0xa9   : > { %v415_v24 = vpop.f32.mrf.mxu0  ;;  %v1161_v25 = vpop.f32.mrf.mxu1 }
  0xaa   : > { %v596_v57 = vmul.f32 %v415_v24, %v415_v24 }
  0xb0   : > { %v1163_v26 = vpop.f32.mrf.mxu2  ;;  %v1176_v31 = vpop.f32.mrf.mxu3 }
  0xb1   : > { %v417_v27 = vpop.f32.mrf.mxu0  ;;  %v1172_v28 = vpop.f32.mrf.mxu1 }
  0xb2   : > { %v904_v29 = vpack.c.bf16 %v417_v27, %v415_v24  ;;  %v924_v30 = vpack.c.bf16 %v1172_v28, %v1161_v25  ;;  %v597_v56 = vmul.f32 %v417_v27, %v417_v27  ;;  %v559_v59 = vadd.f32 %v417_v27, %v415_v24 }
  0xb3   : > { %v604_v27 = vmul.f32 %v1161_v25, %v1161_v25 }
  0xb4   : > { %905 = vst [vmem:[%s1170_s16] sm:$0xff] %v904_v29   ;;  %v628_v60 = vadd.f32 %v597_v56, %v596_v57 }
  0xb5   : > { %984 = vst [vmem:[%s1170_s16 + $0x20] sm:$0xff] %v924_v30  }
  0xb8   : > { %v1180_v32 = vpop.f32.mrf.mxu2  ;;  %v1186_v36 = vpop.f32.mrf.mxu3 }
  0xb9   : > { %v420_v33 = vpop.f32.mrf.mxu0  ;;  %v1182_v34 = vpop.f32.mrf.mxu1  ;;  %v944_v35 = vpack.c.bf16 %v1180_v32, %v1163_v26  ;;  %v964_v37 = vpack.c.bf16 %v1186_v36, %v1176_v31 }
  0xba   : > { %v598_v58 = vmul.f32 %v420_v33, %v420_v33  ;;  %v560_v62 = vadd.f32 %v559_v59, %v420_v33 }
  0xbb   : > { %988 = vst [vmem:[%s1170_s16 + $0x40] sm:$0xff] %v944_v35  }
  0xbc   : > { %992 = vst [vmem:[%s1170_s16 + $0x60] sm:$0xff] %v964_v37   ;;  %v629_v0 = vadd.f32 %v628_v60, %v598_v58 }
  0xc0   : > { %v1192_v38 = vpop.f32.mrf.mxu2  ;;  %v1198_v43 = vpop.f32.mrf.mxu3 }
  0xc1   : > { %v422_v39 = vpop.f32.mrf.mxu0  ;;  %v1194_v40 = vpop.f32.mrf.mxu1 }
  0xc2   : > { %v909_v41 = vpack.c.bf16 %v422_v39, %v420_v33  ;;  %v929_v42 = vpack.c.bf16 %v1194_v40, %v1182_v34  ;;  %v599_v61 = vmul.f32 %v422_v39, %v422_v39  ;;  %v561_v5 = vadd.f32 %v560_v62, %v422_v39 }
  0xc3   : > { %v605_v33 = vmul.f32 %v1172_v28, %v1172_v28  ;;  %v606_v39 = vmul.f32 %v1182_v34, %v1182_v34 }
  0xc4   : > { %981 = vst [vmem:[%s1170_s16 + $0x8] sm:$0xff] %v909_v41   ;;  %v630_v7 = vadd.f32 %v629_v0, %v599_v61 }
  0xc5   : > { %985 = vst [vmem:[%s1170_s16 + $0x28] sm:$0xff] %v929_v42  }
  0xc8   : > { %v1202_v44 = vpop.f32.mrf.mxu2  ;;  %v1208_v48 = vpop.f32.mrf.mxu3 }
  0xc9   : > { %v425_v45 = vpop.f32.mrf.mxu0  ;;  %v1204_v46 = vpop.f32.mrf.mxu1  ;;  %v949_v47 = vpack.c.bf16 %v1202_v44, %v1192_v38  ;;  %v969_v49 = vpack.c.bf16 %v1208_v48, %v1198_v43 }
  0xca   : > { %v600_v1 = vmul.f32 %v425_v45, %v425_v45  ;;  %v562_v10 = vadd.f32 %v561_v5, %v425_v45 }
  0xcb   : > { %989 = vst [vmem:[%s1170_s16 + $0x48] sm:$0xff] %v949_v47   ;;  %v607_v47 = vmul.f32 %v1194_v40, %v1194_v40 }
  0xcc   : > { %993 = vst [vmem:[%s1170_s16 + $0x68] sm:$0xff] %v969_v49   ;;  %v631_v11 = vadd.f32 %v630_v7, %v600_v1  ;;  %v1069_v1 = vmov 0.0  }
  0xcd   : > { %213 = vst [vmem:[%s1270_s20] sm:$0x3] %v1069_v1 }
  0xd0   : > { %v1214_v50 = vpop.f32.mrf.mxu2  ;;  %v1220_v55 = vpop.f32.mrf.mxu3 }
  0xd1   : > { %v427_v51 = vpop.f32.mrf.mxu0  ;;  %v1216_v52 = vpop.f32.mrf.mxu1 }
  0xd2   : > { %v914_v53 = vpack.c.bf16 %v427_v51, %v425_v45  ;;  %v934_v54 = vpack.c.bf16 %v1216_v52, %v1204_v46  ;;  %v601_v8 = vmul.f32 %v427_v51, %v427_v51  ;;  %v563_v13 = vadd.f32 %v562_v10, %v427_v51 }
  0xd3   : > { %v609_v57 = vmul.f32 %v1216_v52, %v1216_v52 }
  0xd4   : > { %982 = vst [vmem:[%s1170_s16 + $0x10] sm:$0xff] %v914_v53   ;;  %v632_v14 = vadd.f32 %v631_v11, %v601_v8  ;;  %v614_v8 = vmul.f32 %v1192_v38, %v1192_v38  ;;  %v615_v11 = vmul.f32 %v1202_v44, %v1202_v44 }
  0xd5   : > { %986 = vst [vmem:[%s1170_s16 + $0x30] sm:$0xff] %v934_v54  }
  0xd8   : > { %v1224_v63 = vpop.f32.mrf.mxu2  ;;  %v1228_v6 = vpop.f32.mrf.mxu3 }
  0xd9   : > { %v430_v2 = vpop.f32.mrf.mxu0  ;;  %v450_v3 = vpop.f32.mrf.mxu1  ;;  %v954_v4 = vpack.c.bf16 %v1224_v63, %v1214_v50  ;;  %v974_v9 = vpack.c.bf16 %v1228_v6, %v1220_v55 }
  0xda   : > { %v602_v12 = vmul.f32 %v430_v2, %v430_v2  ;;  %v564_v15 = vadd.f32 %v563_v13, %v430_v2  ;;  %v610_v60 = vmul.f32 %v450_v3, %v450_v3 }
  0xdb   : > { %990 = vst [vmem:[%s1170_s16 + $0x50] sm:$0xff] %v954_v4  }
  0xdc   : > { %994 = vst [vmem:[%s1170_s16 + $0x70] sm:$0xff] %v974_v9   ;;  %v633_v17 = vadd.f32 %v632_v14, %v602_v12 }
  0xe0   : > { %v1234_v16 = vpop.f32.mrf.mxu2  ;;  %v1236_v24 = vpop.f32.mrf.mxu3 }
  0xe1   : > { %v432_v18 = vpop.f32.mrf.mxu0  ;;  %v452_v19 = vpop.f32.mrf.mxu1 }
  0xe2   : > { %v919_v20 = vpack.c.bf16 %v432_v18, %v430_v2  ;;  %v565_v21 = vadd.f32 %v564_v15, %v432_v18  ;;  %v603_v22 = vmul.f32 %v432_v18, %v432_v18  ;;  %v939_v23 = vpack.c.bf16 %v452_v19, %v450_v3 }
  0xe3   : > { %v611_v0 = vmul.f32 %v452_v19, %v452_v19  ;;  %v612_v2 = vmul.f32 %v1163_v26, %v1163_v26 }
  0xe4   : > { %983 = vst [vmem:[%s1170_s16 + $0x18] sm:$0xff] %v919_v20   ;;  %v566_v29 = vadd.f32 %v565_v21, %v1161_v25  ;;  %v634_v30 = vadd.f32 %v633_v17, %v603_v22  ;;  %v617_v17 = vmul.f32 %v1224_v63, %v1224_v63  ;;  %v618_v20 = vmul.f32 %v1234_v16, %v1234_v16 }
  0xe5   : > { %987 = vst [vmem:[%s1170_s16 + $0x38] sm:$0xff] %v939_v23   ;;  %v620_v23 = vmul.f32 %v1176_v31, %v1176_v31 }
  0xe6   : > { %v567_v35 = vadd.f32 %v566_v29, %v1172_v28  ;;  %v635_v37 = vadd.f32 %v634_v30, %v604_v27  ;;  %v621_v29 = vmul.f32 %v1186_v36, %v1186_v36 }
  0xe8   : > { %v568_v41 = vadd.f32 %v567_v35, %v1182_v34  ;;  %v636_v42 = vadd.f32 %v635_v37, %v605_v33  ;;  %v472_v45 = vpop.f32.mrf.mxu2  ;;  %v1255_v53 = vpop.f32.mrf.mxu3  ;;  %v608_v34 = vmul.f32 %v1204_v46, %v1204_v46  ;;  %v622_v33 = vmul.f32 %v1198_v43, %v1198_v43 }
  0xe9   : > { %v959_v25 = vpack.c.bf16 %v472_v45, %v1234_v16  ;;  %v979_v28 = vpack.c.bf16 %v1255_v53, %v1236_v24  ;;  %v619_v22 = vmul.f32 %v472_v45, %v472_v45  ;;  %v623_v37 = vmul.f32 %v1208_v48, %v1208_v48 }
  0xea   : > { %v637_v49 = vadd.f32 %v636_v42, %v606_v39  ;;  %v569_v51 = vadd.f32 %v568_v41, %v1194_v40 }
  0xeb   : > { %991 = vst [vmem:[%s1170_s16 + $0x58] sm:$0xff] %v959_v25   ;;  %v625_v25 = vmul.f32 %v1228_v6, %v1228_v6 }
  0xec   : > { %v570_v54 = vadd.f32 %v569_v51, %v1204_v46  ;;  %v638_v56 = vadd.f32 %v637_v49, %v607_v47  ;;  %995 = vst [vmem:[%s1170_s16 + $0x78] sm:$0xff] %v979_v28   ;;  %v626_v51 = vmul.f32 %v1236_v24, %v1236_v24 }
  0xee   : > { %v571_v58 = vadd.f32 %v570_v54, %v1216_v52  ;;  %v639_v40 = vadd.f32 %v638_v56, %v608_v34 }
  0xf0   : > { %v572_v59 = vadd.f32 %v571_v58, %v450_v3  ;;  %v640_v61 = vadd.f32 %v639_v40, %v609_v57  ;;  %v613_v3 = vmul.f32 %v1180_v32, %v1180_v32 }
  0xf2   : > { %v641_v62 = vadd.f32 %v640_v61, %v610_v60  ;;  %v573_v46 = vadd.f32 %v572_v59, %v452_v19 }
  0xf4   : > { %v574_v52 = vadd.f32 %v573_v46, %v1163_v26  ;;  %v642_v4 = vadd.f32 %v641_v62, %v611_v0  ;;  %v616_v26 = vmul.f32 %v1214_v50, %v1214_v50  ;;  %v665_v0 = vld [vmem:[%s1270_s20] sm:$0x3] }
  0xf6   : > { %v575_v5 = vadd.f32 %v574_v52, %v1180_v32  ;;  %v643_v7 = vadd.f32 %v642_v4, %v612_v2 }
  0xf8   : > { %v576_v9 = vadd.f32 %v575_v5, %v1192_v38  ;;  %v644_v10 = vadd.f32 %v643_v7, %v613_v3 }
  0xfa   : > { %v645_v12 = vadd.f32 %v644_v10, %v614_v8  ;;  %v577_v13 = vadd.f32 %v576_v9, %v1202_v44 }
  0xfc   : > { %v578_v14 = vadd.f32 %v577_v13, %v1214_v50  ;;  %v646_v15 = vadd.f32 %v645_v12, %v615_v11 }
  0xfe   : > { %v579_v32 = vadd.f32 %v578_v14, %v1224_v63  ;;  %v647_v18 = vadd.f32 %v646_v15, %v616_v26 }
 0x100   : > { %v648_v38 = vadd.f32 %v647_v18, %v617_v17  ;;  %v580_v19 = vadd.f32 %v579_v32, %v1234_v16 }
 0x102   : > { %v649_v21 = vadd.f32 %v648_v38, %v618_v20  ;;  %v581_v44 = vadd.f32 %v580_v19, %v472_v45 }
 0x104   : > { %v582_v50 = vadd.f32 %v581_v44, %v1176_v31  ;;  %v650_v27 = vadd.f32 %v649_v21, %v619_v22  ;;  %v624_v31 = vmul.f32 %v1220_v55, %v1220_v55 }
 0x106   : > { %v583_v63 = vadd.f32 %v582_v50, %v1186_v36  ;;  %v651_v30 = vadd.f32 %v650_v27, %v620_v23 }
 0x108   : > { %v584_v16 = vadd.f32 %v583_v63, %v1198_v43  ;;  %v652_v35 = vadd.f32 %v651_v30, %v621_v29 }
 0x10a   : > { %v653_v39 = vadd.f32 %v652_v35, %v622_v33  ;;  %v585_v41 = vadd.f32 %v584_v16, %v1208_v48 }
 0x10c   : > { %v586_v42 = vadd.f32 %v585_v41, %v1220_v55  ;;  %v654_v45 = vadd.f32 %v653_v39, %v623_v37  ;;  %v627_v55 = vmul.f32 %v1255_v53, %v1255_v53 }
 0x10e   : > { %v587_v36 = vadd.f32 %v586_v42, %v1228_v6  ;;  %v655_v47 = vadd.f32 %v654_v45, %v624_v31 }
 0x110   : > { %v656_v43 = vadd.f32 %v655_v47, %v625_v25  ;;  %v588_v49 = vadd.f32 %v587_v36, %v1236_v24 }
 0x112   : > { %v657_v28 = vadd.f32 %v656_v43, %v626_v51  ;;  %v589_v48 = vadd.f32 %v588_v49, %v1255_v53 }
 0x114   : > { %v590_v34 = vrot.slane %v589_v48, 4  ;;  %v658_v54 = vadd.f32 %v657_v28, %v627_v55 }
 0x116   : > { %v591_v56 = vadd.f32 %v590_v34, %v589_v48  ;;  %v659_v57 = vrot.slane %v658_v54, 4 }
 0x118   : > { %v592_v6 = vrot.slane %v591_v56, 2  ;;  %v660_v58 = vadd.f32 %v659_v57, %v658_v54 }
 0x11a   : > { %v593_v40 = vadd.f32 %v592_v6, %v591_v56  ;;  %v661_v59 = vrot.slane %v660_v58, 2 }
 0x11c   : > { %v594_v60 = vrot.slane %v593_v40, 1  ;;  %v662_v61 = vadd.f32 %v661_v59, %v660_v58 }
 0x11e   : > { %v663_v62 = vrot.slane %v662_v61, 1  ;;  %v595_v24 = vadd.f32 %v594_v60, %v593_v40 }
 0x120   : > { %v664_v46 = vadd.f32 %v663_v62, %v662_v61 }
 0x122   : > { %v667_v1 = vsel %vm666_vm0, %v595_v24, %v664_v46 }
 0x123   : > { %v668_v2 = vadd.f32 %v667_v1, %v665_v0 }
 0x125   : > { %669 = vst [vmem:[%s1270_s20] sm:$0x3] %v668_v2 }
 0x126 PF: > { %s14_s14 = sadd.s32 1, %s1067_s14   ;;  %s1333_s12 = smov %s1063_s13 }
 0x127   : > { %p11_p6 = scmp.ge.s32.totalorder %s14_s14, 4   ;;  %s1334_s13 = smov %s1336_s15 }
 0x129   :  { %13 = sbr.rel (!%p11_p6) target bundleno = 2 (0x2), region = 74 }

// kernel: discriminator_forward.10
= control target key start
LH: loop header
LB: loop body
LE: loop exit
PB: predicated region body
PF: predicated region fallthrough
CT: control target
= control target key end

     0   :  { %s787_s17 = smov 0   ;;  %s956_s0 = inlined_call_operand.vmem [shape: bf16[512,128], index: 0, kind: input, shape index: {}]   ;;  %s957_s1 = inlined_call_operand.vmem [shape: f32[1,128], index: 1, kind: input, shape index: {}]   ;;  %s958_s2 = inlined_call_operand.vmem [shape: f32[1,128], index: 2, kind: input, shape index: {}]   ;;  %s959_s3 = inlined_call_operand.<no memory space> [shape: f32[1], index: 3, kind: input, shape index: {}]   ;;  %s960_s4 = inlined_call_operand.vmem [shape: bf16[512,128], index: 4, kind: output, shape index: {}]  }
   0x1   :  { %9 = sst [smem:[#allocation2]] %s959_s3 }
   0x2 LB: > { %s556_s18 = sadd.s32 4294967295, %s757_s17   ;;  %p560_p0 = scmp.ge.s32.totalorder %s757_s17, 1  ;;  %s757_s17 = sphi %s787_s17, %s15_s17  }
   0x3   : > { %p164_p1 = scmp.lt.s32.totalorder %s757_s17, 3 }
   0x5   : > { %p165_p2 = pnand %p560_p0, %p164_p1 }
   0x6   : > { %s561_s19 = sshll.u32 (!%p165_p2), %s556_s18, 5  ;;  %s338_s20 = sld [smem:[#allocation2]] (!%p165_p2) }
   0x7   : > { %168 = sbr.rel (%p165_p2) target bundleno = 74 (0x4a), region = 36  ;;  %p191_p3 = scmp.lt.s32.totalorder (!%p165_p2), %s561_s19, 63 }
   0xc   : > { %s962_s19 = smov (!%p191_p3, %s561_s19), 63  ;;  %v808_v0 = vld [vmem:[%s957_s1] ss:$0 sm:$0xff]  ;;  %v818_v7 = vstv %s338_s20 }
   0xd   : > { %s562_s3 = sshll.u32 %s962_s19, 2  ;;  %v816_v6 = vld [vmem:[%s958_s2] ss:$0 sm:$0xff] }
   0xe   : > { %s803_s23 = scalar_lea.vmem %s956_s0, %s562_s3  ;;  %s845_s30 = scalar_lea.vmem %s960_s4, %s562_s3 }
   0xf   : > { %v568_v1 = vld [vmem:[%s803_s23] sm:$0xff]   ;;  %v711_v2 = vld [vmem:[%s803_s23 + $0x8] sm:$0xff]   ;;  %v712_v3 = vld [vmem:[%s803_s23 + $0x10] sm:$0xff]  }
  0x10   : > { %v569_v4 = vunpack.c.l.bf16 %v568_v1  ;;  %v570_v5 = vunpack.c.h.bf16 %v568_v1  ;;  %v573_v8 = vunpack.c.l.bf16 %v711_v2  ;;  %v713_v9 = vld [vmem:[%s803_s23 + $0x18] sm:$0xff]   ;;  %v574_v10 = vunpack.c.h.bf16 %v711_v2  ;;  %v714_v36 = vld [vmem:[%s803_s23 + $0x20] sm:$0xff]   ;;  %v715_v41 = vld [vmem:[%s803_s23 + $0x28] sm:$0xff]  }
  0x11   : > { %v577_v11 = vunpack.c.l.bf16 %v712_v3  ;;  %v578_v12 = vunpack.c.h.bf16 %v712_v3  ;;  %v581_v13 = vunpack.c.l.bf16 %v713_v9  ;;  %v582_v17 = vunpack.c.h.bf16 %v713_v9  ;;  %v716_v49 = vld [vmem:[%s803_s23 + $0x30] sm:$0xff]   ;;  %v717_v57 = vld [vmem:[%s803_s23 + $0x38] sm:$0xff]  }
  0x12   : > { %v270_v14 = vmul.f32 %v808_v0, %v569_v4  ;;  %v271_v15 = vmul.f32 %v808_v0, %v570_v5  ;;  %v272_v16 = vmul.f32 %v808_v0, %v573_v8  ;;  %v273_v18 = vmul.f32 %v808_v0, %v574_v10 }
  0x13   : > { %v274_v19 = vmul.f32 %v808_v0, %v577_v11  ;;  %v275_v20 = vmul.f32 %v808_v0, %v578_v12  ;;  %v276_v21 = vmul.f32 %v808_v0, %v581_v13  ;;  %v277_v25 = vmul.f32 %v808_v0, %v582_v17 }
  0x14   : > { %v306_v22 = vadd.f32 %v816_v6, %v270_v14  ;;  %v307_v23 = vadd.f32 %v816_v6, %v271_v15  ;;  %v308_v24 = vadd.f32 %v816_v6, %v272_v16  ;;  %v309_v26 = vadd.f32 %v816_v6, %v273_v18  ;;  %v718_v18 = vld [vmem:[%s803_s23 + $0x40] sm:$0xff]  }
  0x15   : > { %v310_v27 = vadd.f32 %v816_v6, %v274_v19  ;;  %v311_v28 = vadd.f32 %v816_v6, %v275_v20  ;;  %v312_v29 = vadd.f32 %v816_v6, %v276_v21  ;;  %v313_v44 = vadd.f32 %v816_v6, %v277_v25 }
  0x16   : > { %vm339_vm0 = vcmp.ge.f32.partialorder %v306_v22, 0.0  ;;  %vm340_vm1 = vcmp.ge.f32.partialorder %v307_v23, 0.0  ;;  %v372_v30 = vmul.f32 %v818_v7, %v306_v22  ;;  %v373_v31 = vmul.f32 %v818_v7, %v307_v23 }
  0x17   : > { %vm341_vm2 = vcmp.ge.f32.partialorder %v308_v24, 0.0  ;;  %vm342_vm3 = vcmp.ge.f32.partialorder %v309_v26, 0.0  ;;  %v374_v32 = vmul.f32 %v818_v7, %v308_v24  ;;  %v375_v33 = vmul.f32 %v818_v7, %v309_v26 }
  0x18   : > { %v404_v34 = vsel %vm339_vm0, %v306_v22, %v372_v30  ;;  %v405_v35 = vsel %vm340_vm1, %v307_v23, %v373_v31  ;;  %vm343_vm4 = vcmp.ge.f32.partialorder %v310_v27, 0.0  ;;  %vm344_vm5 = vcmp.ge.f32.partialorder %v311_v28, 0.0  ;;  %v720_v30 = vld [vmem:[%s803_s23 + $0x50] sm:$0xff]  }
  0x19   : > { %v634_v37 = vpack.c.bf16 %v405_v35, %v404_v34  ;;  %v406_v38 = vsel %vm341_vm2, %v308_v24, %v374_v32  ;;  %v407_v39 = vsel %vm342_vm3, %v309_v26, %v375_v33  ;;  %v376_v40 = vmul.f32 %v818_v7, %v310_v27 }
  0x1a   : > { %v639_v42 = vpack.c.bf16 %v407_v39, %v406_v38  ;;  %v377_v43 = vmul.f32 %v818_v7, %v311_v28  ;;  %vm345_vm6 = vcmp.ge.f32.partialorder %v312_v29, 0.0  ;;  %v378_v46 = vmul.f32 %v818_v7, %v312_v29 }
  0x1b   : > { %635 = vst [vmem:[%s845_s30] sm:$0xff] %v634_v37   ;;  %v408_v45 = vsel %vm343_vm4, %v310_v27, %v376_v40  ;;  %v585_v47 = vunpack.c.l.bf16 %v714_v36  ;;  %v586_v48 = vunpack.c.h.bf16 %v714_v36  ;;  %vm346_vm7 = vcmp.ge.f32.partialorder %v313_v44, 0.0 }
  0x1c   : > { %726 = vst [vmem:[%s845_s30 + $0x8] sm:$0xff] %v639_v42   ;;  %v409_v50 = vsel %vm344_vm5, %v311_v28, %v377_v43  ;;  %v379_v51 = vmul.f32 %v818_v7, %v313_v44  ;;  %v589_v52 = vunpack.c.l.bf16 %v715_v41  ;;  %v410_v54 = vsel %vm345_vm6, %v312_v29, %v378_v46  ;;  %v719_v29 = vld [vmem:[%s803_s23 + $0x48] sm:$0xff]  }
  0x1d   : > { %v644_v53 = vpack.c.bf16 %v409_v50, %v408_v45  ;;  %v278_v55 = vmul.f32 %v808_v0, %v585_v47  ;;  %v279_v56 = vmul.f32 %v808_v0, %v586_v48  ;;  %v590_v59 = vunpack.c.h.bf16 %v715_v41 }
  0x1e   : > { %v411_v58 = vsel %vm346_vm7, %v313_v44, %v379_v51  ;;  %v280_v60 = vmul.f32 %v808_v0, %v589_v52  ;;  %v593_v61 = vunpack.c.l.bf16 %v716_v49  ;;  %v594_v2 = vunpack.c.h.bf16 %v716_v49  ;;  %v721_v52 = vld [vmem:[%s803_s23 + $0x58] sm:$0xff]  }
  0x1f   : > { %727 = vst [vmem:[%s845_s30 + $0x10] sm:$0xff] %v644_v53   ;;  %v649_v62 = vpack.c.bf16 %v411_v58, %v410_v54  ;;  %v314_v63 = vadd.f32 %v816_v6, %v278_v55  ;;  %v315_v1 = vadd.f32 %v816_v6, %v279_v56  ;;  %v281_v3 = vmul.f32 %v808_v0, %v590_v59 }
  0x20   : > { %v316_v4 = vadd.f32 %v816_v6, %v280_v60  ;;  %v282_v5 = vmul.f32 %v808_v0, %v593_v61  ;;  %v597_v8 = vunpack.c.l.bf16 %v717_v57  ;;  %v283_v13 = vmul.f32 %v808_v0, %v594_v2  ;;  %v722_v2 = vld [vmem:[%s803_s23 + $0x60] sm:$0xff]  }
  0x21   : > { %728 = vst [vmem:[%s845_s30 + $0x18] sm:$0xff] %v649_v62   ;;  %vm347_vm8 = vcmp.ge.f32.partialorder %v314_v63, 0.0  ;;  %vm348_vm9 = vcmp.ge.f32.partialorder %v315_v1, 0.0  ;;  %v380_v9 = vmul.f32 %v818_v7, %v314_v63  ;;  %v381_v10 = vmul.f32 %v818_v7, %v315_v1 }
  0x22   : > { %v317_v11 = vadd.f32 %v816_v6, %v281_v3  ;;  %vm349_vm10 = vcmp.ge.f32.partialorder %v316_v4, 0.0  ;;  %v382_v12 = vmul.f32 %v818_v7, %v316_v4  ;;  %v318_v16 = vadd.f32 %v816_v6, %v282_v5 }
  0x23   : > { %v412_v14 = vsel %vm347_vm8, %v314_v63, %v380_v9  ;;  %v413_v15 = vsel %vm348_vm9, %v315_v1, %v381_v10  ;;  %v598_v17 = vunpack.c.h.bf16 %v717_v57  ;;  %v319_v22 = vadd.f32 %v816_v6, %v283_v13 }
  0x24   : > { %v654_v19 = vpack.c.bf16 %v413_v15, %v412_v14  ;;  %vm350_vm11 = vcmp.ge.f32.partialorder %v317_v11, 0.0  ;;  %v383_v20 = vmul.f32 %v818_v7, %v317_v11  ;;  %v414_v21 = vsel %vm349_vm10, %v316_v4, %v382_v12  ;;  %v723_v12 = vld [vmem:[%s803_s23 + $0x68] sm:$0xff]  }
  0x25   : > { %vm351_vm12 = vcmp.ge.f32.partialorder %v318_v16, 0.0  ;;  %v384_v23 = vmul.f32 %v818_v7, %v318_v16  ;;  %v284_v24 = vmul.f32 %v808_v0, %v597_v8  ;;  %v285_v26 = vmul.f32 %v808_v0, %v598_v17 }
  0x26   : > { %729 = vst [vmem:[%s845_s30 + $0x20] sm:$0xff] %v654_v19   ;;  %v415_v25 = vsel %vm350_vm11, %v317_v11, %v383_v20  ;;  %v601_v27 = vunpack.c.l.bf16 %v718_v18  ;;  %v602_v28 = vunpack.c.h.bf16 %v718_v18  ;;  %vm352_vm13 = vcmp.ge.f32.partialorder %v319_v22, 0.0 }
  0x27   : > { %v659_v31 = vpack.c.bf16 %v415_v25, %v414_v21  ;;  %v385_v32 = vmul.f32 %v818_v7, %v319_v22  ;;  %v416_v33 = vsel %vm351_vm12, %v318_v16, %v384_v23  ;;  %v320_v34 = vadd.f32 %v816_v6, %v284_v24  ;;  %v724_v24 = vld [vmem:[%s803_s23 + $0x70] sm:$0xff]  }
  0x28   : > { %v321_v35 = vadd.f32 %v816_v6, %v285_v26  ;;  %v286_v36 = vmul.f32 %v808_v0, %v601_v27  ;;  %v287_v37 = vmul.f32 %v808_v0, %v602_v28  ;;  %v605_v39 = vunpack.c.l.bf16 %v719_v29 }
  0x29   : > { %730 = vst [vmem:[%s845_s30 + $0x28] sm:$0xff] %v659_v31   ;;  %v417_v38 = vsel %vm352_vm13, %v319_v22, %v385_v32  ;;  %v606_v40 = vunpack.c.h.bf16 %v719_v29  ;;  %v609_v41 = vunpack.c.l.bf16 %v720_v30  ;;  %vm353_vm14 = vcmp.ge.f32.partialorder %v320_v34, 0.0 }
  0x2a   : > { %v664_v42 = vpack.c.bf16 %v417_v38, %v416_v33  ;;  %vm354_vm15 = vcmp.ge.f32.partialorder %v321_v35, 0.0  ;;  %v386_v43 = vmul.f32 %v818_v7, %v320_v34  ;;  %v387_v44 = vmul.f32 %v818_v7, %v321_v35 }
  0x2b   : > { %v322_v45 = vadd.f32 %v816_v6, %v286_v36  ;;  %v323_v46 = vadd.f32 %v816_v6, %v287_v37  ;;  %v288_v47 = vmul.f32 %v808_v0, %v605_v39  ;;  %v289_v49 = vmul.f32 %v808_v0, %v606_v40 }
  0x2c   : > { %731 = vst [vmem:[%s845_s30 + $0x30] sm:$0xff] %v664_v42   ;;  %v418_v48 = vsel %vm353_vm14, %v320_v34, %v386_v43  ;;  %v610_v50 = vunpack.c.h.bf16 %v720_v30  ;;  %v290_v51 = vmul.f32 %v808_v0, %v609_v41  ;;  %v419_v53 = vsel %vm354_vm15, %v321_v35, %v387_v44  ;;  %v725_v42 = vld [vmem:[%s803_s23 + $0x78] sm:$0xff]  }
  0x2d   : > { %vm355_vm0 = vcmp.ge.f32.partialorder %v322_v45, 0.0  ;;  %vm356_vm1 = vcmp.ge.f32.partialorder %v323_v46, 0.0  ;;  %v388_v54 = vmul.f32 %v818_v7, %v322_v45  ;;  %v669_v55 = vpack.c.bf16 %v419_v53, %v418_v48 }
  0x2e   : > { %v389_v56 = vmul.f32 %v818_v7, %v323_v46  ;;  %v324_v57 = vadd.f32 %v816_v6, %v288_v47  ;;  %v325_v58 = vadd.f32 %v816_v6, %v289_v49  ;;  %v291_v60 = vmul.f32 %v808_v0, %v610_v50 }
  0x2f   : > { %v420_v59 = vsel %vm355_vm0, %v322_v45, %v388_v54  ;;  %v326_v61 = vadd.f32 %v816_v6, %v290_v51  ;;  %v613_v62 = vunpack.c.l.bf16 %v721_v52  ;;  %732 = vst [vmem:[%s845_s30 + $0x38] sm:$0xff] %v669_v55   ;;  %v614_v10 = vunpack.c.h.bf16 %v721_v52 }
  0x30   : > { %v421_v63 = vsel %vm356_vm1, %v323_v46, %v389_v56  ;;  %vm357_vm2 = vcmp.ge.f32.partialorder %v324_v57, 0.0  ;;  %vm358_vm3 = vcmp.ge.f32.partialorder %v325_v58, 0.0  ;;  %v390_v1 = vmul.f32 %v818_v7, %v324_v57 }
  0x31   : > { %v674_v3 = vpack.c.bf16 %v421_v63, %v420_v59  ;;  %v391_v4 = vmul.f32 %v818_v7, %v325_v58  ;;  %v327_v5 = vadd.f32 %v816_v6, %v291_v60  ;;  %vm359_vm4 = vcmp.ge.f32.partialorder %v326_v61, 0.0 }
  0x32   : > { %v422_v8 = vsel %vm357_vm2, %v324_v57, %v390_v1  ;;  %v392_v9 = vmul.f32 %v818_v7, %v326_v61  ;;  %v292_v11 = vmul.f32 %v808_v0, %v613_v62  ;;  %v617_v15 = vunpack.c.l.bf16 %v722_v2 }
  0x33   : > { %733 = vst [vmem:[%s845_s30 + $0x40] sm:$0xff] %v674_v3   ;;  %v423_v13 = vsel %vm358_vm3, %v325_v58, %v391_v4  ;;  %vm360_vm5 = vcmp.ge.f32.partialorder %v327_v5, 0.0  ;;  %v393_v14 = vmul.f32 %v818_v7, %v327_v5  ;;  %v293_v18 = vmul.f32 %v808_v0, %v614_v10 }
  0x34   : > { %v679_v16 = vpack.c.bf16 %v423_v13, %v422_v8  ;;  %v424_v17 = vsel %vm359_vm4, %v326_v61, %v392_v9  ;;  %v328_v19 = vadd.f32 %v816_v6, %v292_v11  ;;  %v618_v21 = vunpack.c.h.bf16 %v722_v2 }
  0x35   : > { %v425_v20 = vsel %vm360_vm5, %v327_v5, %v393_v14  ;;  %v294_v22 = vmul.f32 %v808_v0, %v617_v15  ;;  %v621_v23 = vunpack.c.l.bf16 %v723_v12  ;;  %v329_v26 = vadd.f32 %v816_v6, %v293_v18 }
  0x36   : > { %734 = vst [vmem:[%s845_s30 + $0x48] sm:$0xff] %v679_v16   ;;  %v684_v25 = vpack.c.bf16 %v425_v20, %v424_v17  ;;  %vm361_vm6 = vcmp.ge.f32.partialorder %v328_v19, 0.0  ;;  %v394_v27 = vmul.f32 %v818_v7, %v328_v19  ;;  %v295_v28 = vmul.f32 %v808_v0, %v618_v21 }
  0x37   : > { %v330_v29 = vadd.f32 %v816_v6, %v294_v22  ;;  %v622_v30 = vunpack.c.h.bf16 %v723_v12  ;;  %v296_v31 = vmul.f32 %v808_v0, %v621_v23  ;;  %vm362_vm7 = vcmp.ge.f32.partialorder %v329_v26, 0.0 }
  0x38   : > { %735 = vst [vmem:[%s845_s30 + $0x50] sm:$0xff] %v684_v25   ;;  %v395_v32 = vmul.f32 %v818_v7, %v329_v26  ;;  %v426_v33 = vsel %vm361_vm6, %v328_v19, %v394_v27  ;;  %v625_v34 = vunpack.c.l.bf16 %v724_v24  ;;  %v331_v35 = vadd.f32 %v816_v6, %v295_v28 }
  0x39   : > { %vm363_vm8 = vcmp.ge.f32.partialorder %v330_v29, 0.0  ;;  %v396_v36 = vmul.f32 %v818_v7, %v330_v29  ;;  %v297_v37 = vmul.f32 %v808_v0, %v622_v30  ;;  %v332_v39 = vadd.f32 %v816_v6, %v296_v31 }
  0x3a   : > { %v427_v38 = vsel %vm362_vm7, %v329_v26, %v395_v32  ;;  %v626_v40 = vunpack.c.h.bf16 %v724_v24  ;;  %v298_v41 = vmul.f32 %v808_v0, %v625_v34  ;;  %vm364_vm9 = vcmp.ge.f32.partialorder %v331_v35, 0.0 }
  0x3b   : > { %v689_v43 = vpack.c.bf16 %v427_v38, %v426_v33  ;;  %v397_v44 = vmul.f32 %v818_v7, %v331_v35  ;;  %v428_v45 = vsel %vm363_vm8, %v330_v29, %v396_v36  ;;  %v333_v46 = vadd.f32 %v816_v6, %v297_v37 }
  0x3c   : > { %vm365_vm10 = vcmp.ge.f32.partialorder %v332_v39, 0.0  ;;  %v398_v47 = vmul.f32 %v818_v7, %v332_v39  ;;  %v299_v48 = vmul.f32 %v808_v0, %v626_v40  ;;  %v334_v50 = vadd.f32 %v816_v6, %v298_v41 }
  0x3d   : > { %736 = vst [vmem:[%s845_s30 + $0x58] sm:$0xff] %v689_v43   ;;  %v429_v49 = vsel %vm364_vm9, %v331_v35, %v397_v44  ;;  %v629_v51 = vunpack.c.l.bf16 %v725_v42  ;;  %v630_v52 = vunpack.c.h.bf16 %v725_v42  ;;  %vm366_vm11 = vcmp.ge.f32.partialorder %v333_v46, 0.0 }
  0x3e   : > { %v694_v53 = vpack.c.bf16 %v429_v49, %v428_v45  ;;  %v399_v54 = vmul.f32 %v818_v7, %v333_v46  ;;  %v430_v55 = vsel %vm365_vm10, %v332_v39, %v398_v47  ;;  %v335_v56 = vadd.f32 %v816_v6, %v299_v48 }
  0x3f   : > { %vm367_vm12 = vcmp.ge.f32.partialorder %v334_v50, 0.0  ;;  %v400_v57 = vmul.f32 %v818_v7, %v334_v50  ;;  %v300_v58 = vmul.f32 %v808_v0, %v629_v51  ;;  %v301_v60 = vmul.f32 %v808_v0, %v630_v52 }
  0x40   : > { %737 = vst [vmem:[%s845_s30 + $0x60] sm:$0xff] %v694_v53   ;;  %v431_v59 = vsel %vm366_vm11, %v333_v46, %v399_v54  ;;  %vm368_vm13 = vcmp.ge.f32.partialorder %v335_v56, 0.0  ;;  %v401_v62 = vmul.f32 %v818_v7, %v335_v56 }
  0x41   : > { %v699_v61 = vpack.c.bf16 %v431_v59, %v430_v55  ;;  %v432_v63 = vsel %vm367_vm12, %v334_v50, %v400_v57  ;;  %v336_v1 = vadd.f32 %v816_v6, %v300_v58  ;;  %v337_v2 = vadd.f32 %v816_v6, %v301_v60 }
  0x42   : > { %v433_v3 = vsel %vm368_vm13, %v335_v56, %v401_v62 }
  0x43   : > { %738 = vst [vmem:[%s845_s30 + $0x68] sm:$0xff] %v699_v61   ;;  %v704_v4 = vpack.c.bf16 %v433_v3, %v432_v63  ;;  %vm369_vm14 = vcmp.ge.f32.partialorder %v336_v1, 0.0  ;;  %vm370_vm15 = vcmp.ge.f32.partialorder %v337_v2, 0.0  ;;  %v402_v5 = vmul.f32 %v818_v7, %v336_v1 }
  0x44   : > { %v403_v8 = vmul.f32 %v818_v7, %v337_v2 }
  0x45   : > { %739 = vst [vmem:[%s845_s30 + $0x70] sm:$0xff] %v704_v4   ;;  %v434_v0 = vsel %vm369_vm14, %v336_v1, %v402_v5 }
  0x46   : > { %v435_v9 = vsel %vm370_vm15, %v337_v2, %v403_v8 }
  0x47   : > { %v709_v10 = vpack.c.bf16 %v435_v9, %v434_v0 }
  0x49   : > { %740 = vst [vmem:[%s845_s30 + $0x78] sm:$0xff] %v709_v10  }
  0x4a PF: > { %s15_s17 = sadd.s32 1, %s757_s17  }
  0x4b   : > { %p12_p4 = scmp.ge.s32.totalorder %s15_s17, 4  }
  0x4d   :  { %14 = sbr.rel (!%p12_p4) target bundleno = 2 (0x2), region = 66 }

// kernel: discriminator_forward.11
= control target key start
LH: loop header
LB: loop body
LE: loop exit
PB: predicated region body
PF: predicated region fallthrough
CT: control target
= control target key end

     0   :  { %s848_s12 = smov 0   ;;  %s850_s13 = smov 0   ;;  %s970_s0 = inlined_call_operand.vmem [shape: bf16[128,256], index: 0, kind: input, shape index: {}]   ;;  %s971_s1 = inlined_call_operand.vmem [shape: bf16[256,128], index: 1, kind: input, shape index: {}]   ;;  %s972_s2 = inlined_call_operand.vmem [shape: bf16[128,128], index: 2, kind: output, shape index: {0}]   ;;  %s973_s3 = inlined_call_operand.vmem [shape: f32[2,2,128], index: 3, kind: output, shape index: {1}]  }
   0x1   :  { %s852_s14 = smov 0  }
   0x2 LB: > { %s26_s15 = sadd.s32 1, %s821_s13  ;;  %p609_p0 = scmp.ge.s32.totalorder %s825_s14, 1  ;;  %s825_s14 = sphi %s852_s14, %s14_s14   ;;  %s821_s13 = sphi %s850_s13, %s975_s13   ;;  %s817_s12 = sphi %s848_s12, %s974_s12  }
   0x3   : > { %p28_p1 = scmp.ge.s32.totalorder %s26_s15, 2  ;;  %p160_p2 = scmp.lt.s32.totalorder %s825_s14, 3 }
   0x5   : > { %s977_s15 = smov (%p28_p1, %s26_s15), 0  ;;  %p161_p3 = pnand %p609_p0, %p160_p2 }
   0x6   : > { %s610_s28 = sshll.u32 (!%p161_p3), %s817_s12, 3  ;;  %p208_p5 = scmp.lt.s32.totalorder (!%p161_p3), %s817_s12, 1 }
   0x7   : > { %164 = sbr.rel (%p161_p3) target bundleno = 225 (0xe1), region = 28  ;;  %p193_p4 = scmp.lt.s32.totalorder (!%p161_p3), %s610_s28, 15 }
   0xc   : > { %v730_v0 = vld [vmem:[%s971_s1 + $0x38] sm:$0xff]  ;;  %v729_v2 = vld [vmem:[%s971_s1 + $0x30] sm:$0xff]  ;;  %v728_v4 = vld [vmem:[%s971_s1 + $0x28] sm:$0xff]  ;;  %s979_s28 = smov (!%p193_p4, %s610_s28), 15  ;;  %s981_s12 = smov (!%p208_p5, %s817_s12), 1  ;;  %v827_v42 = vmov 0.0  }
   0xd   : > { %v738_v1 = vld [vmem:[%s971_s1 + $0x78] sm:$0xff]  ;;  %393 = vmatpush.bf16.msra.mxu0 %v730_v0  ;;  %762 = vmatpush.bf16.msra.mxu2 %v730_v0  ;;  %v737_v3 = vld [vmem:[%s971_s1 + $0x70] sm:$0xff]  ;;  %v736_v5 = vld [vmem:[%s971_s1 + $0x68] sm:$0xff]  ;;  %s714_s18 = sshll.u32 %s979_s28, 3  ;;  %s615_s4 = sshll.u32 %s981_s12, 1  ;;  %vm502_vm0 = vcmask 1040384  }
   0xe   : > { %422 = vmatpush.bf16.msra.mxu1 %v738_v1  ;;  %770 = vmatpush.bf16.msra.mxu3 %v738_v1  ;;  %v727_v6 = vld [vmem:[%s971_s1 + $0x20] sm:$0xff]  ;;  %v726_v8 = vld [vmem:[%s971_s1 + $0x18] sm:$0xff]  ;;  %v725_v10 = vld [vmem:[%s971_s1 + $0x10] sm:$0xff]  ;;  %s914_s23 = scalar_lea.vmem %s970_s0, %s714_s18  ;;  %s946_s7 = scalar_lea.vmem %s973_s3, %s615_s4 }
   0xf   : > { %v735_v7 = vld [vmem:[%s971_s1 + $0x60] sm:$0xff]  ;;  %v734_v9 = vld [vmem:[%s971_s1 + $0x58] sm:$0xff]  ;;  %v733_v11 = vld [vmem:[%s971_s1 + $0x50] sm:$0xff]  ;;  %216 = vst [vmem:[%s946_s7] sm:$0x3] %v827_v42  ;;  %s614_s8 = sshll.u32 %s979_s28, 2 }
  0x10   : > { %v724_v12 = vld [vmem:[%s971_s1 + $0x8] sm:$0xff]  ;;  %v723_v14 = vld [vmem:[%s971_s1] sm:$0xff]  ;;  %v626_v28 = vld [vmem:[%s914_s23 + $0x10] sm:$0xf]  ;;  %s953_s12 = scalar_lea.vmem %s972_s2, %s614_s8 }
  0x11   : > { %394 = vmatpush.bf16.msra.mxu0 %v729_v2  ;;  %763 = vmatpush.bf16.msra.mxu2 %v729_v2  ;;  %v732_v13 = vld [vmem:[%s971_s1 + $0x48] sm:$0xff]  ;;  %v731_v15 = vld [vmem:[%s971_s1 + $0x40] sm:$0xff]  ;;  %v718_v29 = vld [vmem:[%s914_s23 + $0x14] sm:$0xf0] }
  0x12   : > { %423 = vmatpush.bf16.msra.mxu1 %v737_v3  ;;  %771 = vmatpush.bf16.msra.mxu3 %v737_v3  ;;  %v618_v16 = vld [vmem:[%s914_s23] sm:$0xf]  ;;  %v716_v17 = vld [vmem:[%s914_s23 + $0x4] sm:$0xf0]  ;;  %v715_v20 = vld [vmem:[%s914_s23 + $0x4] sm:$0xf]  ;;  %v627_v36 = vor.u32 %v718_v29, %v626_v28 }
  0x13   : > { %v634_v18 = vld [vmem:[%s914_s23 + $0x20] sm:$0xf]  ;;  %v720_v19 = vld [vmem:[%s914_s23 + $0x24] sm:$0xf0]  ;;  %v620_v21 = vld [vmem:[%s914_s23 + $0x8] sm:$0xf0]  ;;  %v619_v24 = vor.u32 %v716_v17, %v618_v16 }
  0x14   : > { %v719_v22 = vld [vmem:[%s914_s23 + $0x24] sm:$0xf]  ;;  %v636_v23 = vld [vmem:[%s914_s23 + $0x28] sm:$0xf0]  ;;  %v635_v25 = vor.u32 %v720_v19, %v634_v18  ;;  %v623_v26 = vor.u32 %v715_v20, %v620_v21  ;;  %v642_v30 = vld [vmem:[%s914_s23 + $0x30] sm:$0xf] }
  0x15   : > { %395 = vmatpush.bf16.msra.mxu0 %v728_v4  ;;  %764 = vmatpush.bf16.msra.mxu2 %v728_v4  ;;  %v639_v27 = vor.u32 %v719_v22, %v636_v23  ;;  %v722_v31 = vld [vmem:[%s914_s23 + $0x34] sm:$0xf0]  ;;  %v717_v32 = vld [vmem:[%s914_s23 + $0x14] sm:$0xf]  ;;  %v628_v33 = vld [vmem:[%s914_s23 + $0x18] sm:$0xf0] }
  0x16   : > { %424 = vmatpush.bf16.msra.mxu1 %v736_v5  ;;  %772 = vmatpush.bf16.msra.mxu3 %v736_v5  ;;  %v721_v34 = vld [vmem:[%s914_s23 + $0x34] sm:$0xf]  ;;  %v644_v35 = vld [vmem:[%s914_s23 + $0x38] sm:$0xf0]  ;;  %v643_v37 = vor.u32 %v722_v31, %v642_v30  ;;  %v631_v38 = vor.u32 %v717_v32, %v628_v33 }
  0x17   : > { %v647_v39 = vor.u32 %v721_v34, %v644_v35 }
  0x19   : > { %396 = vmatpush.bf16.msra.mxu0 %v727_v6  ;;  %765 = vmatpush.bf16.msra.mxu2 %v727_v6 }
  0x1a   : > { %425 = vmatpush.bf16.msra.mxu1 %v735_v7  ;;  %773 = vmatpush.bf16.msra.mxu3 %v735_v7 }
  0x1d   : > { %397 = vmatpush.bf16.msra.mxu0 %v726_v8  ;;  %766 = vmatpush.bf16.msra.mxu2 %v726_v8 }
  0x1e   : > { %426 = vmatpush.bf16.msra.mxu1 %v734_v9  ;;  %774 = vmatpush.bf16.msra.mxu3 %v734_v9 }
  0x21   : > { %398 = vmatpush.bf16.msra.mxu0 %v725_v10  ;;  %767 = vmatpush.bf16.msra.mxu2 %v725_v10 }
  0x22   : > { %427 = vmatpush.bf16.msra.mxu1 %v733_v11  ;;  %775 = vmatpush.bf16.msra.mxu3 %v733_v11 }
  0x25   : > { %399 = vmatpush.bf16.msra.mxu0 %v724_v12  ;;  %768 = vmatpush.bf16.msra.mxu2 %v724_v12 }
  0x26   : > { %428 = vmatpush.bf16.msra.mxu1 %v732_v13  ;;  %776 = vmatpush.bf16.msra.mxu3 %v732_v13 }
  0x29   : > { %400 = vmatpush.bf16.msra.mxu0 %v723_v14  ;;  %769 = vmatpush.bf16.msra.mxu2 %v723_v14 }
  0x2a   : > { %429 = vmatpush.bf16.msra.mxu1 %v731_v15  ;;  %777 = vmatpush.bf16.msra.mxu3 %v731_v15 }
  0x2c   : > { %401 = vmatmul.bf16.vlgmr.msra.gmra.mxu0 %v619_v24  ;;  %411 = vmatmul.bf16.vlgmr.msra.gmra.mxu2 %v635_v25 }
  0x2d   : > { %430 = vmatmul.bf16.vlgmr.msra.gmra.mxu1 %v623_v26  ;;  %440 = vmatmul.bf16.vlgmr.msra.gmra.mxu3 %v639_v27 }
  0x3c   : > { %406 = vmatmul.bf16.gmra.mxu0 %v627_v36  ;;  %416 = vmatmul.bf16.gmra.mxu2 %v643_v37 }
  0x3d   : > { %435 = vmatmul.bf16.gmra.mxu1 %v631_v38  ;;  %445 = vmatmul.bf16.gmra.mxu3 %v647_v39  ;;  %v501_v39 = vld [vmem:[%s946_s7] sm:$0x3] }
  0xa9   : > { %v402_v40 = vpop.f32.mrf.mxu0 }
  0xaa   : > { %v431_v41 = vpop.f32.mrf.mxu1 }
  0xab   : > { %v432_v47 = vadd.f32 %v431_v41, %v402_v40 }
  0xad   : > { %v480_v61 = vmul.f32 %v432_v47, %v432_v47 }
  0xaf   : > { %v412_v43 = vpop.f32.mrf.mxu2 }
  0xb0   : > { %v441_v44 = vpop.f32.mrf.mxu3 }
  0xb1   : > { %v404_v45 = vpop.f32.mrf.mxu0  ;;  %v442_v52 = vadd.f32 %v441_v44, %v412_v43 }
  0xb2   : > { %v433_v46 = vpop.f32.mrf.mxu1 }
  0xb3   : > { %v434_v48 = vadd.f32 %v433_v46, %v404_v45  ;;  %v484_v9 = vmul.f32 %v442_v52, %v442_v52 }
  0xb5   : > { %v742_v49 = vpack.c.bf16 %v434_v48, %v432_v47  ;;  %v481_v58 = vmul.f32 %v434_v48, %v434_v48  ;;  %v467_v62 = vadd.f32 %v434_v48, %v432_v47 }
  0xb7   : > { %743 = vst [vmem:[%s953_s12] sm:$0xff] %v742_v49   ;;  %v414_v50 = vpop.f32.mrf.mxu2  ;;  %v488_v2 = vadd.f32 %v481_v58, %v480_v61 }
  0xb8   : > { %v443_v51 = vpop.f32.mrf.mxu3 }
  0xb9   : > { %v444_v53 = vadd.f32 %v443_v51, %v414_v50  ;;  %v407_v54 = vpop.f32.mrf.mxu0 }
  0xba   : > { %v436_v55 = vpop.f32.mrf.mxu1 }
  0xbb   : > { %v752_v56 = vpack.c.bf16 %v444_v53, %v442_v52  ;;  %v437_v57 = vadd.f32 %v436_v55, %v407_v54  ;;  %v485_v15 = vmul.f32 %v444_v53, %v444_v53 }
  0xbd   : > { %760 = vst [vmem:[%s953_s12 + $0x10] sm:$0xff] %v752_v56   ;;  %v482_v63 = vmul.f32 %v437_v57, %v437_v57  ;;  %v468_v3 = vadd.f32 %v467_v62, %v437_v57 }
  0xbf   : > { %v417_v59 = vpop.f32.mrf.mxu2  ;;  %v489_v5 = vadd.f32 %v488_v2, %v482_v63 }
  0xc0   : > { %v446_v60 = vpop.f32.mrf.mxu3 }
  0xc1   : > { %v409_v0 = vpop.f32.mrf.mxu0  ;;  %v447_v10 = vadd.f32 %v446_v60, %v417_v59 }
  0xc2   : > { %v438_v1 = vpop.f32.mrf.mxu1 }
  0xc3   : > { %v439_v4 = vadd.f32 %v438_v1, %v409_v0  ;;  %v486_v19 = vmul.f32 %v447_v10, %v447_v10 }
  0xc5   : > { %v747_v6 = vpack.c.bf16 %v439_v4, %v437_v57  ;;  %v469_v7 = vadd.f32 %v468_v3, %v439_v4  ;;  %v483_v8 = vmul.f32 %v439_v4, %v439_v4 }
  0xc7   : > { %759 = vst [vmem:[%s953_s12 + $0x8] sm:$0xff] %v747_v6   ;;  %v470_v11 = vadd.f32 %v469_v7, %v442_v52  ;;  %v490_v12 = vadd.f32 %v489_v5, %v483_v8  ;;  %v419_v13 = vpop.f32.mrf.mxu2 }
  0xc8   : > { %v448_v14 = vpop.f32.mrf.mxu3 }
  0xc9   : > { %v491_v16 = vadd.f32 %v490_v12, %v484_v9  ;;  %v449_v17 = vadd.f32 %v448_v14, %v419_v13  ;;  %v471_v18 = vadd.f32 %v470_v11, %v444_v53 }
  0xcb   : > { %v757_v20 = vpack.c.bf16 %v449_v17, %v447_v10  ;;  %v472_v21 = vadd.f32 %v471_v18, %v447_v10  ;;  %v492_v22 = vadd.f32 %v491_v16, %v485_v15  ;;  %v487_v24 = vmul.f32 %v449_v17, %v449_v17 }
  0xcd   : > { %761 = vst [vmem:[%s953_s12 + $0x18] sm:$0xff] %v757_v20   ;;  %v473_v23 = vadd.f32 %v472_v21, %v449_v17  ;;  %v493_v25 = vadd.f32 %v492_v22, %v486_v19 }
  0xcf   : > { %v474_v26 = vrot.slane %v473_v23, 4  ;;  %v494_v27 = vadd.f32 %v493_v25, %v487_v24 }
  0xd1   : > { %v475_v28 = vadd.f32 %v474_v26, %v473_v23  ;;  %v495_v29 = vrot.slane %v494_v27, 4 }
  0xd3   : > { %v476_v30 = vrot.slane %v475_v28, 2  ;;  %v496_v31 = vadd.f32 %v495_v29, %v494_v27 }
  0xd5   : > { %v477_v32 = vadd.f32 %v476_v30, %v475_v28  ;;  %v497_v33 = vrot.slane %v496_v31, 2 }
  0xd7   : > { %v478_v34 = vrot.slane %v477_v32, 1  ;;  %v498_v35 = vadd.f32 %v497_v33, %v496_v31 }
  0xd9   : > { %v499_v36 = vrot.slane %v498_v35, 1  ;;  %v479_v37 = vadd.f32 %v478_v34, %v477_v32 }
  0xdb   : > { %v500_v38 = vadd.f32 %v499_v36, %v498_v35 }
  0xdd   : > { %v503_v40 = vsel %vm502_vm0, %v479_v37, %v500_v38 }
  0xde   : > { %v504_v41 = vadd.f32 %v503_v40, %v501_v39 }
  0xe0   : > { %505 = vst [vmem:[%s946_s7] sm:$0x3] %v504_v41 }
  0xe1 PF: > { %s14_s14 = sadd.s32 1, %s825_s14   ;;  %s974_s12 = smov %s821_s13 }
  0xe2   : > { %p11_p6 = scmp.ge.s32.totalorder %s14_s14, 4   ;;  %s975_s13 = smov %s977_s15 }
  0xe4   :  { %13 = sbr.rel (!%p11_p6) target bundleno = 2 (0x2), region = 74 }

// kernel: discriminator_forward.12
= control target key start
LH: loop header
LB: loop body
LE: loop exit
PB: predicated region body
PF: predicated region fallthrough
CT: control target
= control target key end

     0   :  { %s439_s17 = smov 0   ;;  %s469_s0 = inlined_call_operand.vmem [shape: bf16[128,128], index: 0, kind: input, shape index: {}]   ;;  %s470_s1 = inlined_call_operand.vmem [shape: f32[1,128], index: 1, kind: input, shape index: {}]   ;;  %s471_s2 = inlined_call_operand.vmem [shape: f32[1,128], index: 2, kind: input, shape index: {}]   ;;  %s472_s3 = inlined_call_operand.<no memory space> [shape: f32[1], index: 3, kind: input, shape index: {}]   ;;  %s473_s4 = inlined_call_operand.vmem [shape: bf16[128,128], index: 4, kind: output, shape index: {}]  }
   0x1   :  { %9 = sst [smem:[#allocation2]] %s472_s3 }
   0x2 LB: > { %s340_s18 = sadd.s32 4294967295, %s409_s17   ;;  %p344_p0 = scmp.ge.s32.totalorder %s409_s17, 1  ;;  %s409_s17 = sphi %s439_s17, %s15_s17  }
   0x3   : > { %p164_p1 = scmp.lt.s32.totalorder %s409_s17, 3 }
   0x5   : > { %p165_p2 = pnand %p344_p0, %p164_p1 }
   0x6   : > { %s345_s19 = sshll.u32 (!%p165_p2), %s340_s18, 3  ;;  %s242_s20 = sld [smem:[#allocation2]] (!%p165_p2) }
   0x7   : > { %168 = sbr.rel (%p165_p2) target bundleno = 33 (0x21), region = 36  ;;  %p191_p3 = scmp.lt.s32.totalorder (!%p165_p2), %s345_s19, 15 }
   0xc   : > { %s475_s19 = smov (!%p191_p3, %s345_s19), 15  ;;  %v401_v0 = vld [vmem:[%s470_s1] ss:$0 sm:$0xff]  ;;  %v251_v16 = vstv %s242_s20 }
   0xd   : > { %s346_s3 = sshll.u32 %s475_s19, 2  ;;  %v402_v9 = vld [vmem:[%s471_s2] ss:$0 sm:$0xff] }
   0xe   : > { %s194_s23 = scalar_lea.vmem %s469_s0, %s346_s3  ;;  %s200_s30 = scalar_lea.vmem %s473_s4, %s346_s3 }
   0xf   : > { %v352_v1 = vld [vmem:[%s194_s23] sm:$0xff]   ;;  %v387_v2 = vld [vmem:[%s194_s23 + $0x8] sm:$0xff]   ;;  %v388_v3 = vld [vmem:[%s194_s23 + $0x10] sm:$0xff]  }
  0x10   : > { %v353_v4 = vunpack.c.l.bf16 %v352_v1  ;;  %v354_v5 = vunpack.c.h.bf16 %v352_v1  ;;  %v357_v6 = vunpack.c.l.bf16 %v387_v2  ;;  %v358_v7 = vunpack.c.h.bf16 %v387_v2  ;;  %v389_v8 = vld [vmem:[%s194_s23 + $0x18] sm:$0xff]  }
  0x11   : > { %v361_v10 = vunpack.c.l.bf16 %v388_v3  ;;  %v362_v11 = vunpack.c.h.bf16 %v388_v3  ;;  %v365_v12 = vunpack.c.l.bf16 %v389_v8  ;;  %v366_v13 = vunpack.c.h.bf16 %v389_v8 }
  0x12   : > { %v222_v14 = vmul.f32 %v401_v0, %v353_v4  ;;  %v223_v15 = vmul.f32 %v401_v0, %v354_v5  ;;  %v224_v17 = vmul.f32 %v401_v0, %v357_v6  ;;  %v225_v18 = vmul.f32 %v401_v0, %v358_v7 }
  0x13   : > { %v226_v19 = vmul.f32 %v401_v0, %v361_v10  ;;  %v227_v20 = vmul.f32 %v401_v0, %v362_v11  ;;  %v228_v21 = vmul.f32 %v401_v0, %v365_v12  ;;  %v229_v25 = vmul.f32 %v401_v0, %v366_v13 }
  0x14   : > { %v234_v22 = vadd.f32 %v402_v9, %v222_v14  ;;  %v235_v23 = vadd.f32 %v402_v9, %v223_v15  ;;  %v236_v24 = vadd.f32 %v402_v9, %v224_v17  ;;  %v237_v26 = vadd.f32 %v402_v9, %v225_v18 }
  0x15   : > { %v238_v27 = vadd.f32 %v402_v9, %v226_v19  ;;  %v239_v28 = vadd.f32 %v402_v9, %v227_v20  ;;  %v240_v29 = vadd.f32 %v402_v9, %v228_v21  ;;  %v241_v42 = vadd.f32 %v402_v9, %v229_v25 }
  0x16   : > { %vm243_vm0 = vcmp.ge.f32.partialorder %v234_v22, 0.0  ;;  %vm244_vm1 = vcmp.ge.f32.partialorder %v235_v23, 0.0  ;;  %v252_v30 = vmul.f32 %v251_v16, %v234_v22  ;;  %v253_v31 = vmul.f32 %v251_v16, %v235_v23 }
  0x17   : > { %vm245_vm2 = vcmp.ge.f32.partialorder %v236_v24, 0.0  ;;  %vm246_vm3 = vcmp.ge.f32.partialorder %v237_v26, 0.0  ;;  %v254_v32 = vmul.f32 %v251_v16, %v236_v24  ;;  %v255_v33 = vmul.f32 %v251_v16, %v237_v26 }
  0x18   : > { %v260_v34 = vsel %vm243_vm0, %v234_v22, %v252_v30  ;;  %v261_v35 = vsel %vm244_vm1, %v235_v23, %v253_v31  ;;  %vm247_vm4 = vcmp.ge.f32.partialorder %v238_v27, 0.0  ;;  %vm248_vm5 = vcmp.ge.f32.partialorder %v239_v28, 0.0 }
  0x19   : > { %v370_v36 = vpack.c.bf16 %v261_v35, %v260_v34  ;;  %v262_v37 = vsel %vm245_vm2, %v236_v24, %v254_v32  ;;  %v263_v38 = vsel %vm246_vm3, %v237_v26, %v255_v33  ;;  %v256_v39 = vmul.f32 %v251_v16, %v238_v27 }
  0x1a   : > { %v375_v40 = vpack.c.bf16 %v263_v38, %v262_v37  ;;  %v257_v41 = vmul.f32 %v251_v16, %v239_v28  ;;  %vm249_vm6 = vcmp.ge.f32.partialorder %v240_v29, 0.0  ;;  %v258_v44 = vmul.f32 %v251_v16, %v240_v29 }
  0x1b   : > { %371 = vst [vmem:[%s200_s30] sm:$0xff] %v370_v36   ;;  %v264_v43 = vsel %vm247_vm4, %v238_v27, %v256_v39  ;;  %vm250_vm7 = vcmp.ge.f32.partialorder %v241_v42, 0.0  ;;  %v259_v46 = vmul.f32 %v251_v16, %v241_v42 }
  0x1c   : > { %390 = vst [vmem:[%s200_s30 + $0x8] sm:$0xff] %v375_v40   ;;  %v265_v45 = vsel %vm248_vm5, %v239_v28, %v257_v41  ;;  %v266_v48 = vsel %vm249_vm6, %v240_v29, %v258_v44 }
  0x1d   : > { %v380_v47 = vpack.c.bf16 %v265_v45, %v264_v43  ;;  %v267_v49 = vsel %vm250_vm7, %v241_v42, %v259_v46 }
  0x1e   : > { %v385_v50 = vpack.c.bf16 %v267_v49, %v266_v48 }
  0x1f   : > { %391 = vst [vmem:[%s200_s30 + $0x10] sm:$0xff] %v380_v47  }
  0x20   : > { %392 = vst [vmem:[%s200_s30 + $0x18] sm:$0xff] %v385_v50  }
  0x21 PF: > { %s15_s17 = sadd.s32 1, %s409_s17  }
  0x22   : > { %p12_p4 = scmp.ge.s32.totalorder %s15_s17, 4  }
  0x24   :  { %14 = sbr.rel (!%p12_p4) target bundleno = 2 (0x2), region = 66 }

// kernel: discriminator_forward.14
= control target key start
LH: loop header
LB: loop body
LE: loop exit
PB: predicated region body
PF: predicated region fallthrough
CT: control target
= control target key end

     0   :  { %s417_s17 = smov 0   ;;  %s447_s0 = inlined_call_operand.vmem [shape: bf16[112,128], index: 0, kind: input, shape index: {}]   ;;  %s448_s1 = inlined_call_operand.vmem [shape: f32[1,128], index: 1, kind: input, shape index: {}]   ;;  %s449_s2 = inlined_call_operand.vmem [shape: f32[1,128], index: 2, kind: input, shape index: {}]   ;;  %s450_s3 = inlined_call_operand.<no memory space> [shape: f32[1], index: 3, kind: input, shape index: {}]   ;;  %s451_s4 = inlined_call_operand.vmem [shape: bf16[112,128], index: 4, kind: output, shape index: {}]  }
   0x1   :  { %9 = sst [smem:[#allocation2]] %s450_s3 }
   0x2 LB: > { %s331_s18 = sadd.s32 4294967295, %s387_s17   ;;  %p335_p0 = scmp.ge.s32.totalorder %s387_s17, 1  ;;  %s387_s17 = sphi %s417_s17, %s15_s17  }
   0x3   : > { %p164_p1 = scmp.lt.s32.totalorder %s387_s17, 3 }
   0x5   : > { %p165_p2 = pnand %p335_p0, %p164_p1 }
   0x6   : > { %s190_s19 = smul.u32 (!%p165_p2), 7, %s331_s18  ;;  %s238_s20 = sld [smem:[#allocation2]] (!%p165_p2) }
   0x7   : > { %168 = sbr.rel (%p165_p2) target bundleno = 33 (0x21), region = 36 }
   0x8   : > { %p191_p3 = scmp.lt.s32.totalorder (!%p165_p2), %s190_s19, 13 }
   0xc   : > { %s453_s19 = smov (!%p191_p3, %s190_s19), 13  ;;  %v379_v0 = vld [vmem:[%s448_s1] ss:$0 sm:$0xff]  ;;  %v246_v17 = vstv %s238_s20 }
   0xd   : > { %s336_s3 = sshll.u32 %s453_s19, 2  ;;  %v380_v9 = vld [vmem:[%s449_s2] ss:$0 sm:$0xff] }
   0xe   : > { %s194_s23 = scalar_lea.vmem %s447_s0, %s336_s3  ;;  %s200_s30 = scalar_lea.vmem %s451_s4, %s336_s3 }
   0xf   : > { %v341_v1 = vld [vmem:[%s194_s23] sm:$0xff]   ;;  %v367_v2 = vld [vmem:[%s194_s23 + $0x8] sm:$0xff]   ;;  %v368_v3 = vld [vmem:[%s194_s23 + $0x10] sm:$0xff]  }
  0x10   : > { %v342_v4 = vunpack.c.l.bf16 %v341_v1  ;;  %v343_v5 = vunpack.c.h.bf16 %v341_v1  ;;  %v346_v6 = vunpack.c.l.bf16 %v367_v2  ;;  %v347_v7 = vunpack.c.h.bf16 %v367_v2  ;;  %v208_v8 = vld [vmem:[%s194_s23 + $0x18] sm:$0xf] }
  0x11   : > { %v350_v10 = vunpack.c.l.bf16 %v368_v3  ;;  %v351_v11 = vunpack.c.h.bf16 %v368_v3  ;;  %v215_v12 = vunpack.c.l.bf16 %v208_v8 }
  0x12   : > { %v220_v13 = vmul.f32 %v379_v0, %v342_v4  ;;  %v221_v14 = vmul.f32 %v379_v0, %v343_v5  ;;  %v222_v15 = vmul.f32 %v379_v0, %v346_v6  ;;  %v223_v16 = vmul.f32 %v379_v0, %v347_v7 }
  0x13   : > { %v224_v18 = vmul.f32 %v379_v0, %v350_v10  ;;  %v225_v19 = vmul.f32 %v379_v0, %v351_v11  ;;  %v226_v20 = vmul.f32 %v379_v0, %v215_v12 }
  0x14   : > { %v231_v21 = vadd.f32 %v380_v9, %v220_v13  ;;  %v232_v22 = vadd.f32 %v380_v9, %v221_v14  ;;  %v233_v23 = vadd.f32 %v380_v9, %v222_v15  ;;  %v234_v24 = vadd.f32 %v380_v9, %v223_v16 }
  0x15   : > { %v235_v25 = vadd.f32 %v380_v9, %v224_v18  ;;  %v236_v26 = vadd.f32 %v380_v9, %v225_v19  ;;  %v237_v27 = vadd.f32 %v380_v9, %v226_v20 }
  0x16   : > { %vm239_vm0 = vcmp.ge.f32.partialorder %v231_v21, 0.0  ;;  %vm240_vm1 = vcmp.ge.f32.partialorder %v232_v22, 0.0  ;;  %v247_v28 = vmul.f32 %v246_v17, %v231_v21  ;;  %v248_v29 = vmul.f32 %v246_v17, %v232_v22 }
  0x17   : > { %vm241_vm2 = vcmp.ge.f32.partialorder %v233_v23, 0.0  ;;  %vm242_vm3 = vcmp.ge.f32.partialorder %v234_v24, 0.0  ;;  %v249_v30 = vmul.f32 %v246_v17, %v233_v23  ;;  %v250_v31 = vmul.f32 %v246_v17, %v234_v24 }
  0x18   : > { %v254_v32 = vsel %vm239_vm0, %v231_v21, %v247_v28  ;;  %v255_v33 = vsel %vm240_vm1, %v232_v22, %v248_v29  ;;  %vm243_vm4 = vcmp.ge.f32.partialorder %v235_v25, 0.0  ;;  %vm244_vm5 = vcmp.ge.f32.partialorder %v236_v26, 0.0 }
  0x19   : > { %v355_v34 = vpack.c.bf16 %v255_v33, %v254_v32  ;;  %v256_v35 = vsel %vm241_vm2, %v233_v23, %v249_v30  ;;  %v257_v36 = vsel %vm242_vm3, %v234_v24, %v250_v31  ;;  %v251_v37 = vmul.f32 %v246_v17, %v235_v25 }
  0x1a   : > { %v360_v38 = vpack.c.bf16 %v257_v36, %v256_v35  ;;  %v252_v39 = vmul.f32 %v246_v17, %v236_v26  ;;  %vm245_vm6 = vcmp.ge.f32.partialorder %v237_v27, 0.0  ;;  %v253_v40 = vmul.f32 %v246_v17, %v237_v27 }
  0x1b   : > { %356 = vst [vmem:[%s200_s30] sm:$0xff] %v355_v34   ;;  %v258_v41 = vsel %vm243_vm4, %v235_v25, %v251_v37 }
  0x1c   : > { %369 = vst [vmem:[%s200_s30 + $0x8] sm:$0xff] %v360_v38   ;;  %v259_v42 = vsel %vm244_vm5, %v236_v26, %v252_v39  ;;  %v260_v43 = vsel %vm245_vm6, %v237_v27, %v253_v40 }
  0x1d   : > { %v365_v44 = vpack.c.bf16 %v259_v42, %v258_v41  ;;  %v267_v45 = vpack.c.bf16 %v260_v43, %v260_v43 }
  0x1f   : > { %370 = vst [vmem:[%s200_s30 + $0x10] sm:$0xff] %v365_v44  }
  0x20   : > { %274 = vst [vmem:[%s200_s30 + $0x18] sm:$0xf] %v267_v45 }
  0x21 PF: > { %s15_s17 = sadd.s32 1, %s387_s17  }
  0x22   : > { %p12_p4 = scmp.ge.s32.totalorder %s15_s17, 4  }
  0x24   :  { %14 = sbr.rel (!%p12_p4) target bundleno = 2 (0x2), region = 66 }

// kernel: discriminator_forward.13
= control target key start
LH: loop header
LB: loop body
LE: loop exit
PB: predicated region body
PF: predicated region fallthrough
CT: control target
= control target key end

     0   :  { %s1141_s12 = smov 0   ;;  %s1143_s13 = smov 0   ;;  %s1321_s0 = inlined_call_operand.vmem [shape: bf16[112,512], index: 0, kind: input, shape index: {}]   ;;  %s1322_s1 = inlined_call_operand.vmem [shape: bf16[512,128], index: 1, kind: input, shape index: {}]   ;;  %s1323_s2 = inlined_call_operand.vmem [shape: bf16[112,128], index: 2, kind: output, shape index: {0}]   ;;  %s1324_s3 = inlined_call_operand.vmem [shape: f32[2,2,128], index: 3, kind: output, shape index: {1}]  }
   0x1   :  { %s1145_s14 = smov 0  }
   0x2 LB: > { %s26_s15 = sadd.s32 1, %s1114_s13  ;;  %p826_p0 = scmp.ge.s32.totalorder %s1118_s14, 1  ;;  %s1118_s14 = sphi %s1145_s14, %s14_s14   ;;  %s1114_s13 = sphi %s1143_s13, %s1326_s13   ;;  %s1110_s12 = sphi %s1141_s12, %s1325_s12  }
   0x3   : > { %p28_p1 = scmp.ge.s32.totalorder %s26_s15, 2  ;;  %p160_p2 = scmp.lt.s32.totalorder %s1118_s14, 3 }
   0x5   : > { %s1328_s15 = smov (%p28_p1, %s26_s15), 0  ;;  %p161_p3 = pnand %p826_p0, %p160_p2 }
   0x6   : > { %s192_s17 = smul.u32 (!%p161_p3), 7, %s1110_s12  ;;  %p208_p5 = scmp.lt.s32.totalorder (!%p161_p3), %s1110_s12, 1 }
   0x7   : > { %164 = sbr.rel (%p161_p3) target bundleno = 250 (0xfa), region = 28 }
   0x8   : > { %p193_p4 = scmp.lt.s32.totalorder (!%p161_p3), %s192_s17, 13 }
   0xc   : > { %v1029_v0 = vld [vmem:[%s1322_s1 + $0x38] sm:$0xff]  ;;  %v1028_v4 = vld [vmem:[%s1322_s1 + $0x30] sm:$0xff]  ;;  %v1027_v8 = vld [vmem:[%s1322_s1 + $0x28] sm:$0xff]  ;;  %s1330_s17 = smov (!%p193_p4, %s192_s17), 13  ;;  %s1332_s12 = smov (!%p208_p5, %s1110_s12), 1  ;;  %vm719_vm0 = vcmask 1040384  }
   0xd   : > { %v1037_v1 = vld [vmem:[%s1322_s1 + $0x78] sm:$0xff]  ;;  %561 = vmatpush.bf16.msra.mxu0 %v1029_v0  ;;  %v1036_v5 = vld [vmem:[%s1322_s1 + $0x70] sm:$0xff]  ;;  %v1035_v9 = vld [vmem:[%s1322_s1 + $0x68] sm:$0xff]  ;;  %s1009_s20 = sshll.u32 %s1330_s17, 4  ;;  %s829_s18 = sshll.u32 %s1330_s17, 2 }
   0xe   : > { %v1045_v2 = vld [vmem:[%s1322_s1 + $0xb8] sm:$0xff]  ;;  %589 = vmatpush.bf16.msra.mxu1 %v1037_v1  ;;  %v1044_v6 = vld [vmem:[%s1322_s1 + $0xb0] sm:$0xff]  ;;  %v1043_v10 = vld [vmem:[%s1322_s1 + $0xa8] sm:$0xff]  ;;  %s1246_s27 = scalar_lea.vmem %s1321_s0, %s1009_s20  ;;  %s1298_s21 = scalar_lea.vmem %s1323_s2, %s829_s18 }
   0xf   : > { %v1053_v3 = vld [vmem:[%s1322_s1 + $0xf8] sm:$0xff]  ;;  %617 = vmatpush.bf16.msra.mxu2 %v1045_v2  ;;  %v1052_v7 = vld [vmem:[%s1322_s1 + $0xf0] sm:$0xff]  ;;  %v1051_v11 = vld [vmem:[%s1322_s1 + $0xe8] sm:$0xff]  ;;  %s830_s22 = sshll.u32 %s1332_s12, 1 }
  0x10   : > { %645 = vmatpush.bf16.msra.mxu3 %v1053_v3  ;;  %v1026_v12 = vld [vmem:[%s1322_s1 + $0x20] sm:$0xff]  ;;  %v1025_v16 = vld [vmem:[%s1322_s1 + $0x18] sm:$0xff]  ;;  %v1024_v20 = vld [vmem:[%s1322_s1 + $0x10] sm:$0xff]  ;;  %s1304_s25 = scalar_lea.vmem %s1324_s3, %s830_s22 }
  0x11   : > { %562 = vmatpush.bf16.msra.mxu0 %v1028_v4  ;;  %v1034_v13 = vld [vmem:[%s1322_s1 + $0x60] sm:$0xff]  ;;  %v1033_v17 = vld [vmem:[%s1322_s1 + $0x58] sm:$0xff]  ;;  %v1032_v21 = vld [vmem:[%s1322_s1 + $0x50] sm:$0xff] }
  0x12   : > { %590 = vmatpush.bf16.msra.mxu1 %v1036_v5  ;;  %v1042_v14 = vld [vmem:[%s1322_s1 + $0xa0] sm:$0xff]  ;;  %v1041_v18 = vld [vmem:[%s1322_s1 + $0x98] sm:$0xff]  ;;  %v1040_v22 = vld [vmem:[%s1322_s1 + $0x90] sm:$0xff] }
  0x13   : > { %618 = vmatpush.bf16.msra.mxu2 %v1044_v6  ;;  %v1050_v15 = vld [vmem:[%s1322_s1 + $0xe0] sm:$0xff]  ;;  %v1049_v19 = vld [vmem:[%s1322_s1 + $0xd8] sm:$0xff]  ;;  %v1048_v23 = vld [vmem:[%s1322_s1 + $0xd0] sm:$0xff] }
  0x14   : > { %646 = vmatpush.bf16.msra.mxu3 %v1052_v7  ;;  %v1023_v24 = vld [vmem:[%s1322_s1 + $0x8] sm:$0xff]  ;;  %v1022_v28 = vld [vmem:[%s1322_s1] sm:$0xff]  ;;  %v1012_v33 = vld [vmem:[%s1246_s27 + $0xc] sm:$0xf0] }
  0x15   : > { %563 = vmatpush.bf16.msra.mxu0 %v1027_v8  ;;  %v1031_v25 = vld [vmem:[%s1322_s1 + $0x48] sm:$0xff]  ;;  %v1030_v29 = vld [vmem:[%s1322_s1 + $0x40] sm:$0xff]  ;;  %v835_v35 = vld [vmem:[%s1246_s27 + $0x10] sm:$0xf0] }
  0x16   : > { %591 = vmatpush.bf16.msra.mxu1 %v1035_v9  ;;  %v1039_v26 = vld [vmem:[%s1322_s1 + $0x88] sm:$0xff]  ;;  %v1038_v30 = vld [vmem:[%s1322_s1 + $0x80] sm:$0xff]  ;;  %v1013_v37 = vld [vmem:[%s1246_s27 + $0x14] sm:$0xf0] }
  0x17   : > { %619 = vmatpush.bf16.msra.mxu2 %v1043_v10  ;;  %v1047_v27 = vld [vmem:[%s1322_s1 + $0xc8] sm:$0xff]  ;;  %v1046_v31 = vld [vmem:[%s1322_s1 + $0xc0] sm:$0xff]  ;;  %v843_v39 = vld [vmem:[%s1246_s27 + $0x18] sm:$0xf0] }
  0x18   : > { %647 = vmatpush.bf16.msra.mxu3 %v1051_v11  ;;  %v833_v32 = vld [vmem:[%s1246_s27] sm:$0xf]  ;;  %v1010_v34 = vld [vmem:[%s1246_s27 + $0x4] sm:$0xf]  ;;  %v841_v36 = vld [vmem:[%s1246_s27 + $0x8] sm:$0xf] }
  0x19   : > { %564 = vmatpush.bf16.msra.mxu0 %v1026_v12  ;;  %v1011_v38 = vld [vmem:[%s1246_s27 + $0xc] sm:$0xf]  ;;  %v834_v40 = vor.u32 %v1012_v33, %v833_v32  ;;  %v838_v41 = vor.u32 %v1010_v34, %v835_v35  ;;  %v842_v42 = vor.u32 %v1013_v37, %v841_v36  ;;  %v849_v44 = vld [vmem:[%s1246_s27 + $0x20] sm:$0xf]  ;;  %v1016_v45 = vld [vmem:[%s1246_s27 + $0x2c] sm:$0xf0] }
  0x1a   : > { %592 = vmatpush.bf16.msra.mxu1 %v1034_v13  ;;  %v846_v43 = vor.u32 %v1011_v38, %v843_v39  ;;  %v1014_v46 = vld [vmem:[%s1246_s27 + $0x24] sm:$0xf]  ;;  %v851_v47 = vld [vmem:[%s1246_s27 + $0x30] sm:$0xf0]  ;;  %v857_v48 = vld [vmem:[%s1246_s27 + $0x28] sm:$0xf]  ;;  %v850_v52 = vor.u32 %v1016_v45, %v849_v44 }
  0x1b   : > { %620 = vmatpush.bf16.msra.mxu2 %v1042_v14  ;;  %v1017_v49 = vld [vmem:[%s1246_s27 + $0x34] sm:$0xf0]  ;;  %v1015_v50 = vld [vmem:[%s1246_s27 + $0x2c] sm:$0xf]  ;;  %v859_v51 = vld [vmem:[%s1246_s27 + $0x38] sm:$0xf0]  ;;  %v854_v53 = vor.u32 %v1014_v46, %v851_v47 }
  0x1c   : > { %648 = vmatpush.bf16.msra.mxu3 %v1050_v15  ;;  %v858_v54 = vor.u32 %v1017_v49, %v857_v48  ;;  %v862_v55 = vor.u32 %v1015_v50, %v859_v51  ;;  %v865_v56 = vld [vmem:[%s1246_s27 + $0x40] sm:$0xf]  ;;  %v1020_v57 = vld [vmem:[%s1246_s27 + $0x4c] sm:$0xf0]  ;;  %v1018_v58 = vld [vmem:[%s1246_s27 + $0x44] sm:$0xf] }
  0x1d   : > { %565 = vmatpush.bf16.msra.mxu0 %v1025_v16  ;;  %v867_v59 = vld [vmem:[%s1246_s27 + $0x50] sm:$0xf0]  ;;  %v873_v60 = vld [vmem:[%s1246_s27 + $0x48] sm:$0xf]  ;;  %v1021_v61 = vld [vmem:[%s1246_s27 + $0x54] sm:$0xf0]  ;;  %v866_v0 = vor.u32 %v1020_v57, %v865_v56 }
  0x1e   : > { %593 = vmatpush.bf16.msra.mxu1 %v1033_v17  ;;  %v1019_v62 = vld [vmem:[%s1246_s27 + $0x4c] sm:$0xf]  ;;  %v875_v63 = vld [vmem:[%s1246_s27 + $0x58] sm:$0xf0]  ;;  %v870_v1 = vor.u32 %v1018_v58, %v867_v59  ;;  %v874_v2 = vor.u32 %v1021_v61, %v873_v60  ;;  %v229_v4 = vld [vmem:[%s1246_s27 + $0x60] sm:$0xff]  ;;  %v1120_v35 = vmov 0.0  }
  0x1f   : > { %621 = vmatpush.bf16.msra.mxu2 %v1041_v18  ;;  %v878_v3 = vor.u32 %v1019_v62, %v875_v63  ;;  %v230_v5 = vld [vmem:[%s1246_s27 + $0x68] sm:$0xff]  ;;  %v333_v6 = vunpack.c.l.b16 %v229_v4  ;;  %v334_v7 = vunpack.c.h.b16 %v229_v4  ;;  %216 = vst [vmem:[%s1304_s25] sm:$0x3] %v1120_v35 }
  0x20   : > { %649 = vmatpush.bf16.msra.mxu3 %v1049_v19  ;;  %v335_v8 = vunpack.c.l.b16 %v230_v5  ;;  %v336_v9 = vunpack.c.h.b16 %v230_v5 }
  0x21   : > { %566 = vmatpush.bf16.msra.mxu0 %v1024_v20  ;;  %v349_v10 = vpack.c.b16 %v333_v6, %v333_v6  ;;  %v350_v11 = vpack.c.b16 %v334_v7, %v334_v7 }
  0x22   : > { %594 = vmatpush.bf16.msra.mxu1 %v1032_v21  ;;  %v351_v12 = vpack.c.b16 %v335_v8, %v335_v8  ;;  %v352_v13 = vpack.c.b16 %v336_v9, %v336_v9 }
  0x23   : > { %622 = vmatpush.bf16.msra.mxu2 %v1040_v22 }
  0x24   : > { %650 = vmatpush.bf16.msra.mxu3 %v1048_v23 }
  0x25   : > { %567 = vmatpush.bf16.msra.mxu0 %v1023_v24 }
  0x26   : > { %595 = vmatpush.bf16.msra.mxu1 %v1031_v25 }
  0x27   : > { %623 = vmatpush.bf16.msra.mxu2 %v1039_v26 }
  0x28   : > { %651 = vmatpush.bf16.msra.mxu3 %v1047_v27 }
  0x29   : > { %568 = vmatpush.bf16.msra.mxu0 %v1022_v28 }
  0x2a   : > { %596 = vmatpush.bf16.msra.mxu1 %v1030_v29 }
  0x2b   : > { %624 = vmatpush.bf16.msra.mxu2 %v1038_v30 }
  0x2c   : > { %652 = vmatpush.bf16.msra.mxu3 %v1046_v31  ;;  %569 = vmatmul.bf16.vlgmr.msra.gmra.mxu0 %v834_v40 }
  0x2d   : > { %597 = vmatmul.bf16.vlgmr.msra.gmra.mxu1 %v838_v41 }
  0x2e   : > { %625 = vmatmul.bf16.vlgmr.msra.gmra.mxu2 %v842_v42 }
  0x2f   : > { %653 = vmatmul.bf16.vlgmr.msra.gmra.mxu3 %v846_v43 }
  0x3c   : > { %574 = vmatmul.bf16.gmra.mxu0 %v850_v52 }
  0x3d   : > { %602 = vmatmul.bf16.gmra.mxu1 %v854_v53 }
  0x3e   : > { %630 = vmatmul.bf16.gmra.mxu2 %v858_v54 }
  0x3f   : > { %658 = vmatmul.bf16.gmra.mxu3 %v862_v55 }
  0x4c   : > { %579 = vmatmul.bf16.gmra.mxu0 %v866_v0 }
  0x4d   : > { %607 = vmatmul.bf16.gmra.mxu1 %v870_v1 }
  0x4e   : > { %635 = vmatmul.bf16.gmra.mxu2 %v874_v2 }
  0x4f   : > { %663 = vmatmul.bf16.gmra.mxu3 %v878_v3 }
  0x5c   : > { %584 = vmatmul.bf16.gmra.mxu0 %v349_v10 }
  0x5d   : > { %612 = vmatmul.bf16.gmra.mxu1 %v350_v11 }
  0x5e   : > { %640 = vmatmul.bf16.gmra.mxu2 %v351_v12 }
  0x5f   : > { %668 = vmatmul.bf16.gmra.mxu3 %v352_v13 }
  0xa9   : > { %v570_v14 = vpop.f32.mrf.mxu0 }
  0xaa   : > { %v598_v15 = vpop.f32.mrf.mxu1 }
  0xab   : > { %v599_v20 = vadd.f32 %v598_v15, %v570_v14 }
  0xb1   : > { %v626_v16 = vpop.f32.mrf.mxu2  ;;  %v572_v18 = vpop.f32.mrf.mxu0 }
  0xb2   : > { %v654_v17 = vpop.f32.mrf.mxu3  ;;  %v600_v19 = vpop.f32.mrf.mxu1  ;;  %v627_v21 = vadd.f32 %v626_v16, %v599_v20 }
  0xb3   : > { %v601_v22 = vadd.f32 %v600_v19, %v572_v18 }
  0xb4   : > { %v655_v28 = vadd.f32 %v654_v17, %v627_v21 }
  0xb6   : > { %v699_v60 = vmul.f32 %v655_v28, %v655_v28 }
  0xb9   : > { %v628_v23 = vpop.f32.mrf.mxu2  ;;  %v575_v26 = vpop.f32.mrf.mxu0 }
  0xba   : > { %v656_v24 = vpop.f32.mrf.mxu3  ;;  %v629_v25 = vadd.f32 %v628_v23, %v601_v22  ;;  %v603_v27 = vpop.f32.mrf.mxu1 }
  0xbb   : > { %v604_v36 = vadd.f32 %v603_v27, %v575_v26 }
  0xbc   : > { %v657_v29 = vadd.f32 %v656_v24, %v629_v25 }
  0xbe   : > { %v1057_v30 = vpack.c.bf16 %v657_v29, %v655_v28  ;;  %v700_v54 = vmul.f32 %v657_v29, %v657_v29  ;;  %v687_v61 = vadd.f32 %v657_v29, %v655_v28 }
  0xc0   : > { %1058 = vst [vmem:[%s1298_s21] sm:$0xff] %v1057_v30   ;;  %v706_v1 = vadd.f32 %v700_v54, %v699_v60 }
  0xc1   : > { %v631_v31 = vpop.f32.mrf.mxu2  ;;  %v577_v33 = vpop.f32.mrf.mxu0 }
  0xc2   : > { %v659_v32 = vpop.f32.mrf.mxu3  ;;  %v605_v34 = vpop.f32.mrf.mxu1  ;;  %v632_v37 = vadd.f32 %v631_v31, %v604_v36 }
  0xc3   : > { %v606_v38 = vadd.f32 %v605_v34, %v577_v33 }
  0xc4   : > { %v660_v44 = vadd.f32 %v659_v32, %v632_v37 }
  0xc6   : > { %v701_v62 = vmul.f32 %v660_v44, %v660_v44  ;;  %v688_v2 = vadd.f32 %v687_v61, %v660_v44 }
  0xc8   : > { %v707_v6 = vadd.f32 %v706_v1, %v701_v62 }
  0xc9   : > { %v633_v39 = vpop.f32.mrf.mxu2  ;;  %v580_v42 = vpop.f32.mrf.mxu0 }
  0xca   : > { %v661_v40 = vpop.f32.mrf.mxu3  ;;  %v634_v41 = vadd.f32 %v633_v39, %v606_v38  ;;  %v608_v43 = vpop.f32.mrf.mxu1  ;;  %v718_v39 = vld [vmem:[%s1304_s25] sm:$0x3] }
  0xcb   : > { %v609_v51 = vadd.f32 %v608_v43, %v580_v42 }
  0xcc   : > { %v662_v45 = vadd.f32 %v661_v40, %v634_v41 }
  0xce   : > { %v1062_v46 = vpack.c.bf16 %v662_v45, %v660_v44  ;;  %v702_v3 = vmul.f32 %v662_v45, %v662_v45  ;;  %v689_v7 = vadd.f32 %v688_v2, %v662_v45 }
  0xd0   : > { %1069 = vst [vmem:[%s1298_s21 + $0x8] sm:$0xff] %v1062_v46   ;;  %v708_v11 = vadd.f32 %v707_v6, %v702_v3 }
  0xd1   : > { %v636_v47 = vpop.f32.mrf.mxu2  ;;  %v582_v49 = vpop.f32.mrf.mxu0 }
  0xd2   : > { %v664_v48 = vpop.f32.mrf.mxu3  ;;  %v610_v50 = vpop.f32.mrf.mxu1  ;;  %v637_v52 = vadd.f32 %v636_v47, %v609_v51 }
  0xd3   : > { %v611_v53 = vadd.f32 %v610_v50, %v582_v49 }
  0xd4   : > { %v665_v63 = vadd.f32 %v664_v48, %v637_v52 }
  0xd6   : > { %v703_v8 = vmul.f32 %v665_v63, %v665_v63  ;;  %v690_v12 = vadd.f32 %v689_v7, %v665_v63 }
  0xd8   : > { %v709_v17 = vadd.f32 %v708_v11, %v703_v8 }
  0xd9   : > { %v638_v55 = vpop.f32.mrf.mxu2  ;;  %v585_v58 = vpop.f32.mrf.mxu0 }
  0xda   : > { %v666_v56 = vpop.f32.mrf.mxu3  ;;  %v639_v57 = vadd.f32 %v638_v55, %v611_v53  ;;  %v613_v59 = vpop.f32.mrf.mxu1 }
  0xdb   : > { %v614_v5 = vadd.f32 %v613_v59, %v585_v58 }
  0xdc   : > { %v667_v0 = vadd.f32 %v666_v56, %v639_v57 }
  0xde   : > { %v1067_v4 = vpack.c.bf16 %v667_v0, %v665_v63  ;;  %v704_v13 = vmul.f32 %v667_v0, %v667_v0  ;;  %v691_v18 = vadd.f32 %v690_v12, %v667_v0 }
  0xe0   : > { %1070 = vst [vmem:[%s1298_s21 + $0x10] sm:$0xff] %v1067_v4   ;;  %v710_v20 = vadd.f32 %v709_v17, %v704_v13 }
  0xe1   : > { %v641_v9 = vpop.f32.mrf.mxu2  ;;  %v587_v15 = vpop.f32.mrf.mxu0 }
  0xe2   : > { %v669_v10 = vpop.f32.mrf.mxu3  ;;  %v642_v14 = vadd.f32 %v641_v9, %v614_v5  ;;  %v615_v16 = vpop.f32.mrf.mxu1 }
  0xe4   : > { %v670_v19 = vadd.f32 %v669_v10, %v642_v14 }
  0xe6   : > { %v679_v21 = vpack.c.bf16 %v670_v19, %v670_v19  ;;  %v692_v22 = vadd.f32 %v691_v18, %v670_v19  ;;  %v705_v23 = vmul.f32 %v670_v19, %v670_v19 }
  0xe8   : > { %686 = vst [vmem:[%s1298_s21 + $0x18] sm:$0xf] %v679_v21  ;;  %v693_v24 = vrot.slane %v692_v22, 4  ;;  %v711_v25 = vadd.f32 %v710_v20, %v705_v23 }
  0xe9   : > { %v643_v26 = vpop.f32.mrf.mxu2 }
  0xea   : > { %v671_v27 = vpop.f32.mrf.mxu3  ;;  %v694_v28 = vadd.f32 %v693_v24, %v692_v22  ;;  %v712_v29 = vrot.slane %v711_v25, 4 }
  0xec   : > { %v695_v30 = vrot.slane %v694_v28, 2  ;;  %v713_v31 = vadd.f32 %v712_v29, %v711_v25 }
  0xee   : > { %v696_v32 = vadd.f32 %v695_v30, %v694_v28  ;;  %v714_v33 = vrot.slane %v713_v31, 2 }
  0xf0   : > { %v697_v34 = vrot.slane %v696_v32, 1  ;;  %v715_v35 = vadd.f32 %v714_v33, %v713_v31 }
  0xf2   : > { %v716_v36 = vrot.slane %v715_v35, 1  ;;  %v698_v37 = vadd.f32 %v697_v34, %v696_v32 }
  0xf4   : > { %v717_v38 = vadd.f32 %v716_v36, %v715_v35 }
  0xf6   : > { %v720_v40 = vsel %vm719_vm0, %v698_v37, %v717_v38 }
  0xf7   : > { %v721_v41 = vadd.f32 %v720_v40, %v718_v39 }
  0xf9   : > { %722 = vst [vmem:[%s1304_s25] sm:$0x3] %v721_v41 }
  0xfa PF: > { %s14_s14 = sadd.s32 1, %s1118_s14   ;;  %s1325_s12 = smov %s1114_s13 }
  0xfb   : > { %p11_p6 = scmp.ge.s32.totalorder %s14_s14, 4   ;;  %s1326_s13 = smov %s1328_s15 }
  0xfd   :  { %13 = sbr.rel (!%p11_p6) target bundleno = 2 (0x2), region = 74 }

// kernel: discriminator_forward.15
= control target key start
LH: loop header
LB: loop body
LE: loop exit
PB: predicated region body
PF: predicated region fallthrough
CT: control target
= control target key end

     0   :  { %s1514_s12 = smov 0   ;;  %s1775_s0 = inlined_call_operand.vmem [shape: bf16[80,1024], index: 0, kind: input, shape index: {}]   ;;  %s1776_s1 = inlined_call_operand.vmem [shape: bf16[1024,128], index: 1, kind: input, shape index: {}]   ;;  %s1777_s2 = inlined_call_operand.vmem [shape: f32[1,128], index: 2, kind: input, shape index: {}]   ;;  %s1778_s3 = inlined_call_operand.vmem [shape: f32[80,128], index: 3, kind: output, shape index: {}]  }
   0x1 LB: > { %s1066_s13 = sadd.s32 4294967295, %s1492_s12   ;;  %p1070_p0 = scmp.ge.s32.totalorder %s1492_s12, 1  ;;  %s1492_s12 = sphi %s1514_s12, %s13_s12  }
   0x2   : > { %p139_p1 = scmp.lt.s32.totalorder %s1492_s12, 3 }
   0x4   : > { %p140_p2 = pnand %p1070_p0, %p139_p1 }
   0x5   : > { %s164_s11 = smul.u32 (!%p140_p2), 5, %s1066_s13 }
   0x6   : > { %143 = sbr.rel (%p140_p2) target bundleno = 266 (0x10a), region = 32 }
   0x7   : > { %p165_p3 = scmp.lt.s32.totalorder (!%p140_p2), %s164_s11, 9 }
   0xb   : > { %v1420_v0 = vld [vmem:[%s1776_s1 + $0x38] sm:$0xff]  ;;  %v1419_v4 = vld [vmem:[%s1776_s1 + $0x30] sm:$0xff]  ;;  %v1418_v8 = vld [vmem:[%s1776_s1 + $0x28] sm:$0xff]  ;;  %s1780_s11 = smov (!%p165_p3, %s164_s11), 9 }
   0xc   : > { %v1428_v1 = vld [vmem:[%s1776_s1 + $0x78] sm:$0xff]  ;;  %821 = vmatpush.bf16.msra.mxu0 %v1420_v0  ;;  %v1427_v5 = vld [vmem:[%s1776_s1 + $0x70] sm:$0xff]  ;;  %v1426_v9 = vld [vmem:[%s1776_s1 + $0x68] sm:$0xff]  ;;  %s1396_s10 = sshll.u32 %s1780_s11, 5  ;;  %s1073_s25 = sshll.u32 %s1780_s11, 3 }
   0xd   : > { %v1436_v2 = vld [vmem:[%s1776_s1 + $0xb8] sm:$0xff]  ;;  %844 = vmatpush.bf16.msra.mxu1 %v1428_v1  ;;  %v1435_v6 = vld [vmem:[%s1776_s1 + $0xb0] sm:$0xff]  ;;  %v1434_v10 = vld [vmem:[%s1776_s1 + $0xa8] sm:$0xff]  ;;  %s1606_s20 = scalar_lea.vmem %s1775_s0, %s1396_s10  ;;  %s1765_s28 = scalar_lea.vmem %s1778_s3, %s1073_s25 }
   0xe   : > { %v1444_v3 = vld [vmem:[%s1776_s1 + $0xf8] sm:$0xff]  ;;  %867 = vmatpush.bf16.msra.mxu2 %v1436_v2  ;;  %v1443_v7 = vld [vmem:[%s1776_s1 + $0xf0] sm:$0xff]  ;;  %v1442_v11 = vld [vmem:[%s1776_s1 + $0xe8] sm:$0xff] }
   0xf   : > { %890 = vmatpush.bf16.msra.mxu3 %v1444_v3  ;;  %v1417_v12 = vld [vmem:[%s1776_s1 + $0x20] sm:$0xff]  ;;  %v1416_v16 = vld [vmem:[%s1776_s1 + $0x18] sm:$0xff]  ;;  %v1415_v20 = vld [vmem:[%s1776_s1 + $0x10] sm:$0xff] }
  0x10   : > { %822 = vmatpush.bf16.msra.mxu0 %v1419_v4  ;;  %v1425_v13 = vld [vmem:[%s1776_s1 + $0x60] sm:$0xff]  ;;  %v1424_v17 = vld [vmem:[%s1776_s1 + $0x58] sm:$0xff]  ;;  %v1423_v21 = vld [vmem:[%s1776_s1 + $0x50] sm:$0xff] }
  0x11   : > { %845 = vmatpush.bf16.msra.mxu1 %v1427_v5  ;;  %v1433_v14 = vld [vmem:[%s1776_s1 + $0xa0] sm:$0xff]  ;;  %v1432_v18 = vld [vmem:[%s1776_s1 + $0x98] sm:$0xff]  ;;  %v1431_v22 = vld [vmem:[%s1776_s1 + $0x90] sm:$0xff] }
  0x12   : > { %868 = vmatpush.bf16.msra.mxu2 %v1435_v6  ;;  %v1441_v15 = vld [vmem:[%s1776_s1 + $0xe0] sm:$0xff]  ;;  %v1440_v19 = vld [vmem:[%s1776_s1 + $0xd8] sm:$0xff]  ;;  %v1439_v23 = vld [vmem:[%s1776_s1 + $0xd0] sm:$0xff] }
  0x13   : > { %891 = vmatpush.bf16.msra.mxu3 %v1443_v7  ;;  %v1414_v24 = vld [vmem:[%s1776_s1 + $0x8] sm:$0xff]  ;;  %v1413_v28 = vld [vmem:[%s1776_s1] sm:$0xff]  ;;  %v1468_v40 = vld [vmem:[%s1776_s1 + $0x1b8] sm:$0xff] }
  0x14   : > { %823 = vmatpush.bf16.msra.mxu0 %v1418_v8  ;;  %v1422_v25 = vld [vmem:[%s1776_s1 + $0x48] sm:$0xff]  ;;  %v1421_v29 = vld [vmem:[%s1776_s1 + $0x40] sm:$0xff]  ;;  %v1476_v41 = vld [vmem:[%s1776_s1 + $0x1f8] sm:$0xff] }
  0x15   : > { %846 = vmatpush.bf16.msra.mxu1 %v1426_v9  ;;  %v1430_v26 = vld [vmem:[%s1776_s1 + $0x88] sm:$0xff]  ;;  %v1429_v30 = vld [vmem:[%s1776_s1 + $0x80] sm:$0xff]  ;;  %v1452_v46 = vld [vmem:[%s1776_s1 + $0x138] sm:$0xff] }
  0x16   : > { %869 = vmatpush.bf16.msra.mxu2 %v1434_v10  ;;  %v1438_v27 = vld [vmem:[%s1776_s1 + $0xc8] sm:$0xff]  ;;  %v1437_v31 = vld [vmem:[%s1776_s1 + $0xc0] sm:$0xff]  ;;  %v1460_v47 = vld [vmem:[%s1776_s1 + $0x178] sm:$0xff] }
  0x17   : > { %892 = vmatpush.bf16.msra.mxu3 %v1442_v11  ;;  %v1076_v32 = vld [vmem:[%s1606_s20] sm:$0xf]  ;;  %v1397_v34 = vld [vmem:[%s1606_s20 + $0x4] sm:$0xf]  ;;  %v1084_v36 = vld [vmem:[%s1606_s20 + $0x8] sm:$0xf] }
  0x18   : > { %824 = vmatpush.bf16.msra.mxu0 %v1417_v12  ;;  %v1401_v33 = vld [vmem:[%s1606_s20 + $0x1c] sm:$0xf0]  ;;  %v1078_v35 = vld [vmem:[%s1606_s20 + $0x20] sm:$0xf0]  ;;  %v1402_v37 = vld [vmem:[%s1606_s20 + $0x24] sm:$0xf0] }
  0x19   : > { %847 = vmatpush.bf16.msra.mxu1 %v1425_v13  ;;  %v1398_v38 = vld [vmem:[%s1606_s20 + $0xc] sm:$0xf]  ;;  %v1077_v42 = vor.u32 %v1401_v33, %v1076_v32  ;;  %v1081_v43 = vor.u32 %v1397_v34, %v1078_v35  ;;  %v1085_v44 = vor.u32 %v1402_v37, %v1084_v36  ;;  %v1467_v48 = vld [vmem:[%s1776_s1 + $0x1b0] sm:$0xff]  ;;  %v1108_v56 = vld [vmem:[%s1606_s20 + $0x40] sm:$0xf] }
  0x1a   : > { %870 = vmatpush.bf16.msra.mxu2 %v1433_v14  ;;  %v1086_v39 = vld [vmem:[%s1606_s20 + $0x28] sm:$0xf0]  ;;  %v1475_v49 = vld [vmem:[%s1776_s1 + $0x1f0] sm:$0xff]  ;;  %v1465_v57 = vld [vmem:[%s1776_s1 + $0x1a0] sm:$0xff] }
  0x1b   : > { %893 = vmatpush.bf16.msra.mxu3 %v1441_v15  ;;  %v1089_v45 = vor.u32 %v1398_v38, %v1086_v39  ;;  %v1451_v50 = vld [vmem:[%s1776_s1 + $0x130] sm:$0xff]  ;;  %v1466_v52 = vld [vmem:[%s1776_s1 + $0x1a8] sm:$0xff]  ;;  %v1473_v58 = vld [vmem:[%s1776_s1 + $0x1e0] sm:$0xff] }
  0x1c   : > { %825 = vmatpush.bf16.msra.mxu0 %v1416_v16  ;;  %v1459_v51 = vld [vmem:[%s1776_s1 + $0x170] sm:$0xff]  ;;  %v1474_v53 = vld [vmem:[%s1776_s1 + $0x1e8] sm:$0xff]  ;;  %v1409_v59 = vld [vmem:[%s1606_s20 + $0x5c] sm:$0xf0] }
  0x1d   : > { %848 = vmatpush.bf16.msra.mxu1 %v1424_v17  ;;  %v1450_v54 = vld [vmem:[%s1776_s1 + $0x128] sm:$0xff]  ;;  %v1405_v60 = vld [vmem:[%s1606_s20 + $0x44] sm:$0xf]  ;;  %v1464_v4 = vld [vmem:[%s1776_s1 + $0x198] sm:$0xff]  ;;  %v1109_v6 = vor.u32 %v1409_v59, %v1108_v56 }
  0x1e   : > { %871 = vmatpush.bf16.msra.mxu2 %v1432_v18  ;;  %v1458_v55 = vld [vmem:[%s1776_s1 + $0x168] sm:$0xff]  ;;  %v1110_v61 = vld [vmem:[%s1606_s20 + $0x60] sm:$0xf0]  ;;  %v1472_v5 = vld [vmem:[%s1776_s1 + $0x1d8] sm:$0xff] }
  0x1f   : > { %894 = vmatpush.bf16.msra.mxu3 %v1440_v19  ;;  %v1116_v62 = vld [vmem:[%s1606_s20 + $0x48] sm:$0xf]  ;;  %v1406_v0 = vld [vmem:[%s1606_s20 + $0x4c] sm:$0xf]  ;;  %v1449_v2 = vld [vmem:[%s1776_s1 + $0x120] sm:$0xff]  ;;  %v1113_v7 = vor.u32 %v1405_v60, %v1110_v61 }
  0x20   : > { %826 = vmatpush.bf16.msra.mxu0 %v1415_v20  ;;  %v1410_v63 = vld [vmem:[%s1606_s20 + $0x64] sm:$0xf0]  ;;  %v1118_v1 = vld [vmem:[%s1606_s20 + $0x68] sm:$0xf0]  ;;  %v1457_v3 = vld [vmem:[%s1776_s1 + $0x160] sm:$0xff] }
  0x21   : > { %849 = vmatpush.bf16.msra.mxu1 %v1423_v21  ;;  %v1117_v8 = vor.u32 %v1410_v63, %v1116_v62  ;;  %v1121_v9 = vor.u32 %v1406_v0, %v1118_v1  ;;  %v1448_v10 = vld [vmem:[%s1776_s1 + $0x118] sm:$0xff]  ;;  %v1463_v12 = vld [vmem:[%s1776_s1 + $0x190] sm:$0xff]  ;;  %v1462_v16 = vld [vmem:[%s1776_s1 + $0x188] sm:$0xff] }
  0x22   : > { %872 = vmatpush.bf16.msra.mxu2 %v1431_v22  ;;  %v1456_v11 = vld [vmem:[%s1776_s1 + $0x158] sm:$0xff]  ;;  %v1471_v13 = vld [vmem:[%s1776_s1 + $0x1d0] sm:$0xff]  ;;  %v1470_v17 = vld [vmem:[%s1776_s1 + $0x1c8] sm:$0xff] }
  0x23   : > { %895 = vmatpush.bf16.msra.mxu3 %v1439_v23  ;;  %v1447_v14 = vld [vmem:[%s1776_s1 + $0x110] sm:$0xff]  ;;  %v193_v18 = vld [vmem:[%s1606_s20 + $0x80] sm:$0xff]  ;;  %v194_v19 = vld [vmem:[%s1606_s20 + $0x88] sm:$0xff] }
  0x24   : > { %827 = vmatpush.bf16.msra.mxu0 %v1414_v24  ;;  %v1455_v15 = vld [vmem:[%s1776_s1 + $0x150] sm:$0xff]  ;;  %v1446_v20 = vld [vmem:[%s1776_s1 + $0x108] sm:$0xff]  ;;  %v1461_v22 = vld [vmem:[%s1776_s1 + $0x180] sm:$0xff]  ;;  %v381_v24 = vunpack.c.l.b16 %v193_v18 }
  0x25   : > { %850 = vmatpush.bf16.msra.mxu1 %v1422_v25  ;;  %v1454_v21 = vld [vmem:[%s1776_s1 + $0x148] sm:$0xff]  ;;  %v1469_v23 = vld [vmem:[%s1776_s1 + $0x1c0] sm:$0xff]  ;;  %v382_v25 = vunpack.c.h.b16 %v193_v18  ;;  %v1092_v34 = vld [vmem:[%s1606_s20 + $0x10] sm:$0xf] }
  0x26   : > { %873 = vmatpush.bf16.msra.mxu2 %v1430_v26  ;;  %v383_v26 = vunpack.c.l.b16 %v194_v19  ;;  %v1403_v35 = vld [vmem:[%s1606_s20 + $0x2c] sm:$0xf0]  ;;  %v1399_v36 = vld [vmem:[%s1606_s20 + $0x14] sm:$0xf]  ;;  %v1100_v38 = vld [vmem:[%s1606_s20 + $0x18] sm:$0xf] }
  0x27   : > { %896 = vmatpush.bf16.msra.mxu3 %v1438_v27  ;;  %v384_v27 = vunpack.c.h.b16 %v194_v19  ;;  %v1094_v37 = vld [vmem:[%s1606_s20 + $0x30] sm:$0xf0]  ;;  %v1404_v39 = vld [vmem:[%s1606_s20 + $0x34] sm:$0xf0] }
  0x28   : > { %828 = vmatpush.bf16.msra.mxu0 %v1413_v28  ;;  %v1445_v28 = vld [vmem:[%s1776_s1 + $0x100] sm:$0xff]  ;;  %v407_v32 = vpack.c.b16 %v383_v26, %v383_v26  ;;  %v196_v59 = vld [vmem:[%s1606_s20 + $0x98] sm:$0xff] }
  0x29   : > { %851 = vmatpush.bf16.msra.mxu1 %v1421_v29  ;;  %v1453_v29 = vld [vmem:[%s1776_s1 + $0x140] sm:$0xff]  ;;  %v408_v33 = vpack.c.b16 %v384_v27, %v384_v27  ;;  %v387_v62 = vunpack.c.l.b16 %v196_v59  ;;  %v388_v63 = vunpack.c.h.b16 %v196_v59 }
  0x2a   : > { %874 = vmatpush.bf16.msra.mxu2 %v1429_v30  ;;  %v405_v30 = vpack.c.b16 %v381_v24, %v381_v24 }
  0x2b   : > { %897 = vmatpush.bf16.msra.mxu3 %v1437_v31  ;;  %829 = vmatmul.bf16.vlgmr.msra.gmra.mxu0 %v1077_v42  ;;  %v406_v31 = vpack.c.b16 %v382_v25, %v382_v25  ;;  %v1093_v42 = vor.u32 %v1403_v35, %v1092_v34 }
  0x2c   : > { %852 = vmatmul.bf16.vlgmr.msra.gmra.mxu1 %v1081_v43  ;;  %913 = vmatpush.bf16.msrb.mxu0 %v1452_v46  ;;  %v1097_v43 = vor.u32 %v1399_v36, %v1094_v37  ;;  %v1124_v46 = vld [vmem:[%s1606_s20 + $0x50] sm:$0xf] }
  0x2d   : > { %875 = vmatmul.bf16.vlgmr.msra.gmra.mxu2 %v1085_v44  ;;  %936 = vmatpush.bf16.msrb.mxu1 %v1460_v47  ;;  %v1101_v44 = vor.u32 %v1404_v39, %v1100_v38  ;;  %v1411_v47 = vld [vmem:[%s1606_s20 + $0x6c] sm:$0xf0] }
  0x2e   : > { %959 = vmatpush.bf16.msrb.mxu2 %v1468_v40  ;;  %898 = vmatmul.bf16.vlgmr.msra.gmra.mxu3 %v1089_v45  ;;  %v1400_v40 = vld [vmem:[%s1606_s20 + $0x1c] sm:$0xf] }
  0x2f   : > { %982 = vmatpush.bf16.msrb.mxu3 %v1476_v41  ;;  %v1102_v41 = vld [vmem:[%s1606_s20 + $0x38] sm:$0xf0] }
  0x30   : > { %914 = vmatpush.bf16.msrb.mxu0 %v1451_v50  ;;  %v1105_v45 = vor.u32 %v1400_v40, %v1102_v41  ;;  %v1132_v50 = vld [vmem:[%s1606_s20 + $0x58] sm:$0xf] }
  0x31   : > { %937 = vmatpush.bf16.msrb.mxu1 %v1459_v51  ;;  %v1412_v51 = vld [vmem:[%s1606_s20 + $0x74] sm:$0xf0] }
  0x32   : > { %960 = vmatpush.bf16.msrb.mxu2 %v1467_v48  ;;  %v1407_v48 = vld [vmem:[%s1606_s20 + $0x54] sm:$0xf]  ;;  %v1133_v56 = vor.u32 %v1412_v51, %v1132_v50 }
  0x33   : > { %983 = vmatpush.bf16.msrb.mxu3 %v1475_v49  ;;  %v1126_v49 = vld [vmem:[%s1606_s20 + $0x70] sm:$0xf0] }
  0x34   : > { %915 = vmatpush.bf16.msrb.mxu0 %v1450_v54  ;;  %v1125_v54 = vor.u32 %v1411_v47, %v1124_v46 }
  0x35   : > { %938 = vmatpush.bf16.msrb.mxu1 %v1458_v55  ;;  %v1129_v55 = vor.u32 %v1407_v48, %v1126_v49 }
  0x36   : > { %961 = vmatpush.bf16.msrb.mxu2 %v1466_v52  ;;  %v1408_v52 = vld [vmem:[%s1606_s20 + $0x5c] sm:$0xf] }
  0x37   : > { %984 = vmatpush.bf16.msrb.mxu3 %v1474_v53  ;;  %v1134_v53 = vld [vmem:[%s1606_s20 + $0x78] sm:$0xf0] }
  0x38   : > { %916 = vmatpush.bf16.msrb.mxu0 %v1449_v2  ;;  %v411_v2 = vpack.c.b16 %v387_v62, %v387_v62 }
  0x39   : > { %939 = vmatpush.bf16.msrb.mxu1 %v1457_v3  ;;  %v412_v3 = vpack.c.b16 %v388_v63, %v388_v63 }
  0x3a   : > { %962 = vmatpush.bf16.msrb.mxu2 %v1465_v57  ;;  %v1137_v57 = vor.u32 %v1408_v52, %v1134_v53 }
  0x3b   : > { %985 = vmatpush.bf16.msrb.mxu3 %v1473_v58  ;;  %834 = vmatmul.bf16.gmra.mxu0 %v1109_v6  ;;  %v195_v58 = vld [vmem:[%s1606_s20 + $0x90] sm:$0xff] }
  0x3c   : > { %857 = vmatmul.bf16.gmra.mxu1 %v1113_v7  ;;  %917 = vmatpush.bf16.msrb.mxu0 %v1448_v10  ;;  %v385_v60 = vunpack.c.l.b16 %v195_v58  ;;  %v386_v61 = vunpack.c.h.b16 %v195_v58 }
  0x3d   : > { %880 = vmatmul.bf16.gmra.mxu2 %v1117_v8  ;;  %940 = vmatpush.bf16.msrb.mxu1 %v1456_v11 }
  0x3e   : > { %963 = vmatpush.bf16.msrb.mxu2 %v1464_v4  ;;  %903 = vmatmul.bf16.gmra.mxu3 %v1121_v9  ;;  %v409_v0 = vpack.c.b16 %v385_v60, %v385_v60  ;;  %v410_v1 = vpack.c.b16 %v386_v61, %v386_v61 }
  0x3f   : > { %986 = vmatpush.bf16.msrb.mxu3 %v1472_v5 }
  0x40   : > { %918 = vmatpush.bf16.msrb.mxu0 %v1447_v14 }
  0x41   : > { %941 = vmatpush.bf16.msrb.mxu1 %v1455_v15 }
  0x42   : > { %964 = vmatpush.bf16.msrb.mxu2 %v1463_v12 }
  0x43   : > { %987 = vmatpush.bf16.msrb.mxu3 %v1471_v13 }
  0x44   : > { %919 = vmatpush.bf16.msrb.mxu0 %v1446_v20  ;;  %v1485_v20 = vld [vmem:[%s1777_s2] ss:$0 sm:$0xff] }
  0x45   : > { %942 = vmatpush.bf16.msrb.mxu1 %v1454_v21 }
  0x46   : > { %965 = vmatpush.bf16.msrb.mxu2 %v1462_v16 }
  0x47   : > { %988 = vmatpush.bf16.msrb.mxu3 %v1470_v17 }
  0x48   : > { %920 = vmatpush.bf16.msrb.mxu0 %v1445_v28 }
  0x49   : > { %943 = vmatpush.bf16.msrb.mxu1 %v1453_v29 }
  0x4a   : > { %966 = vmatpush.bf16.msrb.mxu2 %v1461_v22 }
  0x4b   : > { %989 = vmatpush.bf16.msrb.mxu3 %v1469_v23  ;;  %839 = vmatmul.bf16.gmra.mxu0 %v405_v30 }
  0x4c   : > { %862 = vmatmul.bf16.gmra.mxu1 %v406_v31 }
  0x4d   : > { %885 = vmatmul.bf16.gmra.mxu2 %v407_v32 }
  0x4e   : > { %908 = vmatmul.bf16.gmra.mxu3 %v408_v33 }
  0x5b   : > { %921 = vmatmul.bf16.vlgmr.msrb.gmra.mxu0 %v1093_v42 }
  0x5c   : > { %944 = vmatmul.bf16.vlgmr.msrb.gmra.mxu1 %v1097_v43 }
  0x5d   : > { %967 = vmatmul.bf16.vlgmr.msrb.gmra.mxu2 %v1101_v44 }
  0x5e   : > { %990 = vmatmul.bf16.vlgmr.msrb.gmra.mxu3 %v1105_v45 }
  0x6b   : > { %926 = vmatmul.bf16.gmra.mxu0 %v1125_v54 }
  0x6c   : > { %949 = vmatmul.bf16.gmra.mxu1 %v1129_v55 }
  0x6d   : > { %972 = vmatmul.bf16.gmra.mxu2 %v1133_v56 }
  0x6e   : > { %995 = vmatmul.bf16.gmra.mxu3 %v1137_v57 }
  0x7b   : > { %931 = vmatmul.bf16.gmra.mxu0 %v409_v0 }
  0x7c   : > { %954 = vmatmul.bf16.gmra.mxu1 %v410_v1 }
  0x7d   : > { %977 = vmatmul.bf16.gmra.mxu2 %v411_v2 }
  0x7e   : > { %1000 = vmatmul.bf16.gmra.mxu3 %v412_v3 }
  0xa8   : > { %v830_v4 = vpop.f32.mrf.mxu0 }
  0xa9   : > { %v853_v5 = vpop.f32.mrf.mxu1  ;;  %v831_v23 = vadd.f32 %v1485_v20, %v830_v4 }
  0xab   : > { %v854_v26 = vadd.f32 %v853_v5, %v831_v23 }
  0xb0   : > { %v876_v6 = vpop.f32.mrf.mxu2  ;;  %v832_v8 = vpop.f32.mrf.mxu0 }
  0xb1   : > { %v899_v7 = vpop.f32.mrf.mxu3  ;;  %v855_v9 = vpop.f32.mrf.mxu1  ;;  %v877_v29 = vadd.f32 %v876_v6, %v854_v26  ;;  %v833_v30 = vadd.f32 %v1485_v20, %v832_v8 }
  0xb3   : > { %v900_v33 = vadd.f32 %v899_v7, %v877_v29  ;;  %v856_v36 = vadd.f32 %v855_v9, %v833_v30 }
  0xb8   : > { %v878_v10 = vpop.f32.mrf.mxu2  ;;  %v835_v12 = vpop.f32.mrf.mxu0 }
  0xb9   : > { %v901_v11 = vpop.f32.mrf.mxu3  ;;  %v858_v13 = vpop.f32.mrf.mxu1  ;;  %v879_v38 = vadd.f32 %v878_v10, %v856_v36  ;;  %v836_v39 = vadd.f32 %v1485_v20, %v835_v12 }
  0xbb   : > { %v902_v43 = vadd.f32 %v901_v11, %v879_v38  ;;  %v859_v44 = vadd.f32 %v858_v13, %v836_v39 }
  0xc0   : > { %v881_v14 = vpop.f32.mrf.mxu2  ;;  %v837_v16 = vpop.f32.mrf.mxu0 }
  0xc1   : > { %v904_v15 = vpop.f32.mrf.mxu3  ;;  %v860_v17 = vpop.f32.mrf.mxu1  ;;  %v882_v50 = vadd.f32 %v881_v14, %v859_v44  ;;  %v838_v51 = vadd.f32 %v1485_v20, %v837_v16 }
  0xc3   : > { %v905_v55 = vadd.f32 %v904_v15, %v882_v50  ;;  %v861_v59 = vadd.f32 %v860_v17, %v838_v51 }
  0xc8   : > { %v883_v18 = vpop.f32.mrf.mxu2  ;;  %v840_v21 = vpop.f32.mrf.mxu0 }
  0xc9   : > { %v906_v19 = vpop.f32.mrf.mxu3  ;;  %v863_v22 = vpop.f32.mrf.mxu1  ;;  %v884_v62 = vadd.f32 %v883_v18, %v861_v59  ;;  %v841_v63 = vadd.f32 %v1485_v20, %v840_v21 }
  0xcb   : > { %v907_v3 = vadd.f32 %v906_v19, %v884_v62  ;;  %v864_v4 = vadd.f32 %v863_v22, %v841_v63 }
  0xd0   : > { %v886_v24 = vpop.f32.mrf.mxu2  ;;  %v842_v27 = vpop.f32.mrf.mxu0 }
  0xd1   : > { %v909_v25 = vpop.f32.mrf.mxu3  ;;  %v865_v28 = vpop.f32.mrf.mxu1  ;;  %v887_v10 = vadd.f32 %v886_v24, %v864_v4 }
  0xd3   : > { %v910_v14 = vadd.f32 %v909_v25, %v887_v10 }
  0xd8   : > { %v888_v31 = vpop.f32.mrf.mxu2  ;;  %v922_v34 = vpop.f32.mrf.mxu0 }
  0xd9   : > { %v911_v32 = vpop.f32.mrf.mxu3  ;;  %v945_v35 = vpop.f32.mrf.mxu1  ;;  %v923_v37 = vadd.f32 %v922_v34, %v900_v33 }
  0xdb   : > { %v946_v40 = vadd.f32 %v945_v35, %v923_v37 }
  0xe0   : > { %v968_v41 = vpop.f32.mrf.mxu2  ;;  %v924_v46 = vpop.f32.mrf.mxu0 }
  0xe1   : > { %v991_v42 = vpop.f32.mrf.mxu3  ;;  %v969_v45 = vadd.f32 %v968_v41, %v946_v40  ;;  %v947_v47 = vpop.f32.mrf.mxu1  ;;  %v925_v49 = vadd.f32 %v924_v46, %v902_v43 }
  0xe3   : > { %v992_v48 = vadd.f32 %v991_v42, %v969_v45  ;;  %v948_v52 = vadd.f32 %v947_v47, %v925_v49 }
  0xe5   : > { %1005 = vst [vmem:[%s1765_s28] sm:$0xff] %v992_v48 }
  0xe8   : > { %v970_v53 = vpop.f32.mrf.mxu2  ;;  %v927_v57 = vpop.f32.mrf.mxu0 }
  0xe9   : > { %v993_v54 = vpop.f32.mrf.mxu3  ;;  %v971_v56 = vadd.f32 %v970_v53, %v948_v52  ;;  %v950_v58 = vpop.f32.mrf.mxu1  ;;  %v928_v61 = vadd.f32 %v927_v57, %v905_v55 }
  0xeb   : > { %v994_v60 = vadd.f32 %v993_v54, %v971_v56  ;;  %v951_v0 = vadd.f32 %v950_v58, %v928_v61 }
  0xed   : > { %1006 = vst [vmem:[%s1765_s28 + $0x8] sm:$0xff] %v994_v60 }
  0xf0   : > { %v973_v1 = vpop.f32.mrf.mxu2  ;;  %v929_v6 = vpop.f32.mrf.mxu0 }
  0xf1   : > { %v996_v2 = vpop.f32.mrf.mxu3  ;;  %v974_v5 = vadd.f32 %v973_v1, %v951_v0  ;;  %v952_v7 = vpop.f32.mrf.mxu1  ;;  %v930_v9 = vadd.f32 %v929_v6, %v907_v3 }
  0xf3   : > { %v997_v8 = vadd.f32 %v996_v2, %v974_v5  ;;  %v953_v11 = vadd.f32 %v952_v7, %v930_v9 }
  0xf5   : > { %1007 = vst [vmem:[%s1765_s28 + $0x10] sm:$0xff] %v997_v8 }
  0xf8   : > { %v975_v12 = vpop.f32.mrf.mxu2  ;;  %v932_v16 = vpop.f32.mrf.mxu0 }
  0xf9   : > { %v998_v13 = vpop.f32.mrf.mxu3  ;;  %v976_v15 = vadd.f32 %v975_v12, %v953_v11  ;;  %v955_v17 = vpop.f32.mrf.mxu1  ;;  %v933_v20 = vadd.f32 %v932_v16, %v910_v14 }
  0xfb   : > { %v999_v18 = vadd.f32 %v998_v13, %v976_v15  ;;  %v956_v19 = vadd.f32 %v955_v17, %v933_v20 }
  0xfd   : > { %1008 = vst [vmem:[%s1765_s28 + $0x18] sm:$0xff] %v999_v18 }
 0x100   : > { %v978_v21 = vpop.f32.mrf.mxu2  ;;  %v934_v26 = vpop.f32.mrf.mxu0 }
 0x101   : > { %v1001_v22 = vpop.f32.mrf.mxu3  ;;  %v979_v23 = vadd.f32 %v978_v21, %v956_v19  ;;  %v957_v27 = vpop.f32.mrf.mxu1 }
 0x103   : > { %v1002_v28 = vadd.f32 %v1001_v22, %v979_v23 }
 0x105   : > { %1009 = vst [vmem:[%s1765_s28 + $0x20] sm:$0xff] %v1002_v28 }
 0x108   : > { %v980_v24 = vpop.f32.mrf.mxu2 }
 0x109   : > { %v1003_v29 = vpop.f32.mrf.mxu3 }
 0x10a PF: > { %s13_s12 = sadd.s32 1, %s1492_s12  }
 0x10b   : > { %p10_p4 = scmp.ge.s32.totalorder %s13_s12, 4  }
 0x10d   :  { %12 = sbr.rel (!%p10_p4) target bundleno = 1 (0x1), region = 62 }

</bundles_post_ra>
